<compile_context>
chip_gen: v7x
topology: tpu7x:2x2x1
jax: 0.10.0
libtpu: 0.0.40
codegen_flags: <defaults>
</compile_context>

<pallas_src>
import functools

import jax
import jax.numpy as jnp
from jax.experimental import pallas as pl
from jax.experimental.pallas import tpu as pltpu

USE_BF16 = True   # bf16 matmul operands + f32 accumulate; False = exact f32 path


# ----------------------------------------------------------------------------
# Generation-aware configuration (VMEM limit, max lane tile, dense batch tile)
# ----------------------------------------------------------------------------
@functools.lru_cache(maxsize=None)
def _tpu_config():
    vmem_cap = 64 * 2**20          # conservative default (v7x-sized VMEM)
    kind = ""
    try:
        info = pltpu.get_tpu_info()
        vmem_cap = int(getattr(info, "vmem_capacity_bytes", vmem_cap))
    except Exception:
        pass
    try:
        kind = jax.devices()[0].device_kind.lower()
    except Exception:
        pass
    if vmem_cap >= 100 * 2**20:    # v5e / v6e: 128 MiB physical VMEM
        vmem_limit, max_tile_m = 96 * 2**20, 8192
    else:                          # v7x: 64 MiB physical VMEM
        vmem_limit, max_tile_m = 48 * 2**20, 4096
    dense_tb_max = 128 if any(t in kind for t in ("v2", "v3", "v4", "v5")) else 256
    return vmem_limit, max_tile_m, dense_tb_max


def _pick_tile_m(m, max_tile):
    """Lane tile ~ ceil(M/2) rounded up to 128 (>=2 parallel grid steps), capped."""
    if m <= 128:
        return m
    return min(max_tile, 128 * pl.cdiv(m, 256))


def _pick_tile_b(b, tb_max):
    """Batch tile: multiple of 8 (~ceil(B/2)), capped at 256 (v6e/v7x) / 128 (v5e)."""
    if b <= 8:
        return b
    return min(tb_max, 8 * pl.cdiv(b, 16))


# ----------------------------------------------------------------------------
# Kernel 1/2: lane-dense conv-as-matmul   out[O, M] = relu(W[O,K] @ P[K,M] + b)
# ----------------------------------------------------------------------------
def _conv_kernel(w_ref, p_ref, b_ref, o_ref):
    acc = jnp.dot(w_ref[...], p_ref[...], preferred_element_type=jnp.float32)
    o_ref[...] = jnp.maximum(acc + b_ref[...], 0.0).astype(o_ref.dtype)


def conv_mm(wmat, patches_t, bias, out_dtype):
    """wmat:[O,K], patches_t:[K,M], bias:[O,1](f32) -> relu(W@P + b): [O,M]."""
    o_dim, k_dim = wmat.shape
    k2, m_dim = patches_t.shape
    assert k_dim == k2
    vmem_limit, max_tile_m, _ = _tpu_config()
    tm = _pick_tile_m(m_dim, max_tile_m)
    grid_m = pl.cdiv(m_dim, tm)
    cost = pl.CostEstimate(
        flops=2 * o_dim * k_dim * m_dim, transcendentals=0,
        bytes_accessed=int(wmat.size * wmat.dtype.itemsize
                           + patches_t.size * patches_t.dtype.itemsize
                           + bias.size * 4
                           + o_dim * m_dim * jnp.dtype(out_dtype).itemsize))
    return pl.pallas_call(
        _conv_kernel,
        out_shape=jax.ShapeDtypeStruct((o_dim, m_dim), out_dtype),
        grid=(grid_m,),
        in_specs=[
            pl.BlockSpec((o_dim, k_dim), lambda m: (0, 0)),
            pl.BlockSpec((k_dim, tm), lambda m: (0, m)),
            pl.BlockSpec((o_dim, 1), lambda m: (0, 0)),
        ],
        out_specs=pl.BlockSpec((o_dim, tm), lambda m: (0, m)),
        compiler_params=pltpu.CompilerParams(
            dimension_semantics=("parallel",),
            vmem_limit_bytes=vmem_limit),
        cost_estimate=cost,
    )(wmat, patches_t, bias)


# ----------------------------------------------------------------------------
# Kernel 3: fused dense_1(+ReLU) + output head, consuming y2 in its native
# [32, tb, 81] layout (no XLA feat transpose).  hidden stays in VMEM.
# ----------------------------------------------------------------------------
def _tail_kernel(y2_ref, w1_ref, b1_ref, w2_ref, b2_ref, o_ref):
    tb = y2_ref.shape[1]
    h_dim = w1_ref.shape[2]
    acc = jnp.zeros((tb, h_dim), jnp.float32)
    # hidden[b,h] = sum_{c,s} y2[c,b,s] * w1[c,s,h]  (== torch flatten order)
    for c in range(y2_ref.shape[0]):                      # 32, static unroll
        acc = acc + jnp.dot(y2_ref[c], w1_ref[c],
                            preferred_element_type=jnp.float32)
    h = jnp.maximum(acc + b1_ref[...], 0.0).astype(w2_ref.dtype)
    y = jnp.dot(h, w2_ref[...], preferred_element_type=jnp.float32)
    o_ref[...] = (y + b2_ref[...]).astype(o_ref.dtype)


def dense_tail(y2r, w1, b1, w2p, b2p):
    """y2r:[32,B,81], w1:[32,81,256], w2p:[256,Apad] -> q_pad:[B,Apad] f32."""
    c_dim, b_dim, s_dim = y2r.shape
    _, _, h_dim = w1.shape
    _, a_pad = w2p.shape
    vmem_limit, _, tb_max = _tpu_config()
    tb = _pick_tile_b(b_dim, tb_max)
    grid_b = pl.cdiv(b_dim, tb)
    cost = pl.CostEstimate(
        flops=2 * b_dim * c_dim * s_dim * h_dim + 2 * b_dim * h_dim * a_pad,
        transcendentals=0,
        bytes_accessed=int(y2r.size * y2r.dtype.itemsize
                           + w1.size * w1.dtype.itemsize + b1.size * 4
                           + w2p.size * w2p.dtype.itemsize + b2p.size * 4
                           + b_dim * a_pad * 4))
    return pl.pallas_call(
        _tail_kernel,
        out_shape=jax.ShapeDtypeStruct((b_dim, a_pad), jnp.float32),
        grid=(grid_b,),
        in_specs=[
            pl.BlockSpec((c_dim, tb, s_dim), lambda i: (0, i, 0)),
            pl.BlockSpec((c_dim, s_dim, h_dim), lambda i: (0, 0, 0)),
            pl.BlockSpec((1, h_dim), lambda i: (0, 0)),
            pl.BlockSpec((h_dim, a_pad), lambda i: (0, 0)),
            pl.BlockSpec((1, a_pad), lambda i: (0, 0)),
        ],
        out_specs=pl.BlockSpec((tb, a_pad), lambda i: (i, 0)),
        compiler_params=pltpu.CompilerParams(
            dimension_semantics=("parallel",),
            vmem_limit_bytes=vmem_limit),
        cost_estimate=cost,
    )(y2r, w1, b1, w2p, b2p)


# ----------------------------------------------------------------------------
# XLA-side im2col producing patches^T directly (feature order (C,kh,kw) matches
# the flattened PyTorch weight [O, C*kh*kw]; column order (B, oh, ow)).
# ----------------------------------------------------------------------------
def _im2col_t(x_cbhw, kh, kw, stride, out_dtype):
    c, b, h, w = x_cbhw.shape
    oh = (h - kh) // stride + 1
    ow = (w - kw) // stride + 1
    cols = []
    for i in range(kh):
        for j in range(kw):
            cols.append(x_cbhw[:, :,
                               i:i + stride * (oh - 1) + 1:stride,
                               j:j + stride * (ow - 1) + 1:stride])
    cols = jnp.stack(cols, axis=1)                        # [C, kh*kw, B, oh, ow]
    return cols.reshape(c * kh * kw, b * oh * ow).astype(out_dtype), oh, ow


# ----------------------------------------------------------------------------
# Parameters (stored in the layouts the kernels consume)
# ----------------------------------------------------------------------------
def init_params(key, num_actions, dtype=jnp.float32):
    ks = jax.random.split(key, 8)

    def u(k, shape, fan_in):
        bound = 1.0 / float(fan_in) ** 0.5
        return jax.random.uniform(k, shape, jnp.float32, -bound, bound)

    a_pad = 128 * max(1, pl.cdiv(num_actions, 128))
    out_w = jnp.zeros((256, a_pad), jnp.float32).at[:, :num_actions].set(
        u(ks[6], (256, num_actions), 256))
    out_b = jnp.zeros((1, a_pad), jnp.float32).at[:, :num_actions].set(
        u(ks[7], (1, num_actions), 256))
    return {
        "conv1_w": u(ks[0], (16, 4 * 8 * 8), 4 * 8 * 8).astype(dtype),   # [O, C*kh*kw]
        "conv1_b": u(ks[1], (16, 1), 4 * 8 * 8),                         # f32
        "conv2_w": u(ks[2], (32, 16 * 4 * 4), 16 * 4 * 4).astype(dtype),
        "conv2_b": u(ks[3], (32, 1), 16 * 4 * 4),
        "dense1_w": u(ks[4], (32, 81, 256), 32 * 9 * 9).astype(dtype),   # torch W.T reshaped
        "dense1_b": u(ks[5], (1, 256), 32 * 9 * 9),
        "out_w": out_w.astype(dtype),                                    # [256, 128] padded
        "out_b": out_b,                                                  # f32, padded
    }


def estimator_forward(params, x, num_actions):
    """x: [B, 4, 84, 84] (NCHW) -> Q-values [B, num_actions] (f32)."""
    b = x.shape[0]
    cdt = params["conv1_w"].dtype
    xc = jnp.transpose(x, (1, 0, 2, 3))                                  # [C, B, H, W]
    # conv_1: 4->16, k=8, s=4, ReLU   (lane-dense [16, B*400])
    p1, oh1, ow1 = _im2col_t(xc, 8, 8, 4, cdt)
    y1 = conv_mm(params["conv1_w"], p1, params["conv1_b"], out_dtype=cdt)
    # conv_2: 16->32, k=4, s=2, ReLU  (lane-dense [32, B*81])
    p2, oh2, ow2 = _im2col_t(y1.reshape(16, b, oh1, ow1), 4, 4, 2, cdt)
    y2 = conv_mm(params["conv2_w"], p2, params["conv2_b"], out_dtype=cdt)
    # fused dense_1 + ReLU + output head; y2 handed over as [32, B, 81] (free reshape)
    q_pad = dense_tail(y2.reshape(32, b, oh2 * ow2),
                       params["dense1_w"], params["dense1_b"],
                       params["out_w"], params["out_b"])
    return q_pad[:, :num_actions]


if __name__ == "__main__":
    num_actions = 4
    key = jax.random.PRNGKey(0)
    pkey, xkey = jax.random.split(key)
    params = init_params(pkey, num_actions,
                         dtype=jnp.bfloat16 if USE_BF16 else jnp.float32)
    # batch=2, channels=4; spatial must be 84 so the flatten is 32*9*9
    # (architecture constraint of the original DQN Estimator).
    x = jax.random.normal(xkey, (2, 4, 84, 84), jnp.float32)
    fwd = jax.jit(estimator_forward, static_argnums=(2,))
    out = fwd(params, x, num_actions)
    out = jax.block_until_ready(out)
    assert out.shape == (2, num_actions)
    assert out.dtype == jnp.float32
    print("KERNEL_OK")
</pallas_src>

<mosaic_0001>
module attributes {stable_mosaic.version = 11 : i64} {
  func.func @_conv_kernel(%arg0: i32, %arg1: memref<16x256xbf16, #tpu.memory_space<vmem>>, %arg2: memref<256x512xbf16, #tpu.memory_space<vmem>>, %arg3: memref<16x1xf32, #tpu.memory_space<vmem>>, %arg4: memref<16x512xbf16, #tpu.memory_space<vmem>>) attributes {dimension_semantics = [#tpu.dimension_semantics<parallel>], iteration_bounds = array<i64: 2>, scalar_prefetch = 0 : i64, scratch_operands = 0 : i64, tpu.core_type = #tpu.core_type<tc>, window_params = [{pipeline_mode = #tpu.pipeline_mode<synchronous>, transform_indices = @transform_0, window_bounds = array<i64: 16, 256>}, {transform_indices = @transform_1, window_bounds = array<i64: 256, 512>}, {pipeline_mode = #tpu.pipeline_mode<synchronous>, transform_indices = @transform_2, window_bounds = array<i64: 16, 1>}, {transform_indices = @transform_3, window_bounds = array<i64: 16, 512>}]} {
    %c0 = arith.constant 0 : index
    %c0_0 = arith.constant 0 : index
    %0 = vector.load %arg1[%c0, %c0_0] : memref<16x256xbf16, #tpu.memory_space<vmem>>, vector<16x256xbf16>
    %c0_1 = arith.constant 0 : index
    %c0_2 = arith.constant 0 : index
    %1 = vector.load %arg2[%c0_1, %c0_2] : memref<256x512xbf16, #tpu.memory_space<vmem>>, vector<256x512xbf16>
    %cst = arith.constant dense<0.000000e+00> : vector<16x512xf32>
    %2 = tpu.matmul %0, %1, %cst {dimension_numbers = #tpu.dot_dimension_numbers<[1], [0], [0], [1], [0, 0, 1, 1], [], []>} : vector<16x256xbf16>, vector<256x512xbf16>, vector<16x512xf32> -> vector<16x512xf32>
    %c0_3 = arith.constant 0 : index
    %c0_4 = arith.constant 0 : index
    %3 = vector.load %arg3[%c0_3, %c0_4] : memref<16x1xf32, #tpu.memory_space<vmem>>, vector<16x1xf32>
    %4 = vector.broadcast %3 : vector<16x1xf32> to vector<16x512xf32>
    %5 = arith.addf %2, %4 : vector<16x512xf32>
    %cst_5 = arith.constant 0.000000e+00 : f32
    %6 = vector.broadcast %cst_5 : f32 to vector<16x512xf32>
    %7 = arith.maximumf %5, %6 : vector<16x512xf32>
    %8 = arith.truncf %7 : vector<16x512xf32> to vector<16x512xbf16>
    %c0_6 = arith.constant 0 : index
    %c0_7 = arith.constant 0 : index
    %9 = vector.load %arg4[%c0_6, %c0_7] : memref<16x512xbf16, #tpu.memory_space<vmem>>, vector<16x512xbf16>
    tpu.vector_store %arg4[%c0_6, %c0_7], %8 {strides = array<i32>} : memref<16x512xbf16, #tpu.memory_space<vmem>>, vector<16x512xbf16>,
    return
  }
  func.func @transform_0(%arg0: i32) -> (i32, i32) {
    %c0_i32 = arith.constant 0 : i32
    %c0_i32_0 = arith.constant 0 : i32
    %c0_i32_1 = arith.constant 0 : i32
    return %c0_i32, %c0_i32_0 : i32, i32
  }
  func.func @transform_1(%arg0: i32) -> (i32, i32) {
    %c0_i32 = arith.constant 0 : i32
    %c0_i32_0 = arith.constant 0 : i32
    return %c0_i32, %arg0 : i32, i32
  }
  func.func @transform_2(%arg0: i32) -> (i32, i32) {
    %c0_i32 = arith.constant 0 : i32
    %c0_i32_0 = arith.constant 0 : i32
    %c0_i32_1 = arith.constant 0 : i32
    return %c0_i32, %c0_i32_0 : i32, i32
  }
  func.func @transform_3(%arg0: i32) -> (i32, i32) {
    %c0_i32 = arith.constant 0 : i32
    %c0_i32_0 = arith.constant 0 : i32
    return %c0_i32, %arg0 : i32, i32
  }
}

module attributes {stable_mosaic.version = 11 : i64} {
  func.func @_conv_kernel(%arg0: i32, %arg1: memref<32x256xbf16, #tpu.memory_space<vmem>>, %arg2: memref<256x128xbf16, #tpu.memory_space<vmem>>, %arg3: memref<32x1xf32, #tpu.memory_space<vmem>>, %arg4: memref<32x128xbf16, #tpu.memory_space<vmem>>) attributes {dimension_semantics = [#tpu.dimension_semantics<parallel>], iteration_bounds = array<i64: 2>, scalar_prefetch = 0 : i64, scratch_operands = 0 : i64, tpu.core_type = #tpu.core_type<tc>, window_params = [{pipeline_mode = #tpu.pipeline_mode<synchronous>, transform_indices = @transform_0, window_bounds = array<i64: 32, 256>}, {transform_indices = @transform_1, window_bounds = array<i64: 256, 128>}, {pipeline_mode = #tpu.pipeline_mode<synchronous>, transform_indices = @transform_2, window_bounds = array<i64: 32, 1>}, {transform_indices = @transform_3, window_bounds = array<i64: 32, 128>}]} {
    %c0 = arith.constant 0 : index
    %c0_0 = arith.constant 0 : index
    %0 = vector.load %arg1[%c0, %c0_0] : memref<32x256xbf16, #tpu.memory_space<vmem>>, vector<32x256xbf16>
    %c0_1 = arith.constant 0 : index
    %c0_2 = arith.constant 0 : index
    %1 = vector.load %arg2[%c0_1, %c0_2] : memref<256x128xbf16, #tpu.memory_space<vmem>>, vector<256x128xbf16>
    %cst = arith.constant dense<0.000000e+00> : vector<32x128xf32>
    %2 = tpu.matmul %0, %1, %cst {dimension_numbers = #tpu.dot_dimension_numbers<[1], [0], [0], [1], [0, 0, 1, 1], [], []>} : vector<32x256xbf16>, vector<256x128xbf16>, vector<32x128xf32> -> vector<32x128xf32>
    %c0_3 = arith.constant 0 : index
    %c0_4 = arith.constant 0 : index
    %3 = vector.load %arg3[%c0_3, %c0_4] : memref<32x1xf32, #tpu.memory_space<vmem>>, vector<32x1xf32>
    %4 = vector.broadcast %3 : vector<32x1xf32> to vector<32x128xf32>
    %5 = arith.addf %2, %4 : vector<32x128xf32>
    %cst_5 = arith.constant 0.000000e+00 : f32
    %6 = vector.broadcast %cst_5 : f32 to vector<32x128xf32>
    %7 = arith.maximumf %5, %6 : vector<32x128xf32>
    %8 = arith.truncf %7 : vector<32x128xf32> to vector<32x128xbf16>
    %c0_6 = arith.constant 0 : index
    %c0_7 = arith.constant 0 : index
    %9 = vector.load %arg4[%c0_6, %c0_7] : memref<32x128xbf16, #tpu.memory_space<vmem>>, vector<32x128xbf16>
    tpu.vector_store %arg4[%c0_6, %c0_7], %8 {strides = array<i32>} : memref<32x128xbf16, #tpu.memory_space<vmem>>, vector<32x128xbf16>,
    return
  }
  func.func @transform_0(%arg0: i32) -> (i32, i32) {
    %c0_i32 = arith.constant 0 : i32
    %c0_i32_0 = arith.constant 0 : i32
    %c0_i32_1 = arith.constant 0 : i32
    return %c0_i32, %c0_i32_0 : i32, i32
  }
  func.func @transform_1(%arg0: i32) -> (i32, i32) {
    %c0_i32 = arith.constant 0 : i32
    %c0_i32_0 = arith.constant 0 : i32
    return %c0_i32, %arg0 : i32, i32
  }
  func.func @transform_2(%arg0: i32) -> (i32, i32) {
    %c0_i32 = arith.constant 0 : i32
    %c0_i32_0 = arith.constant 0 : i32
    %c0_i32_1 = arith.constant 0 : i32
    return %c0_i32, %c0_i32_0 : i32, i32
  }
  func.func @transform_3(%arg0: i32) -> (i32, i32) {
    %c0_i32 = arith.constant 0 : i32
    %c0_i32_0 = arith.constant 0 : i32
    return %c0_i32, %arg0 : i32, i32
  }
}

module attributes {stable_mosaic.version = 11 : i64} {
  func.func @_tail_kernel(%arg0: i32, %arg1: memref<32x2x81xbf16, #tpu.memory_space<vmem>>, %arg2: memref<32x81x256xbf16, #tpu.memory_space<vmem>>, %arg3: memref<1x256xf32, #tpu.memory_space<vmem>>, %arg4: memref<256x128xbf16, #tpu.memory_space<vmem>>, %arg5: memref<1x128xf32, #tpu.memory_space<vmem>>, %arg6: memref<2x128xf32, #tpu.memory_space<vmem>>) attributes {dimension_semantics = [#tpu.dimension_semantics<parallel>], iteration_bounds = array<i64: 1>, scalar_prefetch = 0 : i64, scratch_operands = 0 : i64, tpu.core_type = #tpu.core_type<tc>, window_params = [{transform_indices = @transform_0, window_bounds = array<i64: 32, 2, 81>}, {pipeline_mode = #tpu.pipeline_mode<synchronous>, transform_indices = @transform_1, window_bounds = array<i64: 32, 81, 256>}, {pipeline_mode = #tpu.pipeline_mode<synchronous>, transform_indices = @transform_2, window_bounds = array<i64: 1, 256>}, {pipeline_mode = #tpu.pipeline_mode<synchronous>, transform_indices = @transform_3, window_bounds = array<i64: 256, 128>}, {pipeline_mode = #tpu.pipeline_mode<synchronous>, transform_indices = @transform_4, window_bounds = array<i64: 1, 128>}, {transform_indices = @transform_5, window_bounds = array<i64: 2, 128>}]} {
    %cst = arith.constant 0.000000e+00 : f32
    %0 = vector.broadcast %cst : f32 to vector<2x256xf32>
    %c0 = arith.constant 0 : index
    %c0_0 = arith.constant 0 : index
    %c0_1 = arith.constant 0 : index
    %1 = vector.load %arg1[%c0, %c0_0, %c0_1] : memref<32x2x81xbf16, #tpu.memory_space<vmem>>, vector<1x2x81xbf16>
    %2 = vector.shape_cast %1 : vector<1x2x81xbf16> to vector<2x81xbf16>
    %c0_2 = arith.constant 0 : index
    %c0_3 = arith.constant 0 : index
    %c0_4 = arith.constant 0 : index
    %3 = vector.load %arg2[%c0_2, %c0_3, %c0_4] : memref<32x81x256xbf16, #tpu.memory_space<vmem>>, vector<1x81x256xbf16>
    %4 = vector.shape_cast %3 : vector<1x81x256xbf16> to vector<81x256xbf16>
    %cst_5 = arith.constant dense<0.000000e+00> : vector<2x256xf32>
    %5 = tpu.matmul %2, %4, %cst_5 {dimension_numbers = #tpu.dot_dimension_numbers<[1], [0], [0], [1], [0, 0, 1, 1], [], []>} : vector<2x81xbf16>, vector<81x256xbf16>, vector<2x256xf32> -> vector<2x256xf32>
    %6 = arith.addf %0, %5 : vector<2x256xf32>
    %c1 = arith.constant 1 : index
    %c0_6 = arith.constant 0 : index
    %c0_7 = arith.constant 0 : index
    %7 = vector.load %arg1[%c1, %c0_6, %c0_7] : memref<32x2x81xbf16, #tpu.memory_space<vmem>>, vector<1x2x81xbf16>
    %8 = vector.shape_cast %7 : vector<1x2x81xbf16> to vector<2x81xbf16>
    %c1_8 = arith.constant 1 : index
    %c0_9 = arith.constant 0 : index
    %c0_10 = arith.constant 0 : index
    %9 = vector.load %arg2[%c1_8, %c0_9, %c0_10] : memref<32x81x256xbf16, #tpu.memory_space<vmem>>, vector<1x81x256xbf16>
    %10 = vector.shape_cast %9 : vector<1x81x256xbf16> to vector<81x256xbf16>
    %cst_11 = arith.constant dense<0.000000e+00> : vector<2x256xf32>
    %11 = tpu.matmul %8, %10, %cst_11 {dimension_numbers = #tpu.dot_dimension_numbers<[1], [0], [0], [1], [0, 0, 1, 1], [], []>} : vector<2x81xbf16>, vector<81x256xbf16>, vector<2x256xf32> -> vector<2x256xf32>
    %12 = arith.addf %6, %11 : vector<2x256xf32>
    %c2 = arith.constant 2 : index
    %c0_12 = arith.constant 0 : index
    %c0_13 = arith.constant 0 : index
    %13 = vector.load %arg1[%c2, %c0_12, %c0_13] : memref<32x2x81xbf16, #tpu.memory_space<vmem>>, vector<1x2x81xbf16>
    %14 = vector.shape_cast %13 : vector<1x2x81xbf16> to vector<2x81xbf16>
    %c2_14 = arith.constant 2 : index
    %c0_15 = arith.constant 0 : index
    %c0_16 = arith.constant 0 : index
    %15 = vector.load %arg2[%c2_14, %c0_15, %c0_16] : memref<32x81x256xbf16, #tpu.memory_space<vmem>>, vector<1x81x256xbf16>
    %16 = vector.shape_cast %15 : vector<1x81x256xbf16> to vector<81x256xbf16>
    %cst_17 = arith.constant dense<0.000000e+00> : vector<2x256xf32>
    %17 = tpu.matmul %14, %16, %cst_17 {dimension_numbers = #tpu.dot_dimension_numbers<[1], [0], [0], [1], [0, 0, 1, 1], [], []>} : vector<2x81xbf16>, vector<81x256xbf16>, vector<2x256xf32> -> vector<2x256xf32>
    %18 = arith.addf %12, %17 : vector<2x256xf32>
    %c3 = arith.constant 3 : index
    %c0_18 = arith.constant 0 : index
    %c0_19 = arith.constant 0 : index
    %19 = vector.load %arg1[%c3, %c0_18, %c0_19] : memref<32x2x81xbf16, #tpu.memory_space<vmem>>, vector<1x2x81xbf16>
    %20 = vector.shape_cast %19 : vector<1x2x81xbf16> to vector<2x81xbf16>
    %c3_20 = arith.constant 3 : index
    %c0_21 = arith.constant 0 : index
    %c0_22 = arith.constant 0 : index
    %21 = vector.load %arg2[%c3_20, %c0_21, %c0_22] : memref<32x81x256xbf16, #tpu.memory_space<vmem>>, vector<1x81x256xbf16>
    %22 = vector.shape_cast %21 : vector<1x81x256xbf16> to vector<81x256xbf16>
    %cst_23 = arith.constant dense<0.000000e+00> : vector<2x256xf32>
    %23 = tpu.matmul %20, %22, %cst_23 {dimension_numbers = #tpu.dot_dimension_numbers<[1], [0], [0], [1], [0, 0, 1, 1], [], []>} : vector<2x81xbf16>, vector<81x256xbf16>, vector<2x256xf32> -> vector<2x256xf32>
    %24 = arith.addf %18, %23 : vector<2x256xf32>
    %c4 = arith.constant 4 : index
    %c0_24 = arith.constant 0 : index
    %c0_25 = arith.constant 0 : index
    %25 = vector.load %arg1[%c4, %c0_24, %c0_25] : memref<32x2x81xbf16, #tpu.memory_space<vmem>>, vector<1x2x81xbf16>
    %26 = vector.shape_cast %25 : vector<1x2x81xbf16> to vector<2x81xbf16>
    %c4_26 = arith.constant 4 : index
    %c0_27 = arith.constant 0 : index
    %c0_28 = arith.constant 0 : index
    %27 = vector.load %arg2[%c4_26, %c0_27, %c0_28] : memref<32x81x256xbf16, #tpu.memory_space<vmem>>, vector<1x81x256xbf16>
    %28 = vector.shape_cast %27 : vector<1x81x256xbf16> to vector<81x256xbf16>
    %cst_29 = arith.constant dense<0.000000e+00> : vector<2x256xf32>
    %29 = tpu.matmul %26, %28, %cst_29 {dimension_numbers = #tpu.dot_dimension_numbers<[1], [0], [0], [1], [0, 0, 1, 1], [], []>} : vector<2x81xbf16>, vector<81x256xbf16>, vector<2x256xf32> -> vector<2x256xf32>
    %30 = arith.addf %24, %29 : vector<2x256xf32>
    %c5 = arith.constant 5 : index
    %c0_30 = arith.constant 0 : index
    %c0_31 = arith.constant 0 : index
    %31 = vector.load %arg1[%c5, %c0_30, %c0_31] : memref<32x2x81xbf16, #tpu.memory_space<vmem>>, vector<1x2x81xbf16>
    %32 = vector.shape_cast %31 : vector<1x2x81xbf16> to vector<2x81xbf16>
    %c5_32 = arith.constant 5 : index
    %c0_33 = arith.constant 0 : index
    %c0_34 = arith.constant 0 : index
    %33 = vector.load %arg2[%c5_32, %c0_33, %c0_34] : memref<32x81x256xbf16, #tpu.memory_space<vmem>>, vector<1x81x256xbf16>
    %34 = vector.shape_cast %33 : vector<1x81x256xbf16> to vector<81x256xbf16>
    %cst_35 = arith.constant dense<0.000000e+00> : vector<2x256xf32>
    %35 = tpu.matmul %32, %34, %cst_35 {dimension_numbers = #tpu.dot_dimension_numbers<[1], [0], [0], [1], [0, 0, 1, 1], [], []>} : vector<2x81xbf16>, vector<81x256xbf16>, vector<2x256xf32> -> vector<2x256xf32>
    %36 = arith.addf %30, %35 : vector<2x256xf32>
    %c6 = arith.constant 6 : index
    %c0_36 = arith.constant 0 : index
    %c0_37 = arith.constant 0 : index
    %37 = vector.load %arg1[%c6, %c0_36, %c0_37] : memref<32x2x81xbf16, #tpu.memory_space<vmem>>, vector<1x2x81xbf16>
    %38 = vector.shape_cast %37 : vector<1x2x81xbf16> to vector<2x81xbf16>
    %c6_38 = arith.constant 6 : index
    %c0_39 = arith.constant 0 : index
    %c0_40 = arith.constant 0 : index
    %39 = vector.load %arg2[%c6_38, %c0_39, %c0_40] : memref<32x81x256xbf16, #tpu.memory_space<vmem>>, vector<1x81x256xbf16>
    %40 = vector.shape_cast %39 : vector<1x81x256xbf16> to vector<81x256xbf16>
    %cst_41 = arith.constant dense<0.000000e+00> : vector<2x256xf32>
    %41 = tpu.matmul %38, %40, %cst_41 {dimension_numbers = #tpu.dot_dimension_numbers<[1], [0], [0], [1], [0, 0, 1, 1], [], []>} : vector<2x81xbf16>, vector<81x256xbf16>, vector<2x256xf32> -> vector<2x256xf32>
    %42 = arith.addf %36, %41 : vector<2x256xf32>
    %c7 = arith.constant 7 : index
    %c0_42 = arith.constant 0 : index
    %c0_43 = arith.constant 0 : index
    %43 = vector.load %arg1[%c7, %c0_42, %c0_43] : memref<32x2x81xbf16, #tpu.memory_space<vmem>>, vector<1x2x81xbf16>
    %44 = vector.shape_cast %43 : vector<1x2x81xbf16> to vector<2x81xbf16>
    %c7_44 = arith.constant 7 : index
    %c0_45 = arith.constant 0 : index
    %c0_46 = arith.constant 0 : index
    %45 = vector.load %arg2[%c7_44, %c0_45, %c0_46] : memref<32x81x256xbf16, #tpu.memory_space<vmem>>, vector<1x81x256xbf16>
    %46 = vector.shape_cast %45 : vector<1x81x256xbf16> to vector<81x256xbf16>
    %cst_47 = arith.constant dense<0.000000e+00> : vector<2x256xf32>
    %47 = tpu.matmul %44, %46, %cst_47 {dimension_numbers = #tpu.dot_dimension_numbers<[1], [0], [0], [1], [0, 0, 1, 1], [], []>} : vector<2x81xbf16>, vector<81x256xbf16>, vector<2x256xf32> -> vector<2x256xf32>
    %48 = arith.addf %42, %47 : vector<2x256xf32>
    %c8 = arith.constant 8 : index
    %c0_48 = arith.constant 0 : index
    %c0_49 = arith.constant 0 : index
    %49 = vector.load %arg1[%c8, %c0_48, %c0_49] : memref<32x2x81xbf16, #tpu.memory_space<vmem>>, vector<1x2x81xbf16>
    %50 = vector.shape_cast %49 : vector<1x2x81xbf16> to vector<2x81xbf16>
    %c8_50 = arith.constant 8 : index
    %c0_51 = arith.constant 0 : index
    %c0_52 = arith.constant 0 : index
    %51 = vector.load %arg2[%c8_50, %c0_51, %c0_52] : memref<32x81x256xbf16, #tpu.memory_space<vmem>>, vector<1x81x256xbf16>
    %52 = vector.shape_cast %51 : vector<1x81x256xbf16> to vector<81x256xbf16>
    %cst_53 = arith.constant dense<0.000000e+00> : vector<2x256xf32>
    %53 = tpu.matmul %50, %52, %cst_53 {dimension_numbers = #tpu.dot_dimension_numbers<[1], [0], [0], [1], [0, 0, 1, 1], [], []>} : vector<2x81xbf16>, vector<81x256xbf16>, vector<2x256xf32> -> vector<2x256xf32>
    %54 = arith.addf %48, %53 : vector<2x256xf32>
    %c9 = arith.constant 9 : index
    %c0_54 = arith.constant 0 : index
    %c0_55 = arith.constant 0 : index
    %55 = vector.load %arg1[%c9, %c0_54, %c0_55] : memref<32x2x81xbf16, #tpu.memory_space<vmem>>, vector<1x2x81xbf16>
    %56 = vector.shape_cast %55 : vector<1x2x81xbf16> to vector<2x81xbf16>
    %c9_56 = arith.constant 9 : index
    %c0_57 = arith.constant 0 : index
    %c0_58 = arith.constant 0 : index
    %57 = vector.load %arg2[%c9_56, %c0_57, %c0_58] : memref<32x81x256xbf16, #tpu.memory_space<vmem>>, vector<1x81x256xbf16>
    %58 = vector.shape_cast %57 : vector<1x81x256xbf16> to vector<81x256xbf16>
    %cst_59 = arith.constant dense<0.000000e+00> : vector<2x256xf32>
    %59 = tpu.matmul %56, %58, %cst_59 {dimension_numbers = #tpu.dot_dimension_numbers<[1], [0], [0], [1], [0, 0, 1, 1], [], []>} : vector<2x81xbf16>, vector<81x256xbf16>, vector<2x256xf32> -> vector<2x256xf32>
    %60 = arith.addf %54, %59 : vector<2x256xf32>
    %c10 = arith.constant 10 : index
    %c0_60 = arith.constant 0 : index
    %c0_61 = arith.constant 0 : index
    %61 = vector.load %arg1[%c10, %c0_60, %c0_61] : memref<32x2x81xbf16, #tpu.memory_space<vmem>>, vector<1x2x81xbf16>
    %62 = vector.shape_cast %61 : vector<1x2x81xbf16> to vector<2x81xbf16>
    %c10_62 = arith.constant 10 : index
    %c0_63 = arith.constant 0 : index
    %c0_64 = arith.constant 0 : index
    %63 = vector.load %arg2[%c10_62, %c0_63, %c0_64] : memref<32x81x256xbf16, #tpu.memory_space<vmem>>, vector<1x81x256xbf16>
    %64 = vector.shape_cast %63 : vector<1x81x256xbf16> to vector<81x256xbf16>
    %cst_65 = arith.constant dense<0.000000e+00> : vector<2x256xf32>
    %65 = tpu.matmul %62, %64, %cst_65 {dimension_numbers = #tpu.dot_dimension_numbers<[1], [0], [0], [1], [0, 0, 1, 1], [], []>} : vector<2x81xbf16>, vector<81x256xbf16>, vector<2x256xf32> -> vector<2x256xf32>
    %66 = arith.addf %60, %65 : vector<2x256xf32>
    %c11 = arith.constant 11 : index
    %c0_66 = arith.constant 0 : index
    %c0_67 = arith.constant 0 : index
    %67 = vector.load %arg1[%c11, %c0_66, %c0_67] : memref<32x2x81xbf16, #tpu.memory_space<vmem>>, vector<1x2x81xbf16>
    %68 = vector.shape_cast %67 : vector<1x2x81xbf16> to vector<2x81xbf16>
    %c11_68 = arith.constant 11 : index
    %c0_69 = arith.constant 0 : index
    %c0_70 = arith.constant 0 : index
    %69 = vector.load %arg2[%c11_68, %c0_69, %c0_70] : memref<32x81x256xbf16, #tpu.memory_space<vmem>>, vector<1x81x256xbf16>
    %70 = vector.shape_cast %69 : vector<1x81x256xbf16> to vector<81x256xbf16>
    %cst_71 = arith.constant dense<0.000000e+00> : vector<2x256xf32>
    %71 = tpu.matmul %68, %70, %cst_71 {dimension_numbers = #tpu.dot_dimension_numbers<[1], [0], [0], [1], [0, 0, 1, 1], [], []>} : vector<2x81xbf16>, vector<81x256xbf16>, vector<2x256xf32> -> vector<2x256xf32>
    %72 = arith.addf %66, %71 : vector<2x256xf32>
    %c12 = arith.constant 12 : index
    %c0_72 = arith.constant 0 : index
    %c0_73 = arith.constant 0 : index
    %73 = vector.load %arg1[%c12, %c0_72, %c0_73] : memref<32x2x81xbf16, #tpu.memory_space<vmem>>, vector<1x2x81xbf16>
    %74 = vector.shape_cast %73 : vector<1x2x81xbf16> to vector<2x81xbf16>
    %c12_74 = arith.constant 12 : index
    %c0_75 = arith.constant 0 : index
    %c0_76 = arith.constant 0 : index
    %75 = vector.load %arg2[%c12_74, %c0_75, %c0_76] : memref<32x81x256xbf16, #tpu.memory_space<vmem>>, vector<1x81x256xbf16>
    %76 = vector.shape_cast %75 : vector<1x81x256xbf16> to vector<81x256xbf16>
    %cst_77 = arith.constant dense<0.000000e+00> : vector<2x256xf32>
    %77 = tpu.matmul %74, %76, %cst_77 {dimension_numbers = #tpu.dot_dimension_numbers<[1], [0], [0], [1], [0, 0, 1, 1], [], []>} : vector<2x81xbf16>, vector<81x256xbf16>, vector<2x256xf32> -> vector<2x256xf32>
    %78 = arith.addf %72, %77 : vector<2x256xf32>
    %c13 = arith.constant 13 : index
    %c0_78 = arith.constant 0 : index
    %c0_79 = arith.constant 0 : index
    %79 = vector.load %arg1[%c13, %c0_78, %c0_79] : memref<32x2x81xbf16, #tpu.memory_space<vmem>>, vector<1x2x81xbf16>
    %80 = vector.shape_cast %79 : vector<1x2x81xbf16> to vector<2x81xbf16>
    %c13_80 = arith.constant 13 : index
    %c0_81 = arith.constant 0 : index
    %c0_82 = arith.constant 0 : index
    %81 = vector.load %arg2[%c13_80, %c0_81, %c0_82] : memref<32x81x256xbf16, #tpu.memory_space<vmem>>, vector<1x81x256xbf16>
    %82 = vector.shape_cast %81 : vector<1x81x256xbf16> to vector<81x256xbf16>
    %cst_83 = arith.constant dense<0.000000e+00> : vector<2x256xf32>
    %83 = tpu.matmul %80, %82, %cst_83 {dimension_numbers = #tpu.dot_dimension_numbers<[1], [0], [0], [1], [0, 0, 1, 1], [], []>} : vector<2x81xbf16>, vector<81x256xbf16>, vector<2x256xf32> -> vector<2x256xf32>
    %84 = arith.addf %78, %83 : vector<2x256xf32>
    %c14 = arith.constant 14 : index
    %c0_84 = arith.constant 0 : index
    %c0_85 = arith.constant 0 : index
    %85 = vector.load %arg1[%c14, %c0_84, %c0_85] : memref<32x2x81xbf16, #tpu.memory_space<vmem>>, vector<1x2x81xbf16>
    %86 = vector.shape_cast %85 : vector<1x2x81xbf16> to vector<2x81xbf16>
    %c14_86 = arith.constant 14 : index
    %c0_87 = arith.constant 0 : index
    %c0_88 = arith.constant 0 : index
    %87 = vector.load %arg2[%c14_86, %c0_87, %c0_88] : memref<32x81x256xbf16, #tpu.memory_space<vmem>>, vector<1x81x256xbf16>
    %88 = vector.shape_cast %87 : vector<1x81x256xbf16> to vector<81x256xbf16>
    %cst_89 = arith.constant dense<0.000000e+00> : vector<2x256xf32>
    %89 = tpu.matmul %86, %88, %cst_89 {dimension_numbers = #tpu.dot_dimension_numbers<[1], [0], [0], [1], [0, 0, 1, 1], [], []>} : vector<2x81xbf16>, vector<81x256xbf16>, vector<2x256xf32> -> vector<2x256xf32>
    %90 = arith.addf %84, %89 : vector<2x256xf32>
    %c15 = arith.constant 15 : index
    %c0_90 = arith.constant 0 : index
    %c0_91 = arith.constant 0 : index
    %91 = vector.load %arg1[%c15, %c0_90, %c0_91] : memref<32x2x81xbf16, #tpu.memory_space<vmem>>, vector<1x2x81xbf16>
    %92 = vector.shape_cast %91 : vector<1x2x81xbf16> to vector<2x81xbf16>
    %c15_92 = arith.constant 15 : index
    %c0_93 = arith.constant 0 : index
    %c0_94 = arith.constant 0 : index
    %93 = vector.load %arg2[%c15_92, %c0_93, %c0_94] : memref<32x81x256xbf16, #tpu.memory_space<vmem>>, vector<1x81x256xbf16>
    %94 = vector.shape_cast %93 : vector<1x81x256xbf16> to vector<81x256xbf16>
    %cst_95 = arith.constant dense<0.000000e+00> : vector<2x256xf32>
    %95 = tpu.matmul %92, %94, %cst_95 {dimension_numbers = #tpu.dot_dimension_numbers<[1], [0], [0], [1], [0, 0, 1, 1], [], []>} : vector<2x81xbf16>, vector<81x256xbf16>, vector<2x256xf32> -> vector<2x256xf32>
    %96 = arith.addf %90, %95 : vector<2x256xf32>
    %c16 = arith.constant 16 : index
    %c0_96 = arith.constant 0 : index
    %c0_97 = arith.constant 0 : index
    %97 = vector.load %arg1[%c16, %c0_96, %c0_97] : memref<32x2x81xbf16, #tpu.memory_space<vmem>>, vector<1x2x81xbf16>
    %98 = vector.shape_cast %97 : vector<1x2x81xbf16> to vector<2x81xbf16>
    %c16_98 = arith.constant 16 : index
    %c0_99 = arith.constant 0 : index
    %c0_100 = arith.constant 0 : index
    %99 = vector.load %arg2[%c16_98, %c0_99, %c0_100] : memref<32x81x256xbf16, #tpu.memory_space<vmem>>, vector<1x81x256xbf16>
    %100 = vector.shape_cast %99 : vector<1x81x256xbf16> to vector<81x256xbf16>
    %cst_101 = arith.constant dense<0.000000e+00> : vector<2x256xf32>
    %101 = tpu.matmul %98, %100, %cst_101 {dimension_numbers = #tpu.dot_dimension_numbers<[1], [0], [0], [1], [0, 0, 1, 1], [], []>} : vector<2x81xbf16>, vector<81x256xbf16>, vector<2x256xf32> -> vector<2x256xf32>
    %102 = arith.addf %96, %101 : vector<2x256xf32>
    %c17 = arith.constant 17 : index
    %c0_102 = arith.constant 0 : index
    %c0_103 = arith.constant 0 : index
    %103 = vector.load %arg1[%c17, %c0_102, %c0_103] : memref<32x2x81xbf16, #tpu.memory_space<vmem>>, vector<1x2x81xbf16>
    %104 = vector.shape_cast %103 : vector<1x2x81xbf16> to vector<2x81xbf16>
    %c17_104 = arith.constant 17 : index
    %c0_105 = arith.constant 0 : index
    %c0_106 = arith.constant 0 : index
    %105 = vector.load %arg2[%c17_104, %c0_105, %c0_106] : memref<32x81x256xbf16, #tpu.memory_space<vmem>>, vector<1x81x256xbf16>
    %106 = vector.shape_cast %105 : vector<1x81x256xbf16> to vector<81x256xbf16>
    %cst_107 = arith.constant dense<0.000000e+00> : vector<2x256xf32>
    %107 = tpu.matmul %104, %106, %cst_107 {dimension_numbers = #tpu.dot_dimension_numbers<[1], [0], [0], [1], [0, 0, 1, 1], [], []>} : vector<2x81xbf16>, vector<81x256xbf16>, vector<2x256xf32> -> vector<2x256xf32>
    %108 = arith.addf %102, %107 : vector<2x256xf32>
    %c18 = arith.constant 18 : index
    %c0_108 = arith.constant 0 : index
    %c0_109 = arith.constant 0 : index
    %109 = vector.load %arg1[%c18, %c0_108, %c0_109] : memref<32x2x81xbf16, #tpu.memory_space<vmem>>, vector<1x2x81xbf16>
    %110 = vector.shape_cast %109 : vector<1x2x81xbf16> to vector<2x81xbf16>
    %c18_110 = arith.constant 18 : index
    %c0_111 = arith.constant 0 : index
    %c0_112 = arith.constant 0 : index
    %111 = vector.load %arg2[%c18_110, %c0_111, %c0_112] : memref<32x81x256xbf16, #tpu.memory_space<vmem>>, vector<1x81x256xbf16>
    %112 = vector.shape_cast %111 : vector<1x81x256xbf16> to vector<81x256xbf16>
    %cst_113 = arith.constant dense<0.000000e+00> : vector<2x256xf32>
    %113 = tpu.matmul %110, %112, %cst_113 {dimension_numbers = #tpu.dot_dimension_numbers<[1], [0], [0], [1], [0, 0, 1, 1], [], []>} : vector<2x81xbf16>, vector<81x256xbf16>, vector<2x256xf32> -> vector<2x256xf32>
    %114 = arith.addf %108, %113 : vector<2x256xf32>
    %c19 = arith.constant 19 : index
    %c0_114 = arith.constant 0 : index
    %c0_115 = arith.constant 0 : index
    %115 = vector.load %arg1[%c19, %c0_114, %c0_115] : memref<32x2x81xbf16, #tpu.memory_space<vmem>>, vector<1x2x81xbf16>
    %116 = vector.shape_cast %115 : vector<1x2x81xbf16> to vector<2x81xbf16>
    %c19_116 = arith.constant 19 : index
    %c0_117 = arith.constant 0 : index
    %c0_118 = arith.constant 0 : index
    %117 = vector.load %arg2[%c19_116, %c0_117, %c0_118] : memref<32x81x256xbf16, #tpu.memory_space<vmem>>, vector<1x81x256xbf16>
    %118 = vector.shape_cast %117 : vector<1x81x256xbf16> to vector<81x256xbf16>
    %cst_119 = arith.constant dense<0.000000e+00> : vector<2x256xf32>
    %119 = tpu.matmul %116, %118, %cst_119 {dimension_numbers = #tpu.dot_dimension_numbers<[1], [0], [0], [1], [0, 0, 1, 1], [], []>} : vector<2x81xbf16>, vector<81x256xbf16>, vector<2x256xf32> -> vector<2x256xf32>
    %120 = arith.addf %114, %119 : vector<2x256xf32>
    %c20 = arith.constant 20 : index
    %c0_120 = arith.constant 0 : index
    %c0_121 = arith.constant 0 : index
    %121 = vector.load %arg1[%c20, %c0_120, %c0_121] : memref<32x2x81xbf16, #tpu.memory_space<vmem>>, vector<1x2x81xbf16>
    %122 = vector.shape_cast %121 : vector<1x2x81xbf16> to vector<2x81xbf16>
    %c20_122 = arith.constant 20 : index
    %c0_123 = arith.constant 0 : index
    %c0_124 = arith.constant 0 : index
    %123 = vector.load %arg2[%c20_122, %c0_123, %c0_124] : memref<32x81x256xbf16, #tpu.memory_space<vmem>>, vector<1x81x256xbf16>
    %124 = vector.shape_cast %123 : vector<1x81x256xbf16> to vector<81x256xbf16>
    %cst_125 = arith.constant dense<0.000000e+00> : vector<2x256xf32>
    %125 = tpu.matmul %122, %124, %cst_125 {dimension_numbers = #tpu.dot_dimension_numbers<[1], [0], [0], [1], [0, 0, 1, 1], [], []>} : vector<2x81xbf16>, vector<81x256xbf16>, vector<2x256xf32> -> vector<2x256xf32>
    %126 = arith.addf %120, %125 : vector<2x256xf32>
    %c21 = arith.constant 21 : index
    %c0_126 = arith.constant 0 : index
    %c0_127 = arith.constant 0 : index
    %127 = vector.load %arg1[%c21, %c0_126, %c0_127] : memref<32x2x81xbf16, #tpu.memory_space<vmem>>, vector<1x2x81xbf16>
    %128 = vector.shape_cast %127 : vector<1x2x81xbf16> to vector<2x81xbf16>
    %c21_128 = arith.constant 21 : index
    %c0_129 = arith.constant 0 : index
    %c0_130 = arith.constant 0 : index
    %129 = vector.load %arg2[%c21_128, %c0_129, %c0_130] : memref<32x81x256xbf16, #tpu.memory_space<vmem>>, vector<1x81x256xbf16>
    %130 = vector.shape_cast %129 : vector<1x81x256xbf16> to vector<81x256xbf16>
    %cst_131 = arith.constant dense<0.000000e+00> : vector<2x256xf32>
    %131 = tpu.matmul %128, %130, %cst_131 {dimension_numbers = #tpu.dot_dimension_numbers<[1], [0], [0], [1], [0, 0, 1, 1], [], []>} : vector<2x81xbf16>, vector<81x256xbf16>, vector<2x256xf32> -> vector<2x256xf32>
    %132 = arith.addf %126, %131 : vector<2x256xf32>
    %c22 = arith.constant 22 : index
    %c0_132 = arith.constant 0 : index
    %c0_133 = arith.constant 0 : index
    %133 = vector.load %arg1[%c22, %c0_132, %c0_133] : memref<32x2x81xbf16, #tpu.memory_space<vmem>>, vector<1x2x81xbf16>
    %134 = vector.shape_cast %133 : vector<1x2x81xbf16> to vector<2x81xbf16>
    %c22_134 = arith.constant 22 : index
    %c0_135 = arith.constant 0 : index
    %c0_136 = arith.constant 0 : index
    %135 = vector.load %arg2[%c22_134, %c0_135, %c0_136] : memref<32x81x256xbf16, #tpu.memory_space<vmem>>, vector<1x81x256xbf16>
    %136 = vector.shape_cast %135 : vector<1x81x256xbf16> to vector<81x256xbf16>
    %cst_137 = arith.constant dense<0.000000e+00> : vector<2x256xf32>
    %137 = tpu.matmul %134, %136, %cst_137 {dimension_numbers = #tpu.dot_dimension_numbers<[1], [0], [0], [1], [0, 0, 1, 1], [], []>} : vector<2x81xbf16>, vector<81x256xbf16>, vector<2x256xf32> -> vector<2x256xf32>
    %138 = arith.addf %132, %137 : vector<2x256xf32>
    %c23 = arith.constant 23 : index
    %c0_138 = arith.constant 0 : index
    %c0_139 = arith.constant 0 : index
    %139 = vector.load %arg1[%c23, %c0_138, %c0_139] : memref<32x2x81xbf16, #tpu.memory_space<vmem>>, vector<1x2x81xbf16>
    %140 = vector.shape_cast %139 : vector<1x2x81xbf16> to vector<2x81xbf16>
    %c23_140 = arith.constant 23 : index
    %c0_141 = arith.constant 0 : index
    %c0_142 = arith.constant 0 : index
    %141 = vector.load %arg2[%c23_140, %c0_141, %c0_142] : memref<32x81x256xbf16, #tpu.memory_space<vmem>>, vector<1x81x256xbf16>
    %142 = vector.shape_cast %141 : vector<1x81x256xbf16> to vector<81x256xbf16>
    %cst_143 = arith.constant dense<0.000000e+00> : vector<2x256xf32>
    %143 = tpu.matmul %140, %142, %cst_143 {dimension_numbers = #tpu.dot_dimension_numbers<[1], [0], [0], [1], [0, 0, 1, 1], [], []>} : vector<2x81xbf16>, vector<81x256xbf16>, vector<2x256xf32> -> vector<2x256xf32>
    %144 = arith.addf %138, %143 : vector<2x256xf32>
    %c24 = arith.constant 24 : index
    %c0_144 = arith.constant 0 : index
    %c0_145 = arith.constant 0 : index
    %145 = vector.load %arg1[%c24, %c0_144, %c0_145] : memref<32x2x81xbf16, #tpu.memory_space<vmem>>, vector<1x2x81xbf16>
    %146 = vector.shape_cast %145 : vector<1x2x81xbf16> to vector<2x81xbf16>
    %c24_146 = arith.constant 24 : index
    %c0_147 = arith.constant 0 : index
    %c0_148 = arith.constant 0 : index
    %147 = vector.load %arg2[%c24_146, %c0_147, %c0_148] : memref<32x81x256xbf16, #tpu.memory_space<vmem>>, vector<1x81x256xbf16>
    %148 = vector.shape_cast %147 : vector<1x81x256xbf16> to vector<81x256xbf16>
    %cst_149 = arith.constant dense<0.000000e+00> : vector<2x256xf32>
    %149 = tpu.matmul %146, %148, %cst_149 {dimension_numbers = #tpu.dot_dimension_numbers<[1], [0], [0], [1], [0, 0, 1, 1], [], []>} : vector<2x81xbf16>, vector<81x256xbf16>, vector<2x256xf32> -> vector<2x256xf32>
    %150 = arith.addf %144, %149 : vector<2x256xf32>
    %c25 = arith.constant 25 : index
    %c0_150 = arith.constant 0 : index
    %c0_151 = arith.constant 0 : index
    %151 = vector.load %arg1[%c25, %c0_150, %c0_151] : memref<32x2x81xbf16, #tpu.memory_space<vmem>>, vector<1x2x81xbf16>
    %152 = vector.shape_cast %151 : vector<1x2x81xbf16> to vector<2x81xbf16>
    %c25_152 = arith.constant 25 : index
    %c0_153 = arith.constant 0 : index
    %c0_154 = arith.constant 0 : index
    %153 = vector.load %arg2[%c25_152, %c0_153, %c0_154] : memref<32x81x256xbf16, #tpu.memory_space<vmem>>, vector<1x81x256xbf16>
    %154 = vector.shape_cast %153 : vector<1x81x256xbf16> to vector<81x256xbf16>
    %cst_155 = arith.constant dense<0.000000e+00> : vector<2x256xf32>
    %155 = tpu.matmul %152, %154, %cst_155 {dimension_numbers = #tpu.dot_dimension_numbers<[1], [0], [0], [1], [0, 0, 1, 1], [], []>} : vector<2x81xbf16>, vector<81x256xbf16>, vector<2x256xf32> -> vector<2x256xf32>
    %156 = arith.addf %150, %155 : vector<2x256xf32>
    %c26 = arith.constant 26 : index
    %c0_156 = arith.constant 0 : index
    %c0_157 = arith.constant 0 : index
    %157 = vector.load %arg1[%c26, %c0_156, %c0_157] : memref<32x2x81xbf16, #tpu.memory_space<vmem>>, vector<1x2x81xbf16>
    %158 = vector.shape_cast %157 : vector<1x2x81xbf16> to vector<2x81xbf16>
    %c26_158 = arith.constant 26 : index
    %c0_159 = arith.constant 0 : index
    %c0_160 = arith.constant 0 : index
    %159 = vector.load %arg2[%c26_158, %c0_159, %c0_160] : memref<32x81x256xbf16, #tpu.memory_space<vmem>>, vector<1x81x256xbf16>
    %160 = vector.shape_cast %159 : vector<1x81x256xbf16> to vector<81x256xbf16>
    %cst_161 = arith.constant dense<0.000000e+00> : vector<2x256xf32>
    %161 = tpu.matmul %158, %160, %cst_161 {dimension_numbers = #tpu.dot_dimension_numbers<[1], [0], [0], [1], [0, 0, 1, 1], [], []>} : vector<2x81xbf16>, vector<81x256xbf16>, vector<2x256xf32> -> vector<2x256xf32>
    %162 = arith.addf %156, %161 : vector<2x256xf32>
    %c27 = arith.constant 27 : index
    %c0_162 = arith.constant 0 : index
    %c0_163 = arith.constant 0 : index
    %163 = vector.load %arg1[%c27, %c0_162, %c0_163] : memref<32x2x81xbf16, #tpu.memory_space<vmem>>, vector<1x2x81xbf16>
    %164 = vector.shape_cast %163 : vector<1x2x81xbf16> to vector<2x81xbf16>
    %c27_164 = arith.constant 27 : index
    %c0_165 = arith.constant 0 : index
    %c0_166 = arith.constant 0 : index
    %165 = vector.load %arg2[%c27_164, %c0_165, %c0_166] : memref<32x81x256xbf16, #tpu.memory_space<vmem>>, vector<1x81x256xbf16>
    %166 = vector.shape_cast %165 : vector<1x81x256xbf16> to vector<81x256xbf16>
    %cst_167 = arith.constant dense<0.000000e+00> : vector<2x256xf32>
    %167 = tpu.matmul %164, %166, %cst_167 {dimension_numbers = #tpu.dot_dimension_numbers<[1], [0], [0], [1], [0, 0, 1, 1], [], []>} : vector<2x81xbf16>, vector<81x256xbf16>, vector<2x256xf32> -> vector<2x256xf32>
    %168 = arith.addf %162, %167 : vector<2x256xf32>
    %c28 = arith.constant 28 : index
    %c0_168 = arith.constant 0 : index
    %c0_169 = arith.constant 0 : index
    %169 = vector.load %arg1[%c28, %c0_168, %c0_169] : memref<32x2x81xbf16, #tpu.memory_space<vmem>>, vector<1x2x81xbf16>
    %170 = vector.shape_cast %169 : vector<1x2x81xbf16> to vector<2x81xbf16>
    %c28_170 = arith.constant 28 : index
    %c0_171 = arith.constant 0 : index
    %c0_172 = arith.constant 0 : index
    %171 = vector.load %arg2[%c28_170, %c0_171, %c0_172] : memref<32x81x256xbf16, #tpu.memory_space<vmem>>, vector<1x81x256xbf16>
    %172 = vector.shape_cast %171 : vector<1x81x256xbf16> to vector<81x256xbf16>
    %cst_173 = arith.constant dense<0.000000e+00> : vector<2x256xf32>
    %173 = tpu.matmul %170, %172, %cst_173 {dimension_numbers = #tpu.dot_dimension_numbers<[1], [0], [0], [1], [0, 0, 1, 1], [], []>} : vector<2x81xbf16>, vector<81x256xbf16>, vector<2x256xf32> -> vector<2x256xf32>
    %174 = arith.addf %168, %173 : vector<2x256xf32>
    %c29 = arith.constant 29 : index
    %c0_174 = arith.constant 0 : index
    %c0_175 = arith.constant 0 : index
    %175 = vector.load %arg1[%c29, %c0_174, %c0_175] : memref<32x2x81xbf16, #tpu.memory_space<vmem>>, vector<1x2x81xbf16>
    %176 = vector.shape_cast %175 : vector<1x2x81xbf16> to vector<2x81xbf16>
    %c29_176 = arith.constant 29 : index
    %c0_177 = arith.constant 0 : index
    %c0_178 = arith.constant 0 : index
    %177 = vector.load %arg2[%c29_176, %c0_177, %c0_178] : memref<32x81x256xbf16, #tpu.memory_space<vmem>>, vector<1x81x256xbf16>
    %178 = vector.shape_cast %177 : vector<1x81x256xbf16> to vector<81x256xbf16>
    %cst_179 = arith.constant dense<0.000000e+00> : vector<2x256xf32>
    %179 = tpu.matmul %176, %178, %cst_179 {dimension_numbers = #tpu.dot_dimension_numbers<[1], [0], [0], [1], [0, 0, 1, 1], [], []>} : vector<2x81xbf16>, vector<81x256xbf16>, vector<2x256xf32> -> vector<2x256xf32>
    %180 = arith.addf %174, %179 : vector<2x256xf32>
    %c30 = arith.constant 30 : index
    %c0_180 = arith.constant 0 : index
    %c0_181 = arith.constant 0 : index
    %181 = vector.load %arg1[%c30, %c0_180, %c0_181] : memref<32x2x81xbf16, #tpu.memory_space<vmem>>, vector<1x2x81xbf16>
    %182 = vector.shape_cast %181 : vector<1x2x81xbf16> to vector<2x81xbf16>
    %c30_182 = arith.constant 30 : index
    %c0_183 = arith.constant 0 : index
    %c0_184 = arith.constant 0 : index
    %183 = vector.load %arg2[%c30_182, %c0_183, %c0_184] : memref<32x81x256xbf16, #tpu.memory_space<vmem>>, vector<1x81x256xbf16>
    %184 = vector.shape_cast %183 : vector<1x81x256xbf16> to vector<81x256xbf16>
    %cst_185 = arith.constant dense<0.000000e+00> : vector<2x256xf32>
    %185 = tpu.matmul %182, %184, %cst_185 {dimension_numbers = #tpu.dot_dimension_numbers<[1], [0], [0], [1], [0, 0, 1, 1], [], []>} : vector<2x81xbf16>, vector<81x256xbf16>, vector<2x256xf32> -> vector<2x256xf32>
    %186 = arith.addf %180, %185 : vector<2x256xf32>
    %c31 = arith.constant 31 : index
    %c0_186 = arith.constant 0 : index
    %c0_187 = arith.constant 0 : index
    %187 = vector.load %arg1[%c31, %c0_186, %c0_187] : memref<32x2x81xbf16, #tpu.memory_space<vmem>>, vector<1x2x81xbf16>
    %188 = vector.shape_cast %187 : vector<1x2x81xbf16> to vector<2x81xbf16>
    %c31_188 = arith.constant 31 : index
    %c0_189 = arith.constant 0 : index
    %c0_190 = arith.constant 0 : index
    %189 = vector.load %arg2[%c31_188, %c0_189, %c0_190] : memref<32x81x256xbf16, #tpu.memory_space<vmem>>, vector<1x81x256xbf16>
    %190 = vector.shape_cast %189 : vector<1x81x256xbf16> to vector<81x256xbf16>
    %cst_191 = arith.constant dense<0.000000e+00> : vector<2x256xf32>
    %191 = tpu.matmul %188, %190, %cst_191 {dimension_numbers = #tpu.dot_dimension_numbers<[1], [0], [0], [1], [0, 0, 1, 1], [], []>} : vector<2x81xbf16>, vector<81x256xbf16>, vector<2x256xf32> -> vector<2x256xf32>
    %192 = arith.addf %186, %191 : vector<2x256xf32>
    %c0_192 = arith.constant 0 : index
    %c0_193 = arith.constant 0 : index
    %193 = vector.load %arg3[%c0_192, %c0_193] : memref<1x256xf32, #tpu.memory_space<vmem>>, vector<1x256xf32>
    %194 = vector.broadcast %193 : vector<1x256xf32> to vector<2x256xf32>
    %195 = arith.addf %192, %194 : vector<2x256xf32>
    %cst_194 = arith.constant 0.000000e+00 : f32
    %196 = vector.broadcast %cst_194 : f32 to vector<2x256xf32>
    %197 = arith.maximumf %195, %196 : vector<2x256xf32>
    %198 = arith.truncf %197 : vector<2x256xf32> to vector<2x256xbf16>
    %c0_195 = arith.constant 0 : index
    %c0_196 = arith.constant 0 : index
    %199 = vector.load %arg4[%c0_195, %c0_196] : memref<256x128xbf16, #tpu.memory_space<vmem>>, vector<256x128xbf16>
    %cst_197 = arith.constant dense<0.000000e+00> : vector<2x128xf32>
    %200 = tpu.matmul %198, %199, %cst_197 {dimension_numbers = #tpu.dot_dimension_numbers<[1], [0], [0], [1], [0, 0, 1, 1], [], []>} : vector<2x256xbf16>, vector<256x128xbf16>, vector<2x128xf32> -> vector<2x128xf32>
    %c0_198 = arith.constant 0 : index
    %c0_199 = arith.constant 0 : index
    %201 = vector.load %arg5[%c0_198, %c0_199] : memref<1x128xf32, #tpu.memory_space<vmem>>, vector<1x128xf32>
    %202 = vector.broadcast %201 : vector<1x128xf32> to vector<2x128xf32>
    %203 = arith.addf %200, %202 : vector<2x128xf32>
    %c0_200 = arith.constant 0 : index
    %c0_201 = arith.constant 0 : index
    %204 = vector.load %arg6[%c0_200, %c0_201] : memref<2x128xf32, #tpu.memory_space<vmem>>, vector<2x128xf32>
    tpu.vector_store %arg6[%c0_200, %c0_201], %203 {strides = array<i32>} : memref<2x128xf32, #tpu.memory_space<vmem>>, vector<2x128xf32>,
    return
  }
  func.func @transform_0(%arg0: i32) -> (i32, i32, i32) {
    %c0_i32 = arith.constant 0 : i32
    %c0_i32_0 = arith.constant 0 : i32
    %c0_i32_1 = arith.constant 0 : i32
    return %c0_i32, %arg0, %c0_i32_0 : i32, i32, i32
  }
  func.func @transform_1(%arg0: i32) -> (i32, i32, i32) {
    %c0_i32 = arith.constant 0 : i32
    %c0_i32_0 = arith.constant 0 : i32
    %c0_i32_1 = arith.constant 0 : i32
    %c0_i32_2 = arith.constant 0 : i32
    return %c0_i32, %c0_i32_0, %c0_i32_1 : i32, i32, i32
  }
  func.func @transform_2(%arg0: i32) -> (i32, i32) {
    %c0_i32 = arith.constant 0 : i32
    %c0_i32_0 = arith.constant 0 : i32
    %c0_i32_1 = arith.constant 0 : i32
    return %c0_i32, %c0_i32_0 : i32, i32
  }
  func.func @transform_3(%arg0: i32) -> (i32, i32) {
    %c0_i32 = arith.constant 0 : i32
    %c0_i32_0 = arith.constant 0 : i32
    %c0_i32_1 = arith.constant 0 : i32
    return %c0_i32, %c0_i32_0 : i32, i32
  }
  func.func @transform_4(%arg0: i32) -> (i32, i32) {
    %c0_i32 = arith.constant 0 : i32
    %c0_i32_0 = arith.constant 0 : i32
    %c0_i32_1 = arith.constant 0 : i32
    return %c0_i32, %c0_i32_0 : i32, i32
  }
  func.func @transform_5(%arg0: i32) -> (i32, i32) {
    %c0_i32 = arith.constant 0 : i32
    %c0_i32_0 = arith.constant 0 : i32
    return %arg0, %c0_i32 : i32, i32
  }
}

</mosaic_0001>

<bundles_post_ra>
// kernel: estimator_forward.3
= control target key start
LH: loop header
LB: loop body
LE: loop exit
PB: predicated region body
PF: predicated region fallthrough
CT: control target
= control target key end

     0   :  { %s2843_s12 = smov 0   ;;  %s2845_s13 = smov 0   ;;  %s4235_s0 = inlined_call_operand.vmem [shape: bf16[16,256], index: 0, kind: input, shape index: {}]   ;;  %s4236_s1 = inlined_call_operand.vmem [shape: bf16[256,800], index: 1, kind: input, shape index: {}]   ;;  %s4237_s2 = inlined_call_operand.vmem [shape: f32[16,1], index: 2, kind: input, shape index: {}]   ;;  %s4238_s3 = inlined_call_operand.vmem [shape: bf16[16,800], index: 3, kind: output, shape index: {}]  }
   0x1   :  { %s2847_s14 = smov 0  }
   0x2 LB: > { %s2859_s15 = sadd.s32 4294967295, %s2688_s14   ;;  %s2862_s16 = sadd.s32 1, %s2688_s14   ;;  %s2688_s14 = sphi %s2847_s14, %s4274_s14   ;;  %s2684_s13 = sphi %s2845_s13, %s4273_s13   ;;  %s2680_s12 = sphi %s2843_s12, %s4272_s12  }
   0x3   : > { %s38_s17 = ssub.s32 %s2688_s14, %s2862_s16  ;;  %s41_s18 = sadd.s32 1, %s2684_s13 }
   0x4   : > { %p39_p0 = scmp.eq.s32.totalorder %s38_s17, 0  ;;  %p48_p1 = scmp.ne.s32.totalorder %s2684_s13, %s2680_s12 }
   0x5   : > { %p49_p2 = scmp.eq.s32.totalorder %s2688_s14, 0  ;;  %p99_p3 = scmp.eq.s32.totalorder %s2859_s15, 1 }
   0x6   : > { %s2872_s19 = scalar_select %p39_p0, %s2684_s13, %s41_s18  }
   0x7   : > { %p50_p4 = por %p49_p2, %p48_p1  ;;  %p2874_p5 = por %p99_p3, %p48_p1 }
   0x8   : > { %p2009_p6 = scmp.ge.s32.totalorder %s2688_s14, 2 }
   0xa   : > { %127 = sbr.rel (%p2009_p6) target bundleno = 259 (0x103), region = 24 }
  0x11   : > { %130 = sbr.rel (!%p50_p4) target bundleno = 259 (0x103), region = 28  ;;  %s132_s21 = sand.u32 (%p50_p4), 1, %s2684_s13  }
  0x12   : > { %s2011_s22 = sshll.u32 (%p50_p4), %s2688_s14, 2  ;;  %s2010_s23 = sshll.u32 (%p50_p4), %s132_s21, 9 }
  0x13   : > { %s136_s24 = ssub.s32 (%p50_p4), 7, %s2011_s22  ;;  %s2139_s25 = sshll.u32 (%p50_p4), %s2688_s14, 4 }
  0x14   : > { %p137_p7 = scmp.lt.s32.totalorder (%p50_p4), %s136_s24, 4  ;;  %s2885_s28 = scalar_lea.vmem (%p50_p4), %s4236_s1, %s2139_s25  }
  0x15   : > { %s2889_s4 = scalar_lea.vmem (%p50_p4), [#allocation2], %s2010_s23  }
  0x18   : > { %s4276_s24 = smov (!%p137_p7, %s136_s24), 4 }
  0x19   : > { %s2012_s29 = sshll.u32 %s4276_s24, 11  ;;  %s2887_s30 = sshll.u32 %s4276_s24, 2 }
  0x1a   : > { %p2016_p8 = scmp.eq.s32.totalorder %s2012_s29, 0 }
  0x1b   : > { %p147_p9 = scmp.lt.u32.totalorder (!%p2016_p8), %s2887_s30, 8 }
  0x1c   : > { %146 = sbr.rel (%p2016_p8) target bundleno = 259 (0x103), region = 32 }
  0x23   : > { %150 = sbr.rel (%p147_p9) target bundleno = 224 (0xe0), region = 36  ;;  %s2893_s5 = sand.u32 (!%p147_p9), 7, %s2887_s30  }
  0x24   : > { %p228_p10 = scmp.eq.s32.totalorder (!%p147_p9), %s2893_s5, 0  ;;  %p2017_p11 = scmp.ne.s32.totalorder (!%p147_p9), %s2893_s5, 0 }
  0x2a   : > { %231 = sbr.rel (%p2017_p11) target bundleno = 116 (0x74), region = 51  ;;  %s232_s6 = sshrl.u32 (!%p2017_p11), %s2887_s30, 3 }
  0x2b   : > { %s2900_s7 = sshrl.u32 (!%p2017_p11), %s232_s6, 1 }
  0x2c   : > { %p2018_p12 = scmp.le.s32.totalorder (!%p2017_p11), %s2900_s7, 0 }
  0x31   : > { %1879 = sbr.rel (%p2018_p12) target bundleno = 89 (0x59), region = 229  ;;  %s4240_s8 = smov (!%p2018_p12), %s2889_s4 }
  0x32   : > { %s4241_s9 = smov (!%p2018_p12), %s2885_s28  ;;  %s2909_s10 = smov (!%p2018_p12), 0  }
  0x33   : > { %s2911_s11 = smov (!%p2018_p12), 0  }
  0x38 LB: >> { %v245_v0 = vld [vmem:[%s2696_s9] sm:$0xff]  ;;  %v247_v1 = vld [vmem:[%s2696_s9 + $0x8] sm:$0xff]  ;;  %s373_s17 = sadd.s32 1, %s2700_s10  ;;  %v253_v4 = vld [vmem:[%s2696_s9 + $0x38] sm:$0xff]  ;;  %s239_s11 = sadd.s32 1, %s2704_s11   ;;  %s2704_s11 = sphi %s2911_s11, %s239_s11   ;;  %s2700_s10 = sphi %s2909_s10, %s4244_s10   ;;  %s2696_s9 = sphi %s4241_s9, %s4243_s9   ;;  %s2692_s8 = sphi %s4240_s8, %s4242_s8  }
  0x39   : >> { %v249_v2 = vld [vmem:[%s2696_s9 + $0x1c] sm:$0xff]  ;;  %246 = vst [vmem:[%s2692_s8] sm:$0xff] %v245_v0  ;;  %248 = vst [vmem:[%s2692_s8 + $0x8] sm:$0xff] %v247_v1  ;;  %v251_v3 = vld [vmem:[%s2696_s9 + $0x24] sm:$0xff]  ;;  %p374_p13 = scmp.ge.s32.totalorder %s373_s17, %s2900_s7  ;;  %p238_p0 = scmp.ge.s32.totalorder %s239_s11, %s2900_s7 }
  0x3a   : >> { %250 = vst [vmem:[%s2692_s8 + $0x10] sm:$0xff] %v249_v2  ;;  %v255_v5 = vld [vmem:[%s2696_s9 + $0x40] sm:$0xff]  ;;  %252 = vst [vmem:[%s2692_s8 + $0x18] sm:$0xff] %v251_v3  ;;  %v257_v6 = vld [vmem:[%s2696_s9 + $0x54] sm:$0xff] }
  0x3b   : >> { %254 = vst [vmem:[%s2692_s8 + $0x20] sm:$0xff] %v253_v4  ;;  %256 = vst [vmem:[%s2692_s8 + $0x28] sm:$0xff] %v255_v5  ;;  %v259_v7 = vld [vmem:[%s2696_s9 + $0x5c] sm:$0xff]  ;;  %v261_v8 = vld [vmem:[%s2696_s9 + $0x70] sm:$0xff]  ;;  %s4278_s17 = smov (%p374_p13, %s373_s17), 0 }
  0x3c   : >> { %258 = vst [vmem:[%s2692_s8 + $0x30] sm:$0xff] %v257_v6  ;;  %260 = vst [vmem:[%s2692_s8 + $0x38] sm:$0xff] %v259_v7  ;;  %v263_v9 = vld [vmem:[%s2696_s9 + $0x78] sm:$0xff]  ;;  %v265_v10 = vld [vmem:[%s2696_s9 + $0x8c] sm:$0xff]  ;;  %s2019_s18 = sshll.u32 %s4278_s17, 4  ;;  %s4244_s10 = smov %s4278_s17 }
  0x3d   : >> { %262 = vst [vmem:[%s2692_s8 + $0x40] sm:$0xff] %v261_v8  ;;  %v267_v11 = vld [vmem:[%s2696_s9 + $0x94] sm:$0xff]  ;;  %264 = vst [vmem:[%s2692_s8 + $0x48] sm:$0xff] %v263_v9  ;;  %v269_v12 = vld [vmem:[%s2696_s9 + $0xa8] sm:$0xff]  ;;  %s2967_s21 = scalar_lea.vmem %s2885_s28, %s2019_s18   ;;  %s2970_s22 = scalar_lea.vmem %s2889_s4, %s2019_s18 [#allocation2]  }
  0x3e   : >> { %266 = vst [vmem:[%s2692_s8 + $0x50] sm:$0xff] %v265_v10  ;;  %268 = vst [vmem:[%s2692_s8 + $0x58] sm:$0xff] %v267_v11  ;;  %v271_v13 = vld [vmem:[%s2696_s9 + $0xb0] sm:$0xff]  ;;  %v273_v14 = vld [vmem:[%s2696_s9 + $0xc4] sm:$0xff] }
  0x3f   : >> { %270 = vst [vmem:[%s2692_s8 + $0x60] sm:$0xff] %v269_v12  ;;  %272 = vst [vmem:[%s2692_s8 + $0x68] sm:$0xff] %v271_v13  ;;  %v275_v15 = vld [vmem:[%s2696_s9 + $0xcc] sm:$0xff]  ;;  %v277_v16 = vld [vmem:[%s2696_s9 + $0xe0] sm:$0xff] }
  0x40   : >> { %274 = vst [vmem:[%s2692_s8 + $0x70] sm:$0xff] %v273_v14  ;;  %v279_v17 = vld [vmem:[%s2696_s9 + $0xe8] sm:$0xff]  ;;  %276 = vst [vmem:[%s2692_s8 + $0x78] sm:$0xff] %v275_v15  ;;  %v281_v18 = vld [vmem:[%s2696_s9 + $0xfc] sm:$0xff] }
  0x41   : >> { %278 = vst [vmem:[%s2692_s8 + $0x80] sm:$0xff] %v277_v16  ;;  %280 = vst [vmem:[%s2692_s8 + $0x88] sm:$0xff] %v279_v17  ;;  %v283_v19 = vld [vmem:[%s2696_s9 + $0x104] sm:$0xff]  ;;  %v285_v20 = vld [vmem:[%s2696_s9 + $0x118] sm:$0xff] }
  0x42   : >> { %282 = vst [vmem:[%s2692_s8 + $0x90] sm:$0xff] %v281_v18  ;;  %284 = vst [vmem:[%s2692_s8 + $0x98] sm:$0xff] %v283_v19  ;;  %v287_v21 = vld [vmem:[%s2696_s9 + $0x120] sm:$0xff]  ;;  %v289_v22 = vld [vmem:[%s2696_s9 + $0x134] sm:$0xff] }
  0x43   : >> { %286 = vst [vmem:[%s2692_s8 + $0xa0] sm:$0xff] %v285_v20  ;;  %v291_v23 = vld [vmem:[%s2696_s9 + $0x13c] sm:$0xff]  ;;  %288 = vst [vmem:[%s2692_s8 + $0xa8] sm:$0xff] %v287_v21  ;;  %v293_v24 = vld [vmem:[%s2696_s9 + $0x150] sm:$0xff] }
  0x44   : >> { %290 = vst [vmem:[%s2692_s8 + $0xb0] sm:$0xff] %v289_v22  ;;  %292 = vst [vmem:[%s2692_s8 + $0xb8] sm:$0xff] %v291_v23  ;;  %v295_v25 = vld [vmem:[%s2696_s9 + $0x158] sm:$0xff]  ;;  %v297_v26 = vld [vmem:[%s2696_s9 + $0x16c] sm:$0xff] }
  0x45   : >> { %294 = vst [vmem:[%s2692_s8 + $0xc0] sm:$0xff] %v293_v24  ;;  %296 = vst [vmem:[%s2692_s8 + $0xc8] sm:$0xff] %v295_v25  ;;  %v299_v27 = vld [vmem:[%s2696_s9 + $0x174] sm:$0xff]  ;;  %v301_v28 = vld [vmem:[%s2696_s9 + $0x188] sm:$0xff] }
  0x46   : >> { %298 = vst [vmem:[%s2692_s8 + $0xd0] sm:$0xff] %v297_v26  ;;  %v303_v29 = vld [vmem:[%s2696_s9 + $0x190] sm:$0xff]  ;;  %300 = vst [vmem:[%s2692_s8 + $0xd8] sm:$0xff] %v299_v27  ;;  %v305_v30 = vld [vmem:[%s2696_s9 + $0x1a4] sm:$0xff] }
  0x47   : >> { %302 = vst [vmem:[%s2692_s8 + $0xe0] sm:$0xff] %v301_v28  ;;  %304 = vst [vmem:[%s2692_s8 + $0xe8] sm:$0xff] %v303_v29  ;;  %v307_v31 = vld [vmem:[%s2696_s9 + $0x1ac] sm:$0xff]  ;;  %v309_v32 = vld [vmem:[%s2696_s9 + $0x1c0] sm:$0xff] }
  0x48   : >> { %306 = vst [vmem:[%s2692_s8 + $0xf0] sm:$0xff] %v305_v30  ;;  %308 = vst [vmem:[%s2692_s8 + $0xf8] sm:$0xff] %v307_v31  ;;  %v311_v33 = vld [vmem:[%s2696_s9 + $0x1c8] sm:$0xff]  ;;  %v313_v34 = vld [vmem:[%s2696_s9 + $0x1dc] sm:$0xff] }
  0x49   : >> { %310 = vst [vmem:[%s2692_s8 + $0x100] sm:$0xff] %v309_v32  ;;  %v315_v35 = vld [vmem:[%s2696_s9 + $0x1e4] sm:$0xff]  ;;  %312 = vst [vmem:[%s2692_s8 + $0x108] sm:$0xff] %v311_v33  ;;  %v317_v36 = vld [vmem:[%s2696_s9 + $0x1f8] sm:$0xff] }
  0x4a   : >> { %314 = vst [vmem:[%s2692_s8 + $0x110] sm:$0xff] %v313_v34  ;;  %316 = vst [vmem:[%s2692_s8 + $0x118] sm:$0xff] %v315_v35  ;;  %v319_v37 = vld [vmem:[%s2696_s9 + $0x200] sm:$0xff]  ;;  %v321_v38 = vld [vmem:[%s2696_s9 + $0x214] sm:$0xff] }
  0x4b   : >> { %318 = vst [vmem:[%s2692_s8 + $0x120] sm:$0xff] %v317_v36  ;;  %320 = vst [vmem:[%s2692_s8 + $0x128] sm:$0xff] %v319_v37  ;;  %v323_v39 = vld [vmem:[%s2696_s9 + $0x21c] sm:$0xff]  ;;  %v325_v40 = vld [vmem:[%s2696_s9 + $0x230] sm:$0xff] }
  0x4c   : >> { %322 = vst [vmem:[%s2692_s8 + $0x130] sm:$0xff] %v321_v38  ;;  %v327_v41 = vld [vmem:[%s2696_s9 + $0x238] sm:$0xff]  ;;  %324 = vst [vmem:[%s2692_s8 + $0x138] sm:$0xff] %v323_v39  ;;  %v329_v42 = vld [vmem:[%s2696_s9 + $0x24c] sm:$0xff] }
  0x4d   : >> { %326 = vst [vmem:[%s2692_s8 + $0x140] sm:$0xff] %v325_v40  ;;  %328 = vst [vmem:[%s2692_s8 + $0x148] sm:$0xff] %v327_v41  ;;  %v331_v43 = vld [vmem:[%s2696_s9 + $0x254] sm:$0xff]  ;;  %v333_v44 = vld [vmem:[%s2696_s9 + $0x268] sm:$0xff] }
  0x4e   : >> { %330 = vst [vmem:[%s2692_s8 + $0x150] sm:$0xff] %v329_v42  ;;  %332 = vst [vmem:[%s2692_s8 + $0x158] sm:$0xff] %v331_v43  ;;  %v335_v45 = vld [vmem:[%s2696_s9 + $0x270] sm:$0xff]  ;;  %v337_v46 = vld [vmem:[%s2696_s9 + $0x284] sm:$0xff] }
  0x4f   : >> { %334 = vst [vmem:[%s2692_s8 + $0x160] sm:$0xff] %v333_v44  ;;  %v339_v47 = vld [vmem:[%s2696_s9 + $0x28c] sm:$0xff]  ;;  %336 = vst [vmem:[%s2692_s8 + $0x168] sm:$0xff] %v335_v45  ;;  %v341_v48 = vld [vmem:[%s2696_s9 + $0x2a0] sm:$0xff] }
  0x50   : >> { %338 = vst [vmem:[%s2692_s8 + $0x170] sm:$0xff] %v337_v46  ;;  %340 = vst [vmem:[%s2692_s8 + $0x178] sm:$0xff] %v339_v47  ;;  %v343_v49 = vld [vmem:[%s2696_s9 + $0x2a8] sm:$0xff]  ;;  %v345_v50 = vld [vmem:[%s2696_s9 + $0x2bc] sm:$0xff] }
  0x51   : >> { %342 = vst [vmem:[%s2692_s8 + $0x180] sm:$0xff] %v341_v48  ;;  %344 = vst [vmem:[%s2692_s8 + $0x188] sm:$0xff] %v343_v49  ;;  %v347_v51 = vld [vmem:[%s2696_s9 + $0x2c4] sm:$0xff]  ;;  %v349_v52 = vld [vmem:[%s2696_s9 + $0x2d8] sm:$0xff] }
  0x52   : >> { %346 = vst [vmem:[%s2692_s8 + $0x190] sm:$0xff] %v345_v50  ;;  %v351_v53 = vld [vmem:[%s2696_s9 + $0x2e0] sm:$0xff]  ;;  %348 = vst [vmem:[%s2692_s8 + $0x198] sm:$0xff] %v347_v51  ;;  %v353_v54 = vld [vmem:[%s2696_s9 + $0x2f4] sm:$0xff]  ;;  %241 = sbr.rel (!%p238_p0) target bundleno = 56 (0x38), region = 235 }
  0x53   : >> { %350 = vst [vmem:[%s2692_s8 + $0x1a0] sm:$0xff] %v349_v52  ;;  %352 = vst [vmem:[%s2692_s8 + $0x1a8] sm:$0xff] %v351_v53  ;;  %v355_v55 = vld [vmem:[%s2696_s9 + $0x2fc] sm:$0xff]  ;;  %v357_v56 = vld [vmem:[%s2696_s9 + $0x310] sm:$0xff] }
  0x54   : >> { %354 = vst [vmem:[%s2692_s8 + $0x1b0] sm:$0xff] %v353_v54  ;;  %356 = vst [vmem:[%s2692_s8 + $0x1b8] sm:$0xff] %v355_v55  ;;  %v359_v57 = vld [vmem:[%s2696_s9 + $0x318] sm:$0xff]  ;;  %v361_v58 = vld [vmem:[%s2696_s9 + $0x32c] sm:$0xff] }
  0x55   : >> { %358 = vst [vmem:[%s2692_s8 + $0x1c0] sm:$0xff] %v357_v56  ;;  %v363_v59 = vld [vmem:[%s2696_s9 + $0x334] sm:$0xff]  ;;  %360 = vst [vmem:[%s2692_s8 + $0x1c8] sm:$0xff] %v359_v57  ;;  %v365_v60 = vld [vmem:[%s2696_s9 + $0x348] sm:$0xff] }
  0x56   : >> { %362 = vst [vmem:[%s2692_s8 + $0x1d0] sm:$0xff] %v361_v58  ;;  %364 = vst [vmem:[%s2692_s8 + $0x1d8] sm:$0xff] %v363_v59  ;;  %v367_v61 = vld [vmem:[%s2696_s9 + $0x350] sm:$0xff]  ;;  %v369_v62 = vld [vmem:[%s2696_s9 + $0x364] sm:$0xff] }
  0x57   : >> { %366 = vst [vmem:[%s2692_s8 + $0x1e0] sm:$0xff] %v365_v60  ;;  %368 = vst [vmem:[%s2692_s8 + $0x1e8] sm:$0xff] %v367_v61  ;;  %v371_v63 = vld [vmem:[%s2696_s9 + $0x36c] sm:$0xff]  ;;  %s4243_s9 = smov %s2967_s21 }
  0x58   : >> { %370 = vst [vmem:[%s2692_s8 + $0x1f0] sm:$0xff] %v369_v62  ;;  %372 = vst [vmem:[%s2692_s8 + $0x1f8] sm:$0xff] %v371_v63  ;;  %s4242_s8 = smov %s2970_s22 }
  0x59 PF: > { %s3076_s23 = sand.u32 1, %s232_s6   ;;  %s2140_s24 = sshll.u32 %s2900_s7, 8 }
  0x5a   : > { %s384_s25 = sshra.s32 %s2140_s24, 4  ;;  %p2024_p1 = scmp.le.s32.totalorder %s3076_s23, 0 }
  0x5b   : > { %s3080_s26 = scalar_lea.vmem %s2885_s28, %s384_s25   ;;  %s3083_s27 = scalar_lea.vmem %s2889_s4, %s384_s25 [#allocation2]  }
  0x5c   : > { %1893 = sbr.rel (%p2024_p1) target bundleno = 116 (0x74), region = 240  ;;  %s4245_s29 = smov (!%p2024_p1), %s3083_s27 }
  0x5d   : > { %s4246_s8 = smov (!%p2024_p1), %s3080_s26  ;;  %s3092_s9 = smov (!%p2024_p1), 0  }
  0x5e   : > { %s3094_s10 = smov (!%p2024_p1), 0  }
  0x63 LB: >> { %v400_v0 = vld [vmem:[%s2712_s8] sm:$0xff]  ;;  %v404_v2 = vld [vmem:[%s2712_s8 + $0x38] sm:$0xff]  ;;  %s464_s6 = sadd.s32 1, %s2716_s9  ;;  %v408_v4 = vld [vmem:[%s2712_s8 + $0x70] sm:$0xff]  ;;  %s394_s10 = sadd.s32 1, %s2720_s10   ;;  %s2720_s10 = sphi %s3094_s10, %s394_s10   ;;  %s2716_s9 = sphi %s3092_s9, %s4249_s9   ;;  %s2712_s8 = sphi %s4246_s8, %s4248_s8   ;;  %s2708_s29 = sphi %s4245_s29, %s4247_s29  }
  0x64   : >> { %v402_v1 = vld [vmem:[%s2712_s8 + $0x1c] sm:$0xff]  ;;  %401 = vst [vmem:[%s2708_s29] sm:$0xff] %v400_v0  ;;  %405 = vst [vmem:[%s2708_s29 + $0x20] sm:$0xff] %v404_v2  ;;  %v406_v3 = vld [vmem:[%s2712_s8 + $0x54] sm:$0xff]  ;;  %p465_p2 = scmp.ge.s32.totalorder %s464_s6, %s3076_s23  ;;  %p393_p3 = scmp.ge.s32.totalorder %s394_s10, %s3076_s23 }
  0x65   : >> { %403 = vst [vmem:[%s2708_s29 + $0x10] sm:$0xff] %v402_v1  ;;  %v410_v5 = vld [vmem:[%s2712_s8 + $0x8c] sm:$0xff]  ;;  %407 = vst [vmem:[%s2708_s29 + $0x30] sm:$0xff] %v406_v3  ;;  %v414_v7 = vld [vmem:[%s2712_s8 + $0xc4] sm:$0xff] }
  0x66   : >> { %409 = vst [vmem:[%s2708_s29 + $0x40] sm:$0xff] %v408_v4  ;;  %411 = vst [vmem:[%s2708_s29 + $0x50] sm:$0xff] %v410_v5  ;;  %v412_v6 = vld [vmem:[%s2712_s8 + $0xa8] sm:$0xff]  ;;  %v416_v8 = vld [vmem:[%s2712_s8 + $0xe0] sm:$0xff]  ;;  %s4280_s6 = smov (%p465_p2, %s464_s6), 0 }
  0x67   : >> { %413 = vst [vmem:[%s2708_s29 + $0x60] sm:$0xff] %v412_v6  ;;  %415 = vst [vmem:[%s2708_s29 + $0x70] sm:$0xff] %v414_v7  ;;  %v418_v9 = vld [vmem:[%s2712_s8 + $0xfc] sm:$0xff]  ;;  %v422_v11 = vld [vmem:[%s2712_s8 + $0x134] sm:$0xff]  ;;  %s2025_s7 = sshll.u32 %s4280_s6, 3  ;;  %s4249_s9 = smov %s4280_s6 }
  0x68   : >> { %417 = vst [vmem:[%s2708_s29 + $0x80] sm:$0xff] %v416_v8  ;;  %v420_v10 = vld [vmem:[%s2712_s8 + $0x118] sm:$0xff]  ;;  %419 = vst [vmem:[%s2708_s29 + $0x90] sm:$0xff] %v418_v9  ;;  %v424_v12 = vld [vmem:[%s2712_s8 + $0x150] sm:$0xff]  ;;  %s3150_s11 = scalar_lea.vmem %s3080_s26, %s2025_s7   ;;  %s470_s17 = scalar_lea.vmem %s3083_s27, %s2025_s7 [#allocation2]  }
  0x69   : >> { %421 = vst [vmem:[%s2708_s29 + $0xa0] sm:$0xff] %v420_v10  ;;  %423 = vst [vmem:[%s2708_s29 + $0xb0] sm:$0xff] %v422_v11  ;;  %v426_v13 = vld [vmem:[%s2712_s8 + $0x16c] sm:$0xff]  ;;  %v430_v15 = vld [vmem:[%s2712_s8 + $0x1a4] sm:$0xff] }
  0x6a   : >> { %v428_v14 = vld [vmem:[%s2712_s8 + $0x188] sm:$0xff]  ;;  %425 = vst [vmem:[%s2708_s29 + $0xc0] sm:$0xff] %v424_v12  ;;  %427 = vst [vmem:[%s2708_s29 + $0xd0] sm:$0xff] %v426_v13  ;;  %v432_v16 = vld [vmem:[%s2712_s8 + $0x1c0] sm:$0xff] }
  0x6b   : >> { %429 = vst [vmem:[%s2708_s29 + $0xe0] sm:$0xff] %v428_v14  ;;  %v434_v17 = vld [vmem:[%s2712_s8 + $0x1dc] sm:$0xff]  ;;  %431 = vst [vmem:[%s2708_s29 + $0xf0] sm:$0xff] %v430_v15  ;;  %v438_v19 = vld [vmem:[%s2712_s8 + $0x214] sm:$0xff] }
  0x6c   : >> { %433 = vst [vmem:[%s2708_s29 + $0x100] sm:$0xff] %v432_v16  ;;  %435 = vst [vmem:[%s2708_s29 + $0x110] sm:$0xff] %v434_v17  ;;  %v436_v18 = vld [vmem:[%s2712_s8 + $0x1f8] sm:$0xff]  ;;  %v440_v20 = vld [vmem:[%s2712_s8 + $0x230] sm:$0xff] }
  0x6d   : >> { %437 = vst [vmem:[%s2708_s29 + $0x120] sm:$0xff] %v436_v18  ;;  %439 = vst [vmem:[%s2708_s29 + $0x130] sm:$0xff] %v438_v19  ;;  %v442_v21 = vld [vmem:[%s2712_s8 + $0x24c] sm:$0xff]  ;;  %v446_v23 = vld [vmem:[%s2712_s8 + $0x284] sm:$0xff]  ;;  %396 = sbr.rel (!%p393_p3) target bundleno = 99 (0x63), region = 246 }
  0x6e   : >> { %441 = vst [vmem:[%s2708_s29 + $0x140] sm:$0xff] %v440_v20  ;;  %v444_v22 = vld [vmem:[%s2712_s8 + $0x268] sm:$0xff]  ;;  %443 = vst [vmem:[%s2708_s29 + $0x150] sm:$0xff] %v442_v21  ;;  %v448_v24 = vld [vmem:[%s2712_s8 + $0x2a0] sm:$0xff] }
  0x6f   : >> { %445 = vst [vmem:[%s2708_s29 + $0x160] sm:$0xff] %v444_v22  ;;  %447 = vst [vmem:[%s2708_s29 + $0x170] sm:$0xff] %v446_v23  ;;  %v450_v25 = vld [vmem:[%s2712_s8 + $0x2bc] sm:$0xff]  ;;  %v454_v27 = vld [vmem:[%s2712_s8 + $0x2f4] sm:$0xff] }
  0x70   : >> { %v452_v26 = vld [vmem:[%s2712_s8 + $0x2d8] sm:$0xff]  ;;  %449 = vst [vmem:[%s2708_s29 + $0x180] sm:$0xff] %v448_v24  ;;  %451 = vst [vmem:[%s2708_s29 + $0x190] sm:$0xff] %v450_v25  ;;  %v456_v28 = vld [vmem:[%s2712_s8 + $0x310] sm:$0xff] }
  0x71   : >> { %453 = vst [vmem:[%s2708_s29 + $0x1a0] sm:$0xff] %v452_v26  ;;  %v458_v29 = vld [vmem:[%s2712_s8 + $0x32c] sm:$0xff]  ;;  %455 = vst [vmem:[%s2708_s29 + $0x1b0] sm:$0xff] %v454_v27  ;;  %v462_v31 = vld [vmem:[%s2712_s8 + $0x364] sm:$0xff] }
  0x72   : >> { %457 = vst [vmem:[%s2708_s29 + $0x1c0] sm:$0xff] %v456_v28  ;;  %459 = vst [vmem:[%s2708_s29 + $0x1d0] sm:$0xff] %v458_v29  ;;  %v460_v30 = vld [vmem:[%s2712_s8 + $0x348] sm:$0xff]  ;;  %s4248_s8 = smov %s3150_s11 }
  0x73   : >> { %461 = vst [vmem:[%s2708_s29 + $0x1e0] sm:$0xff] %v460_v30  ;;  %463 = vst [vmem:[%s2708_s29 + $0x1f0] sm:$0xff] %v462_v31  ;;  %s4247_s29 = smov %s470_s17 }
  0x74 PF: > { %473 = sbr.rel (%p228_p10) target bundleno = 224 (0xe0), region = 69  ;;  %s475_s18 = ssub.s32 (!%p228_p10), %s2887_s30, %s2893_s5 }
  0x75   : > { %s479_s21 = sshrl.u32 (!%p228_p10), %s2887_s30, 3  ;;  %s3196_s22 = scalar_lea.vmem (!%p228_p10), %s2885_s28, %s475_s18 }
  0x76   : > { %s3199_s24 = scalar_lea.vmem (!%p228_p10), %s2889_s4, %s475_s18 [#allocation2]  ;;  %s3203_s25 = sshrl.u32 (!%p228_p10), %s479_s21, 1 }
  0x77   : > { %p2027_p4 = scmp.le.s32.totalorder (!%p228_p10), %s3203_s25, 0 }
  0x7b   : > { %1907 = sbr.rel (%p2027_p4) target bundleno = 163 (0xa3), region = 251  ;;  %s4250_s23 = smov (!%p2027_p4), %s2889_s4 }
  0x7c   : > { %s4251_s26 = smov (!%p2027_p4), %s2885_s28  ;;  %s3212_s27 = smov (!%p2027_p4), 0  }
  0x7d   : > { %s3214_s29 = smov (!%p2027_p4), 0  }
  0x82 LB: >> { %v492_v32 = vld [vmem:[%s2728_s26] sm:$0xff]  ;;  %v494_v33 = vld [vmem:[%s2728_s26 + $0x8] sm:$0xff]  ;;  %s620_s8 = sadd.s32 1, %s2732_s27  ;;  %v500_v36 = vld [vmem:[%s2728_s26 + $0x38] sm:$0xff]  ;;  %s486_s29 = sadd.s32 1, %s2736_s29   ;;  %s2736_s29 = sphi %s3214_s29, %s486_s29   ;;  %s2732_s27 = sphi %s3212_s27, %s4254_s27   ;;  %s2728_s26 = sphi %s4251_s26, %s4253_s26   ;;  %s2724_s23 = sphi %s4250_s23, %s4252_s23  }
  0x83   : >> { %v496_v34 = vld [vmem:[%s2728_s26 + $0x1c] sm:$0xff]  ;;  %493 = vst [vmem:[%s2724_s23] sm:$0xff] %v492_v32  ;;  %495 = vst [vmem:[%s2724_s23 + $0x8] sm:$0xff] %v494_v33  ;;  %v498_v35 = vld [vmem:[%s2728_s26 + $0x24] sm:$0xff]  ;;  %p621_p6 = scmp.ge.s32.totalorder %s620_s8, %s3203_s25  ;;  %p485_p7 = scmp.ge.s32.totalorder %s486_s29, %s3203_s25 }
  0x84   : >> { %497 = vst [vmem:[%s2724_s23 + $0x10] sm:$0xff] %v496_v34  ;;  %v502_v37 = vld [vmem:[%s2728_s26 + $0x40] sm:$0xff]  ;;  %499 = vst [vmem:[%s2724_s23 + $0x18] sm:$0xff] %v498_v35  ;;  %v504_v38 = vld [vmem:[%s2728_s26 + $0x54] sm:$0xff] }
  0x85   : >> { %501 = vst [vmem:[%s2724_s23 + $0x20] sm:$0xff] %v500_v36  ;;  %503 = vst [vmem:[%s2724_s23 + $0x28] sm:$0xff] %v502_v37  ;;  %v506_v39 = vld [vmem:[%s2728_s26 + $0x5c] sm:$0xff]  ;;  %v508_v40 = vld [vmem:[%s2728_s26 + $0x70] sm:$0xff]  ;;  %s4282_s8 = smov (%p621_p6, %s620_s8), 0 }
  0x86   : >> { %505 = vst [vmem:[%s2724_s23 + $0x30] sm:$0xff] %v504_v38  ;;  %507 = vst [vmem:[%s2724_s23 + $0x38] sm:$0xff] %v506_v39  ;;  %v510_v41 = vld [vmem:[%s2728_s26 + $0x78] sm:$0xff]  ;;  %v512_v42 = vld [vmem:[%s2728_s26 + $0x8c] sm:$0xff]  ;;  %s2028_s9 = sshll.u32 %s4282_s8, 4  ;;  %s4254_s27 = smov %s4282_s8 }
  0x87   : >> { %509 = vst [vmem:[%s2724_s23 + $0x40] sm:$0xff] %v508_v40  ;;  %v514_v43 = vld [vmem:[%s2728_s26 + $0x94] sm:$0xff]  ;;  %511 = vst [vmem:[%s2724_s23 + $0x48] sm:$0xff] %v510_v41  ;;  %v516_v44 = vld [vmem:[%s2728_s26 + $0xa8] sm:$0xff]  ;;  %s3270_s10 = scalar_lea.vmem %s2885_s28, %s2028_s9   ;;  %s3273_s6 = scalar_lea.vmem %s2889_s4, %s2028_s9 [#allocation2]  }
  0x88   : >> { %513 = vst [vmem:[%s2724_s23 + $0x50] sm:$0xff] %v512_v42  ;;  %515 = vst [vmem:[%s2724_s23 + $0x58] sm:$0xff] %v514_v43  ;;  %v518_v45 = vld [vmem:[%s2728_s26 + $0xb0] sm:$0xff]  ;;  %v520_v46 = vld [vmem:[%s2728_s26 + $0xc4] sm:$0xff] }
  0x89   : >> { %517 = vst [vmem:[%s2724_s23 + $0x60] sm:$0xff] %v516_v44  ;;  %519 = vst [vmem:[%s2724_s23 + $0x68] sm:$0xff] %v518_v45  ;;  %v522_v47 = vld [vmem:[%s2728_s26 + $0xcc] sm:$0xff]  ;;  %v524_v48 = vld [vmem:[%s2728_s26 + $0xe0] sm:$0xff] }
  0x8a   : >> { %521 = vst [vmem:[%s2724_s23 + $0x70] sm:$0xff] %v520_v46  ;;  %v526_v49 = vld [vmem:[%s2728_s26 + $0xe8] sm:$0xff]  ;;  %523 = vst [vmem:[%s2724_s23 + $0x78] sm:$0xff] %v522_v47  ;;  %v528_v50 = vld [vmem:[%s2728_s26 + $0xfc] sm:$0xff] }
  0x8b   : >> { %525 = vst [vmem:[%s2724_s23 + $0x80] sm:$0xff] %v524_v48  ;;  %527 = vst [vmem:[%s2724_s23 + $0x88] sm:$0xff] %v526_v49  ;;  %v530_v51 = vld [vmem:[%s2728_s26 + $0x104] sm:$0xff]  ;;  %v532_v52 = vld [vmem:[%s2728_s26 + $0x118] sm:$0xff] }
  0x8c   : >> { %529 = vst [vmem:[%s2724_s23 + $0x90] sm:$0xff] %v528_v50  ;;  %531 = vst [vmem:[%s2724_s23 + $0x98] sm:$0xff] %v530_v51  ;;  %v534_v53 = vld [vmem:[%s2728_s26 + $0x120] sm:$0xff]  ;;  %v536_v54 = vld [vmem:[%s2728_s26 + $0x134] sm:$0xff] }
  0x8d   : >> { %533 = vst [vmem:[%s2724_s23 + $0xa0] sm:$0xff] %v532_v52  ;;  %v538_v55 = vld [vmem:[%s2728_s26 + $0x13c] sm:$0xff]  ;;  %535 = vst [vmem:[%s2724_s23 + $0xa8] sm:$0xff] %v534_v53  ;;  %v540_v56 = vld [vmem:[%s2728_s26 + $0x150] sm:$0xff] }
  0x8e   : >> { %537 = vst [vmem:[%s2724_s23 + $0xb0] sm:$0xff] %v536_v54  ;;  %539 = vst [vmem:[%s2724_s23 + $0xb8] sm:$0xff] %v538_v55  ;;  %v542_v57 = vld [vmem:[%s2728_s26 + $0x158] sm:$0xff]  ;;  %v544_v58 = vld [vmem:[%s2728_s26 + $0x16c] sm:$0xff] }
  0x8f   : >> { %541 = vst [vmem:[%s2724_s23 + $0xc0] sm:$0xff] %v540_v56  ;;  %543 = vst [vmem:[%s2724_s23 + $0xc8] sm:$0xff] %v542_v57  ;;  %v546_v59 = vld [vmem:[%s2728_s26 + $0x174] sm:$0xff]  ;;  %v548_v60 = vld [vmem:[%s2728_s26 + $0x188] sm:$0xff] }
  0x90   : >> { %545 = vst [vmem:[%s2724_s23 + $0xd0] sm:$0xff] %v544_v58  ;;  %v550_v61 = vld [vmem:[%s2728_s26 + $0x190] sm:$0xff]  ;;  %547 = vst [vmem:[%s2724_s23 + $0xd8] sm:$0xff] %v546_v59  ;;  %v552_v62 = vld [vmem:[%s2728_s26 + $0x1a4] sm:$0xff] }
  0x91   : >> { %549 = vst [vmem:[%s2724_s23 + $0xe0] sm:$0xff] %v548_v60  ;;  %551 = vst [vmem:[%s2724_s23 + $0xe8] sm:$0xff] %v550_v61  ;;  %v554_v63 = vld [vmem:[%s2728_s26 + $0x1ac] sm:$0xff]  ;;  %v556_v0 = vld [vmem:[%s2728_s26 + $0x1c0] sm:$0xff] }
  0x92   : >> { %553 = vst [vmem:[%s2724_s23 + $0xf0] sm:$0xff] %v552_v62  ;;  %555 = vst [vmem:[%s2724_s23 + $0xf8] sm:$0xff] %v554_v63  ;;  %v558_v1 = vld [vmem:[%s2728_s26 + $0x1c8] sm:$0xff]  ;;  %v560_v2 = vld [vmem:[%s2728_s26 + $0x1dc] sm:$0xff] }
  0x93   : >> { %557 = vst [vmem:[%s2724_s23 + $0x100] sm:$0xff] %v556_v0  ;;  %v562_v3 = vld [vmem:[%s2728_s26 + $0x1e4] sm:$0xff]  ;;  %559 = vst [vmem:[%s2724_s23 + $0x108] sm:$0xff] %v558_v1  ;;  %v564_v4 = vld [vmem:[%s2728_s26 + $0x1f8] sm:$0xff] }
  0x94   : >> { %561 = vst [vmem:[%s2724_s23 + $0x110] sm:$0xff] %v560_v2  ;;  %563 = vst [vmem:[%s2724_s23 + $0x118] sm:$0xff] %v562_v3  ;;  %v566_v5 = vld [vmem:[%s2728_s26 + $0x200] sm:$0xff]  ;;  %v568_v6 = vld [vmem:[%s2728_s26 + $0x214] sm:$0xff] }
  0x95   : >> { %565 = vst [vmem:[%s2724_s23 + $0x120] sm:$0xff] %v564_v4  ;;  %567 = vst [vmem:[%s2724_s23 + $0x128] sm:$0xff] %v566_v5  ;;  %v570_v7 = vld [vmem:[%s2728_s26 + $0x21c] sm:$0xff]  ;;  %v572_v8 = vld [vmem:[%s2728_s26 + $0x230] sm:$0xff] }
  0x96   : >> { %569 = vst [vmem:[%s2724_s23 + $0x130] sm:$0xff] %v568_v6  ;;  %v574_v9 = vld [vmem:[%s2728_s26 + $0x238] sm:$0xff]  ;;  %571 = vst [vmem:[%s2724_s23 + $0x138] sm:$0xff] %v570_v7  ;;  %v576_v10 = vld [vmem:[%s2728_s26 + $0x24c] sm:$0xff] }
  0x97   : >> { %573 = vst [vmem:[%s2724_s23 + $0x140] sm:$0xff] %v572_v8  ;;  %575 = vst [vmem:[%s2724_s23 + $0x148] sm:$0xff] %v574_v9  ;;  %v578_v11 = vld [vmem:[%s2728_s26 + $0x254] sm:$0xff]  ;;  %v580_v12 = vld [vmem:[%s2728_s26 + $0x268] sm:$0xff] }
  0x98   : >> { %577 = vst [vmem:[%s2724_s23 + $0x150] sm:$0xff] %v576_v10  ;;  %579 = vst [vmem:[%s2724_s23 + $0x158] sm:$0xff] %v578_v11  ;;  %v582_v13 = vld [vmem:[%s2728_s26 + $0x270] sm:$0xff]  ;;  %v584_v14 = vld [vmem:[%s2728_s26 + $0x284] sm:$0xff] }
  0x99   : >> { %581 = vst [vmem:[%s2724_s23 + $0x160] sm:$0xff] %v580_v12  ;;  %v586_v15 = vld [vmem:[%s2728_s26 + $0x28c] sm:$0xff]  ;;  %583 = vst [vmem:[%s2724_s23 + $0x168] sm:$0xff] %v582_v13  ;;  %v588_v16 = vld [vmem:[%s2728_s26 + $0x2a0] sm:$0xff] }
  0x9a   : >> { %585 = vst [vmem:[%s2724_s23 + $0x170] sm:$0xff] %v584_v14  ;;  %587 = vst [vmem:[%s2724_s23 + $0x178] sm:$0xff] %v586_v15  ;;  %v590_v17 = vld [vmem:[%s2728_s26 + $0x2a8] sm:$0xff]  ;;  %v592_v18 = vld [vmem:[%s2728_s26 + $0x2bc] sm:$0xff] }
  0x9b   : >> { %589 = vst [vmem:[%s2724_s23 + $0x180] sm:$0xff] %v588_v16  ;;  %591 = vst [vmem:[%s2724_s23 + $0x188] sm:$0xff] %v590_v17  ;;  %v594_v19 = vld [vmem:[%s2728_s26 + $0x2c4] sm:$0xff]  ;;  %v596_v20 = vld [vmem:[%s2728_s26 + $0x2d8] sm:$0xff] }
  0x9c   : >> { %593 = vst [vmem:[%s2724_s23 + $0x190] sm:$0xff] %v592_v18  ;;  %v598_v21 = vld [vmem:[%s2728_s26 + $0x2e0] sm:$0xff]  ;;  %595 = vst [vmem:[%s2724_s23 + $0x198] sm:$0xff] %v594_v19  ;;  %v600_v22 = vld [vmem:[%s2728_s26 + $0x2f4] sm:$0xff]  ;;  %488 = sbr.rel (!%p485_p7) target bundleno = 130 (0x82), region = 257 }
  0x9d   : >> { %597 = vst [vmem:[%s2724_s23 + $0x1a0] sm:$0xff] %v596_v20  ;;  %599 = vst [vmem:[%s2724_s23 + $0x1a8] sm:$0xff] %v598_v21  ;;  %v602_v23 = vld [vmem:[%s2728_s26 + $0x2fc] sm:$0xff]  ;;  %v604_v24 = vld [vmem:[%s2728_s26 + $0x310] sm:$0xff] }
  0x9e   : >> { %601 = vst [vmem:[%s2724_s23 + $0x1b0] sm:$0xff] %v600_v22  ;;  %603 = vst [vmem:[%s2724_s23 + $0x1b8] sm:$0xff] %v602_v23  ;;  %v606_v25 = vld [vmem:[%s2728_s26 + $0x318] sm:$0xff]  ;;  %v608_v26 = vld [vmem:[%s2728_s26 + $0x32c] sm:$0xff] }
  0x9f   : >> { %605 = vst [vmem:[%s2724_s23 + $0x1c0] sm:$0xff] %v604_v24  ;;  %v610_v27 = vld [vmem:[%s2728_s26 + $0x334] sm:$0xff]  ;;  %607 = vst [vmem:[%s2724_s23 + $0x1c8] sm:$0xff] %v606_v25  ;;  %v612_v28 = vld [vmem:[%s2728_s26 + $0x348] sm:$0xff] }
  0xa0   : >> { %609 = vst [vmem:[%s2724_s23 + $0x1d0] sm:$0xff] %v608_v26  ;;  %611 = vst [vmem:[%s2724_s23 + $0x1d8] sm:$0xff] %v610_v27  ;;  %v614_v29 = vld [vmem:[%s2728_s26 + $0x350] sm:$0xff]  ;;  %v616_v30 = vld [vmem:[%s2728_s26 + $0x364] sm:$0xff] }
  0xa1   : >> { %613 = vst [vmem:[%s2724_s23 + $0x1e0] sm:$0xff] %v612_v28  ;;  %615 = vst [vmem:[%s2724_s23 + $0x1e8] sm:$0xff] %v614_v29  ;;  %v618_v31 = vld [vmem:[%s2728_s26 + $0x36c] sm:$0xff]  ;;  %s4253_s26 = smov %s3270_s10 }
  0xa2   : >> { %617 = vst [vmem:[%s2724_s23 + $0x1f0] sm:$0xff] %v616_v30  ;;  %619 = vst [vmem:[%s2724_s23 + $0x1f8] sm:$0xff] %v618_v31  ;;  %s4252_s23 = smov %s3273_s6 }
  0xa3 PF: > { %s3379_s7 = sand.u32 1, %s479_s21   ;;  %s2142_s11 = sshll.u32 %s3203_s25, 8 }
  0xa4   : > { %s631_s17 = sshra.s32 %s2142_s11, 4  ;;  %p2033_p8 = scmp.le.s32.totalorder %s3379_s7, 0 }
  0xa5   : > { %s3383_s18 = scalar_lea.vmem %s2885_s28, %s631_s17   ;;  %s3386_s9 = scalar_lea.vmem %s2889_s4, %s631_s17 [#allocation2]  }
  0xa6   : > { %1921 = sbr.rel (%p2033_p8) target bundleno = 190 (0xbe), region = 262  ;;  %s4255_s23 = smov (!%p2033_p8), %s3386_s9 }
  0xa7   : > { %s4256_s26 = smov (!%p2033_p8), %s3383_s18  ;;  %s3395_s27 = smov (!%p2033_p8), 0  }
  0xa8   : > { %s3397_s29 = smov (!%p2033_p8), 0  }
  0xad LB: >> { %v647_v32 = vld [vmem:[%s2744_s26] sm:$0xff]  ;;  %v651_v34 = vld [vmem:[%s2744_s26 + $0x38] sm:$0xff]  ;;  %s711_s21 = sadd.s32 1, %s2748_s27  ;;  %v655_v36 = vld [vmem:[%s2744_s26 + $0x70] sm:$0xff]  ;;  %s641_s29 = sadd.s32 1, %s2752_s29   ;;  %s2752_s29 = sphi %s3397_s29, %s641_s29   ;;  %s2748_s27 = sphi %s3395_s27, %s4259_s27   ;;  %s2744_s26 = sphi %s4256_s26, %s4258_s26   ;;  %s2740_s23 = sphi %s4255_s23, %s4257_s23  }
  0xae   : >> { %v649_v33 = vld [vmem:[%s2744_s26 + $0x1c] sm:$0xff]  ;;  %648 = vst [vmem:[%s2740_s23] sm:$0xff] %v647_v32  ;;  %652 = vst [vmem:[%s2740_s23 + $0x20] sm:$0xff] %v651_v34  ;;  %v653_v35 = vld [vmem:[%s2744_s26 + $0x54] sm:$0xff]  ;;  %p712_p9 = scmp.ge.s32.totalorder %s711_s21, %s3379_s7  ;;  %p640_p10 = scmp.ge.s32.totalorder %s641_s29, %s3379_s7 }
  0xaf   : >> { %650 = vst [vmem:[%s2740_s23 + $0x10] sm:$0xff] %v649_v33  ;;  %v657_v37 = vld [vmem:[%s2744_s26 + $0x8c] sm:$0xff]  ;;  %654 = vst [vmem:[%s2740_s23 + $0x30] sm:$0xff] %v653_v35  ;;  %v661_v39 = vld [vmem:[%s2744_s26 + $0xc4] sm:$0xff] }
  0xb0   : >> { %656 = vst [vmem:[%s2740_s23 + $0x40] sm:$0xff] %v655_v36  ;;  %658 = vst [vmem:[%s2740_s23 + $0x50] sm:$0xff] %v657_v37  ;;  %v659_v38 = vld [vmem:[%s2744_s26 + $0xa8] sm:$0xff]  ;;  %v663_v40 = vld [vmem:[%s2744_s26 + $0xe0] sm:$0xff]  ;;  %s4284_s21 = smov (%p712_p9, %s711_s21), 0 }
  0xb1   : >> { %660 = vst [vmem:[%s2740_s23 + $0x60] sm:$0xff] %v659_v38  ;;  %662 = vst [vmem:[%s2740_s23 + $0x70] sm:$0xff] %v661_v39  ;;  %v665_v41 = vld [vmem:[%s2744_s26 + $0xfc] sm:$0xff]  ;;  %v669_v43 = vld [vmem:[%s2744_s26 + $0x134] sm:$0xff]  ;;  %s2034_s25 = sshll.u32 %s4284_s21, 3  ;;  %s4259_s27 = smov %s4284_s21 }
  0xb2   : >> { %664 = vst [vmem:[%s2740_s23 + $0x80] sm:$0xff] %v663_v40  ;;  %v667_v42 = vld [vmem:[%s2744_s26 + $0x118] sm:$0xff]  ;;  %666 = vst [vmem:[%s2740_s23 + $0x90] sm:$0xff] %v665_v41  ;;  %v671_v44 = vld [vmem:[%s2744_s26 + $0x150] sm:$0xff]  ;;  %s3453_s8 = scalar_lea.vmem %s3383_s18, %s2034_s25   ;;  %s717_s10 = scalar_lea.vmem %s3386_s9, %s2034_s25 [#allocation2]  }
  0xb3   : >> { %668 = vst [vmem:[%s2740_s23 + $0xa0] sm:$0xff] %v667_v42  ;;  %670 = vst [vmem:[%s2740_s23 + $0xb0] sm:$0xff] %v669_v43  ;;  %v673_v45 = vld [vmem:[%s2744_s26 + $0x16c] sm:$0xff]  ;;  %v677_v47 = vld [vmem:[%s2744_s26 + $0x1a4] sm:$0xff] }
  0xb4   : >> { %v675_v46 = vld [vmem:[%s2744_s26 + $0x188] sm:$0xff]  ;;  %672 = vst [vmem:[%s2740_s23 + $0xc0] sm:$0xff] %v671_v44  ;;  %674 = vst [vmem:[%s2740_s23 + $0xd0] sm:$0xff] %v673_v45  ;;  %v679_v48 = vld [vmem:[%s2744_s26 + $0x1c0] sm:$0xff] }
  0xb5   : >> { %676 = vst [vmem:[%s2740_s23 + $0xe0] sm:$0xff] %v675_v46  ;;  %v681_v49 = vld [vmem:[%s2744_s26 + $0x1dc] sm:$0xff]  ;;  %678 = vst [vmem:[%s2740_s23 + $0xf0] sm:$0xff] %v677_v47  ;;  %v685_v51 = vld [vmem:[%s2744_s26 + $0x214] sm:$0xff] }
  0xb6   : >> { %680 = vst [vmem:[%s2740_s23 + $0x100] sm:$0xff] %v679_v48  ;;  %682 = vst [vmem:[%s2740_s23 + $0x110] sm:$0xff] %v681_v49  ;;  %v683_v50 = vld [vmem:[%s2744_s26 + $0x1f8] sm:$0xff]  ;;  %v687_v52 = vld [vmem:[%s2744_s26 + $0x230] sm:$0xff] }
  0xb7   : >> { %684 = vst [vmem:[%s2740_s23 + $0x120] sm:$0xff] %v683_v50  ;;  %686 = vst [vmem:[%s2740_s23 + $0x130] sm:$0xff] %v685_v51  ;;  %v689_v53 = vld [vmem:[%s2744_s26 + $0x24c] sm:$0xff]  ;;  %v693_v55 = vld [vmem:[%s2744_s26 + $0x284] sm:$0xff]  ;;  %643 = sbr.rel (!%p640_p10) target bundleno = 173 (0xad), region = 268 }
  0xb8   : >> { %688 = vst [vmem:[%s2740_s23 + $0x140] sm:$0xff] %v687_v52  ;;  %v691_v54 = vld [vmem:[%s2744_s26 + $0x268] sm:$0xff]  ;;  %690 = vst [vmem:[%s2740_s23 + $0x150] sm:$0xff] %v689_v53  ;;  %v695_v56 = vld [vmem:[%s2744_s26 + $0x2a0] sm:$0xff] }
  0xb9   : >> { %692 = vst [vmem:[%s2740_s23 + $0x160] sm:$0xff] %v691_v54  ;;  %694 = vst [vmem:[%s2740_s23 + $0x170] sm:$0xff] %v693_v55  ;;  %v697_v57 = vld [vmem:[%s2744_s26 + $0x2bc] sm:$0xff]  ;;  %v701_v59 = vld [vmem:[%s2744_s26 + $0x2f4] sm:$0xff] }
  0xba   : >> { %v699_v58 = vld [vmem:[%s2744_s26 + $0x2d8] sm:$0xff]  ;;  %696 = vst [vmem:[%s2740_s23 + $0x180] sm:$0xff] %v695_v56  ;;  %698 = vst [vmem:[%s2740_s23 + $0x190] sm:$0xff] %v697_v57  ;;  %v703_v60 = vld [vmem:[%s2744_s26 + $0x310] sm:$0xff] }
  0xbb   : >> { %700 = vst [vmem:[%s2740_s23 + $0x1a0] sm:$0xff] %v699_v58  ;;  %v705_v61 = vld [vmem:[%s2744_s26 + $0x32c] sm:$0xff]  ;;  %702 = vst [vmem:[%s2740_s23 + $0x1b0] sm:$0xff] %v701_v59  ;;  %v709_v63 = vld [vmem:[%s2744_s26 + $0x364] sm:$0xff] }
  0xbc   : >> { %704 = vst [vmem:[%s2740_s23 + $0x1c0] sm:$0xff] %v703_v60  ;;  %706 = vst [vmem:[%s2740_s23 + $0x1d0] sm:$0xff] %v705_v61  ;;  %v707_v62 = vld [vmem:[%s2744_s26 + $0x348] sm:$0xff]  ;;  %s4258_s26 = smov %s3453_s8 }
  0xbd   : >> { %708 = vst [vmem:[%s2740_s23 + $0x1e0] sm:$0xff] %v707_v62  ;;  %710 = vst [vmem:[%s2740_s23 + $0x1f0] sm:$0xff] %v709_v63  ;;  %s4257_s23 = smov %s717_s10 }
  0xbe PF: > { %s2818_s6 = smov 0  }
  0xbf   : > { %s3494_s11 = sshllo.u32 %s2818_s6, %s2893_s5 }
  0xc0   : > { %v727_v0 = vld [vmem:[%s3196_s22] sm:%s3494_s11]  ;;  %v731_v2 = vld [vmem:[%s3196_s22 + $0x38] sm:%s3494_s11] }
  0xc1   : > { %v729_v1 = vld [vmem:[%s3196_s22 + $0x1c] sm:%s3494_s11]  ;;  %728 = vst [vmem:[%s3199_s24] sm:%s3494_s11] %v727_v0 }
  0xc2   : > { %730 = vst [vmem:[%s3199_s24 + $0x10] sm:%s3494_s11] %v729_v1  ;;  %v733_v3 = vld [vmem:[%s3196_s22 + $0x54] sm:%s3494_s11] }
  0xc3   : > { %732 = vst [vmem:[%s3199_s24 + $0x20] sm:%s3494_s11] %v731_v2  ;;  %734 = vst [vmem:[%s3199_s24 + $0x30] sm:%s3494_s11] %v733_v3 }
  0xc4   : > { %v735_v4 = vld [vmem:[%s3196_s22 + $0x70] sm:%s3494_s11]  ;;  %v739_v6 = vld [vmem:[%s3196_s22 + $0xa8] sm:%s3494_s11] }
  0xc5   : > { %v737_v5 = vld [vmem:[%s3196_s22 + $0x8c] sm:%s3494_s11]  ;;  %736 = vst [vmem:[%s3199_s24 + $0x40] sm:%s3494_s11] %v735_v4 }
  0xc6   : > { %738 = vst [vmem:[%s3199_s24 + $0x50] sm:%s3494_s11] %v737_v5  ;;  %v741_v7 = vld [vmem:[%s3196_s22 + $0xc4] sm:%s3494_s11] }
  0xc7   : > { %740 = vst [vmem:[%s3199_s24 + $0x60] sm:%s3494_s11] %v739_v6  ;;  %742 = vst [vmem:[%s3199_s24 + $0x70] sm:%s3494_s11] %v741_v7 }
  0xc8   : > { %v743_v8 = vld [vmem:[%s3196_s22 + $0xe0] sm:%s3494_s11]  ;;  %v747_v10 = vld [vmem:[%s3196_s22 + $0x118] sm:%s3494_s11] }
  0xc9   : > { %v745_v9 = vld [vmem:[%s3196_s22 + $0xfc] sm:%s3494_s11]  ;;  %744 = vst [vmem:[%s3199_s24 + $0x80] sm:%s3494_s11] %v743_v8 }
  0xca   : > { %746 = vst [vmem:[%s3199_s24 + $0x90] sm:%s3494_s11] %v745_v9  ;;  %v749_v11 = vld [vmem:[%s3196_s22 + $0x134] sm:%s3494_s11] }
  0xcb   : > { %748 = vst [vmem:[%s3199_s24 + $0xa0] sm:%s3494_s11] %v747_v10  ;;  %750 = vst [vmem:[%s3199_s24 + $0xb0] sm:%s3494_s11] %v749_v11 }
  0xcc   : > { %v751_v12 = vld [vmem:[%s3196_s22 + $0x150] sm:%s3494_s11]  ;;  %v755_v14 = vld [vmem:[%s3196_s22 + $0x188] sm:%s3494_s11] }
  0xcd   : > { %v753_v13 = vld [vmem:[%s3196_s22 + $0x16c] sm:%s3494_s11]  ;;  %752 = vst [vmem:[%s3199_s24 + $0xc0] sm:%s3494_s11] %v751_v12 }
  0xce   : > { %754 = vst [vmem:[%s3199_s24 + $0xd0] sm:%s3494_s11] %v753_v13  ;;  %v757_v15 = vld [vmem:[%s3196_s22 + $0x1a4] sm:%s3494_s11] }
  0xcf   : > { %756 = vst [vmem:[%s3199_s24 + $0xe0] sm:%s3494_s11] %v755_v14  ;;  %758 = vst [vmem:[%s3199_s24 + $0xf0] sm:%s3494_s11] %v757_v15 }
  0xd0   : > { %v759_v16 = vld [vmem:[%s3196_s22 + $0x1c0] sm:%s3494_s11]  ;;  %v763_v18 = vld [vmem:[%s3196_s22 + $0x1f8] sm:%s3494_s11] }
  0xd1   : > { %v761_v17 = vld [vmem:[%s3196_s22 + $0x1dc] sm:%s3494_s11]  ;;  %760 = vst [vmem:[%s3199_s24 + $0x100] sm:%s3494_s11] %v759_v16 }
  0xd2   : > { %762 = vst [vmem:[%s3199_s24 + $0x110] sm:%s3494_s11] %v761_v17  ;;  %v765_v19 = vld [vmem:[%s3196_s22 + $0x214] sm:%s3494_s11] }
  0xd3   : > { %764 = vst [vmem:[%s3199_s24 + $0x120] sm:%s3494_s11] %v763_v18  ;;  %766 = vst [vmem:[%s3199_s24 + $0x130] sm:%s3494_s11] %v765_v19 }
  0xd4   : > { %v767_v20 = vld [vmem:[%s3196_s22 + $0x230] sm:%s3494_s11]  ;;  %v771_v22 = vld [vmem:[%s3196_s22 + $0x268] sm:%s3494_s11] }
  0xd5   : > { %v769_v21 = vld [vmem:[%s3196_s22 + $0x24c] sm:%s3494_s11]  ;;  %768 = vst [vmem:[%s3199_s24 + $0x140] sm:%s3494_s11] %v767_v20 }
  0xd6   : > { %770 = vst [vmem:[%s3199_s24 + $0x150] sm:%s3494_s11] %v769_v21  ;;  %v773_v23 = vld [vmem:[%s3196_s22 + $0x284] sm:%s3494_s11] }
  0xd7   : > { %772 = vst [vmem:[%s3199_s24 + $0x160] sm:%s3494_s11] %v771_v22  ;;  %774 = vst [vmem:[%s3199_s24 + $0x170] sm:%s3494_s11] %v773_v23 }
  0xd8   : > { %v775_v24 = vld [vmem:[%s3196_s22 + $0x2a0] sm:%s3494_s11]  ;;  %v779_v26 = vld [vmem:[%s3196_s22 + $0x2d8] sm:%s3494_s11] }
  0xd9   : > { %v777_v25 = vld [vmem:[%s3196_s22 + $0x2bc] sm:%s3494_s11]  ;;  %776 = vst [vmem:[%s3199_s24 + $0x180] sm:%s3494_s11] %v775_v24 }
  0xda   : > { %778 = vst [vmem:[%s3199_s24 + $0x190] sm:%s3494_s11] %v777_v25  ;;  %v781_v27 = vld [vmem:[%s3196_s22 + $0x2f4] sm:%s3494_s11] }
  0xdb   : > { %780 = vst [vmem:[%s3199_s24 + $0x1a0] sm:%s3494_s11] %v779_v26  ;;  %782 = vst [vmem:[%s3199_s24 + $0x1b0] sm:%s3494_s11] %v781_v27 }
  0xdc   : > { %v783_v28 = vld [vmem:[%s3196_s22 + $0x310] sm:%s3494_s11]  ;;  %v787_v30 = vld [vmem:[%s3196_s22 + $0x348] sm:%s3494_s11] }
  0xdd   : > { %v785_v29 = vld [vmem:[%s3196_s22 + $0x32c] sm:%s3494_s11]  ;;  %784 = vst [vmem:[%s3199_s24 + $0x1c0] sm:%s3494_s11] %v783_v28 }
  0xde   : > { %786 = vst [vmem:[%s3199_s24 + $0x1d0] sm:%s3494_s11] %v785_v29  ;;  %v789_v31 = vld [vmem:[%s3196_s22 + $0x364] sm:%s3494_s11] }
  0xdf   : > { %788 = vst [vmem:[%s3199_s24 + $0x1e0] sm:%s3494_s11] %v787_v30  ;;  %790 = vst [vmem:[%s3199_s24 + $0x1f0] sm:%s3494_s11] %v789_v31 }
  0xe0 PF: > { %p2036_p11 = scmp.ge.u32.totalorder %s2887_s30, 8 }
  0xe1   : > { %s2819_s5 = smov (!%p2036_p11), 0  }
  0xe2   : > { %153 = sbr.rel (%p2036_p11) target bundleno = 259 (0x103), region = 40  ;;  %s3626_s22 = sshllo.u32 (!%p2036_p11), %s2819_s5, %s2887_s30 }
  0xe3   : > { %v163_v32 = vld [vmem:[%s2885_s28] sm:%s3626_s22] (!%p2036_p11)  ;;  %v167_v34 = vld [vmem:[%s2885_s28 + $0x38] sm:%s3626_s22] (!%p2036_p11) }
  0xe4   : > { %v165_v33 = vld [vmem:[%s2885_s28 + $0x1c] sm:%s3626_s22] (!%p2036_p11)  ;;  %164 = vst [vmem:[%s2889_s4] sm:%s3626_s22] (!%p2036_p11), %v163_v32 }
  0xe5   : > { %166 = vst [vmem:[%s2889_s4 + $0x10] sm:%s3626_s22] (!%p2036_p11), %v165_v33  ;;  %v169_v35 = vld [vmem:[%s2885_s28 + $0x54] sm:%s3626_s22] (!%p2036_p11) }
  0xe6   : > { %168 = vst [vmem:[%s2889_s4 + $0x20] sm:%s3626_s22] (!%p2036_p11), %v167_v34  ;;  %170 = vst [vmem:[%s2889_s4 + $0x30] sm:%s3626_s22] (!%p2036_p11), %v169_v35 }
  0xe7   : > { %v171_v36 = vld [vmem:[%s2885_s28 + $0x70] sm:%s3626_s22] (!%p2036_p11)  ;;  %v175_v38 = vld [vmem:[%s2885_s28 + $0xa8] sm:%s3626_s22] (!%p2036_p11) }
  0xe8   : > { %v173_v37 = vld [vmem:[%s2885_s28 + $0x8c] sm:%s3626_s22] (!%p2036_p11)  ;;  %172 = vst [vmem:[%s2889_s4 + $0x40] sm:%s3626_s22] (!%p2036_p11), %v171_v36 }
  0xe9   : > { %174 = vst [vmem:[%s2889_s4 + $0x50] sm:%s3626_s22] %v173_v37  ;;  %v177_v39 = vld [vmem:[%s2885_s28 + $0xc4] sm:%s3626_s22] }
  0xea   : > { %176 = vst [vmem:[%s2889_s4 + $0x60] sm:%s3626_s22] %v175_v38  ;;  %178 = vst [vmem:[%s2889_s4 + $0x70] sm:%s3626_s22] %v177_v39 }
  0xeb   : > { %v179_v40 = vld [vmem:[%s2885_s28 + $0xe0] sm:%s3626_s22]  ;;  %v183_v42 = vld [vmem:[%s2885_s28 + $0x118] sm:%s3626_s22] }
  0xec   : > { %v181_v41 = vld [vmem:[%s2885_s28 + $0xfc] sm:%s3626_s22]  ;;  %180 = vst [vmem:[%s2889_s4 + $0x80] sm:%s3626_s22] %v179_v40 }
  0xed   : > { %182 = vst [vmem:[%s2889_s4 + $0x90] sm:%s3626_s22] %v181_v41  ;;  %v185_v43 = vld [vmem:[%s2885_s28 + $0x134] sm:%s3626_s22] }
  0xee   : > { %184 = vst [vmem:[%s2889_s4 + $0xa0] sm:%s3626_s22] %v183_v42  ;;  %186 = vst [vmem:[%s2889_s4 + $0xb0] sm:%s3626_s22] %v185_v43 }
  0xef   : > { %v187_v44 = vld [vmem:[%s2885_s28 + $0x150] sm:%s3626_s22]  ;;  %v191_v46 = vld [vmem:[%s2885_s28 + $0x188] sm:%s3626_s22] }
  0xf0   : > { %v189_v45 = vld [vmem:[%s2885_s28 + $0x16c] sm:%s3626_s22]  ;;  %188 = vst [vmem:[%s2889_s4 + $0xc0] sm:%s3626_s22] %v187_v44 }
  0xf1   : > { %190 = vst [vmem:[%s2889_s4 + $0xd0] sm:%s3626_s22] %v189_v45  ;;  %v193_v47 = vld [vmem:[%s2885_s28 + $0x1a4] sm:%s3626_s22] }
  0xf2   : > { %192 = vst [vmem:[%s2889_s4 + $0xe0] sm:%s3626_s22] %v191_v46  ;;  %194 = vst [vmem:[%s2889_s4 + $0xf0] sm:%s3626_s22] %v193_v47 }
  0xf3   : > { %v195_v48 = vld [vmem:[%s2885_s28 + $0x1c0] sm:%s3626_s22]  ;;  %v199_v50 = vld [vmem:[%s2885_s28 + $0x1f8] sm:%s3626_s22] }
  0xf4   : > { %v197_v49 = vld [vmem:[%s2885_s28 + $0x1dc] sm:%s3626_s22]  ;;  %196 = vst [vmem:[%s2889_s4 + $0x100] sm:%s3626_s22] %v195_v48 }
  0xf5   : > { %198 = vst [vmem:[%s2889_s4 + $0x110] sm:%s3626_s22] %v197_v49  ;;  %v201_v51 = vld [vmem:[%s2885_s28 + $0x214] sm:%s3626_s22] }
  0xf6   : > { %200 = vst [vmem:[%s2889_s4 + $0x120] sm:%s3626_s22] %v199_v50  ;;  %202 = vst [vmem:[%s2889_s4 + $0x130] sm:%s3626_s22] %v201_v51 }
  0xf7   : > { %v203_v52 = vld [vmem:[%s2885_s28 + $0x230] sm:%s3626_s22]  ;;  %v207_v54 = vld [vmem:[%s2885_s28 + $0x268] sm:%s3626_s22] }
  0xf8   : > { %v205_v53 = vld [vmem:[%s2885_s28 + $0x24c] sm:%s3626_s22]  ;;  %204 = vst [vmem:[%s2889_s4 + $0x140] sm:%s3626_s22] %v203_v52 }
  0xf9   : > { %206 = vst [vmem:[%s2889_s4 + $0x150] sm:%s3626_s22] %v205_v53  ;;  %v209_v55 = vld [vmem:[%s2885_s28 + $0x284] sm:%s3626_s22] }
  0xfa   : > { %208 = vst [vmem:[%s2889_s4 + $0x160] sm:%s3626_s22] %v207_v54  ;;  %210 = vst [vmem:[%s2889_s4 + $0x170] sm:%s3626_s22] %v209_v55 }
  0xfb   : > { %v211_v56 = vld [vmem:[%s2885_s28 + $0x2a0] sm:%s3626_s22]  ;;  %v215_v58 = vld [vmem:[%s2885_s28 + $0x2d8] sm:%s3626_s22] }
  0xfc   : > { %v213_v57 = vld [vmem:[%s2885_s28 + $0x2bc] sm:%s3626_s22]  ;;  %212 = vst [vmem:[%s2889_s4 + $0x180] sm:%s3626_s22] %v211_v56 }
  0xfd   : > { %214 = vst [vmem:[%s2889_s4 + $0x190] sm:%s3626_s22] %v213_v57  ;;  %v217_v59 = vld [vmem:[%s2885_s28 + $0x2f4] sm:%s3626_s22] }
  0xfe   : > { %216 = vst [vmem:[%s2889_s4 + $0x1a0] sm:%s3626_s22] %v215_v58  ;;  %218 = vst [vmem:[%s2889_s4 + $0x1b0] sm:%s3626_s22] %v217_v59 }
  0xff   : > { %v219_v60 = vld [vmem:[%s2885_s28 + $0x310] sm:%s3626_s22]  ;;  %v223_v62 = vld [vmem:[%s2885_s28 + $0x348] sm:%s3626_s22] }
 0x100   : > { %v221_v61 = vld [vmem:[%s2885_s28 + $0x32c] sm:%s3626_s22]  ;;  %220 = vst [vmem:[%s2889_s4 + $0x1c0] sm:%s3626_s22] %v219_v60 }
 0x101   : > { %222 = vst [vmem:[%s2889_s4 + $0x1d0] sm:%s3626_s22] %v221_v61  ;;  %v225_v63 = vld [vmem:[%s2885_s28 + $0x364] sm:%s3626_s22] }
 0x102   : > { %224 = vst [vmem:[%s2889_s4 + $0x1e0] sm:%s3626_s22] %v223_v62  ;;  %226 = vst [vmem:[%s2889_s4 + $0x1f0] sm:%s3626_s22] %v225_v63 }
 0x103 PF: > { %p2037_p12 = scmp.ge.s32.totalorder %s2688_s14, 1  ;;  %p793_p13 = scmp.lt.s32.totalorder %s2688_s14, 3 }
 0x105   : > { %p794_p0 = pnand %p2037_p12, %p793_p13 }
 0x106   : > { %s800_s30 = sand.u32 (!%p794_p0), 1, %s2680_s12   ;;  %v2537_v0 = vld [vmem:[%s4235_s0 + $0x4] ss:$8 sps:$4 sm:$0xff] (!%p794_p0)   ;;  %v2820_v1 = vmov (!%p794_p0), 0  }
 0x107   : > { %797 = sbr.rel (%p794_p0) target bundleno = 717 (0x2cd), region = 94  ;;  %s2038_s24 = sshll.u32 (!%p794_p0), %s800_s30, 9  ;;  %2438 = vset.pattern.permute.xlu0 (!%p794_p0), %v2820_v1  ;;  %v898_v2 = vld [vmem:[%s4237_s2] sm:$0xff] (!%p794_p0)  ;;  %v899_v3 = vld [vmem:[%s4237_s2 + $0x8] sm:$0xff] (!%p794_p0)  ;;  %1272 = vmatprep.mubr.bf16.mxu0 (!%p794_p0), %v2537_v0 }
 0x108   : > { %902 = vperm.xlu0 (!%p794_p0), %2438, %v898_v2   ;;  %s3770_s9 = scalar_lea.vmem (!%p794_p0), [#allocation2], %s2038_s24  ;;  %1315 = vmatprep.mubr.bf16.mxu1 (!%p794_p0), %v2537_v0  ;;  %s2039_s27 = sshll.u32 (!%p794_p0), %s800_s30, 5 }
 0x109   : > { %v2439_v4 = vld [vmem:[%s3770_s9 + $0x4] ss:$16 sps:$4 sm:$0xff] (!%p794_p0)   ;;  %v2441_v5 = vld [vmem:[%s3770_s9 + $0xc] ss:$16 sps:$4 sm:$0xff] (!%p794_p0)   ;;  %v2443_v6 = vld [vmem:[%s3770_s9] ss:$16 sps:$4 sm:$0xff] (!%p794_p0)  }
 0x10a   : > { %1240 = vmatprep.subr.bf16.mxu0 (!%p794_p0), %v2439_v4  ;;  %v2444_v7 = vld [vmem:[%s3770_s9 + $0x8] ss:$16 sps:$4 sm:$0xff] (!%p794_p0)   ;;  %1283 = vmatprep.subr.bf16.mxu1 (!%p794_p0), %v2441_v5  ;;  %v2445_v8 = vld [vmem:[%s3770_s9 + $0x24] ss:$16 sps:$4 sm:$0xff] (!%p794_p0)   ;;  %v2447_v9 = vld [vmem:[%s3770_s9 + $0x2c] ss:$16 sps:$4 sm:$0xff] (!%p794_p0)  }
 0x10b   : > { %1241 = vmatpush1.bf16.msra.mxu0 (!%p794_p0), %v2443_v6  ;;  %1284 = vmatpush1.bf16.msra.mxu1 (!%p794_p0), %v2444_v7  ;;  %v2449_v10 = vld [vmem:[%s3770_s9 + $0x20] ss:$16 sps:$4 sm:$0xff] (!%p794_p0)   ;;  %v2450_v11 = vld [vmem:[%s3770_s9 + $0x28] ss:$16 sps:$4 sm:$0xff] (!%p794_p0)   ;;  %v2451_v12 = vld [vmem:[%s3770_s9 + $0x44] ss:$16 sps:$4 sm:$0xff] (!%p794_p0)  }
 0x10c   : > { %907 = vperm.xlu0 (!%p794_p0), %2438, %v899_v3   ;;  %1242 = vmatprep.subr.bf16.mxu0 (!%p794_p0), %v2445_v8  ;;  %v2453_v13 = vld [vmem:[%s3770_s9 + $0x4c] ss:$16 sps:$4 sm:$0xff] (!%p794_p0)   ;;  %v2455_v14 = vld [vmem:[%s3770_s9 + $0x40] ss:$16 sps:$4 sm:$0xff] (!%p794_p0)   ;;  %v2456_v15 = vld [vmem:[%s3770_s9 + $0x48] ss:$16 sps:$4 sm:$0xff] (!%p794_p0)  }
 0x10d   : > { %1285 = vmatprep.subr.bf16.mxu1 (!%p794_p0), %v2447_v9  ;;  %v2457_v16 = vld [vmem:[%s3770_s9 + $0x64] ss:$16 sps:$4 sm:$0xff] (!%p794_p0)   ;;  %v2459_v17 = vld [vmem:[%s3770_s9 + $0x6c] ss:$16 sps:$4 sm:$0xff] (!%p794_p0)   ;;  %v2461_v18 = vld [vmem:[%s3770_s9 + $0x60] ss:$16 sps:$4 sm:$0xff] (!%p794_p0)  }
 0x10e   : > { %v2462_v19 = vld [vmem:[%s3770_s9 + $0x68] ss:$16 sps:$4 sm:$0xff]   ;;  %v2463_v20 = vld [vmem:[%s3770_s9 + $0x84] ss:$16 sps:$4 sm:$0xff]   ;;  %v2465_v21 = vld [vmem:[%s3770_s9 + $0x8c] ss:$16 sps:$4 sm:$0xff]  }
 0x10f   : > { %1243 = vmatpush1.bf16.msra.mxu0 %v2449_v10  ;;  %1286 = vmatpush1.bf16.msra.mxu1 %v2450_v11  ;;  %v2467_v22 = vld [vmem:[%s3770_s9 + $0x80] ss:$16 sps:$4 sm:$0xff]   ;;  %v2468_v23 = vld [vmem:[%s3770_s9 + $0x88] ss:$16 sps:$4 sm:$0xff]   ;;  %v2469_v24 = vld [vmem:[%s3770_s9 + $0xa4] ss:$16 sps:$4 sm:$0xff]  }
 0x110   : > { %1244 = vmatprep.subr.bf16.mxu0 %v2451_v12  ;;  %1287 = vmatprep.subr.bf16.mxu1 %v2453_v13  ;;  %v2471_v25 = vld [vmem:[%s3770_s9 + $0xac] ss:$16 sps:$4 sm:$0xff]   ;;  %v2473_v26 = vld [vmem:[%s3770_s9 + $0xa0] ss:$16 sps:$4 sm:$0xff]   ;;  %v2474_v27 = vld [vmem:[%s3770_s9 + $0xa8] ss:$16 sps:$4 sm:$0xff]  }
 0x111   : > { %v2475_v28 = vld [vmem:[%s3770_s9 + $0xc4] ss:$16 sps:$4 sm:$0xff]   ;;  %v2477_v29 = vld [vmem:[%s3770_s9 + $0xcc] ss:$16 sps:$4 sm:$0xff]   ;;  %v2479_v30 = vld [vmem:[%s3770_s9 + $0xc0] ss:$16 sps:$4 sm:$0xff]  }
 0x112   : > { %v2480_v31 = vld [vmem:[%s3770_s9 + $0xc8] ss:$16 sps:$4 sm:$0xff]   ;;  %v2481_v32 = vld [vmem:[%s3770_s9 + $0xe4] ss:$16 sps:$4 sm:$0xff]   ;;  %v2483_v33 = vld [vmem:[%s3770_s9 + $0xec] ss:$16 sps:$4 sm:$0xff]  }
 0x113   : > { %1245 = vmatpush1.bf16.msra.mxu0 %v2455_v14  ;;  %1288 = vmatpush1.bf16.msra.mxu1 %v2456_v15  ;;  %v2485_v34 = vld [vmem:[%s3770_s9 + $0xe0] ss:$16 sps:$4 sm:$0xff]   ;;  %v2486_v35 = vld [vmem:[%s3770_s9 + $0xe8] ss:$16 sps:$4 sm:$0xff]   ;;  %v2487_v36 = vld [vmem:[%s3770_s9 + $0x104] ss:$16 sps:$4 sm:$0xff]  }
 0x114   : > { %1246 = vmatprep.subr.bf16.mxu0 %v2457_v16  ;;  %1289 = vmatprep.subr.bf16.mxu1 %v2459_v17  ;;  %v2489_v37 = vld [vmem:[%s3770_s9 + $0x10c] ss:$16 sps:$4 sm:$0xff]   ;;  %v2491_v38 = vld [vmem:[%s3770_s9 + $0x100] ss:$16 sps:$4 sm:$0xff]   ;;  %v2492_v39 = vld [vmem:[%s3770_s9 + $0x108] ss:$16 sps:$4 sm:$0xff]  }
 0x115   : > { %v2493_v40 = vld [vmem:[%s3770_s9 + $0x124] ss:$16 sps:$4 sm:$0xff]   ;;  %v2495_v41 = vld [vmem:[%s3770_s9 + $0x12c] ss:$16 sps:$4 sm:$0xff]   ;;  %v2497_v42 = vld [vmem:[%s3770_s9 + $0x120] ss:$16 sps:$4 sm:$0xff]  }
 0x116   : > { %v2498_v43 = vld [vmem:[%s3770_s9 + $0x128] ss:$16 sps:$4 sm:$0xff]   ;;  %v2499_v44 = vld [vmem:[%s3770_s9 + $0x144] ss:$16 sps:$4 sm:$0xff]   ;;  %v2501_v45 = vld [vmem:[%s3770_s9 + $0x14c] ss:$16 sps:$4 sm:$0xff]  }
 0x117   : > { %1247 = vmatpush1.bf16.msra.mxu0 %v2461_v18  ;;  %1290 = vmatpush1.bf16.msra.mxu1 %v2462_v19  ;;  %v2503_v46 = vld [vmem:[%s3770_s9 + $0x140] ss:$16 sps:$4 sm:$0xff]   ;;  %v2504_v47 = vld [vmem:[%s3770_s9 + $0x148] ss:$16 sps:$4 sm:$0xff]   ;;  %v2505_v48 = vld [vmem:[%s3770_s9 + $0x164] ss:$16 sps:$4 sm:$0xff]  }
 0x118   : > { %1248 = vmatprep.subr.bf16.mxu0 %v2463_v20  ;;  %1291 = vmatprep.subr.bf16.mxu1 %v2465_v21  ;;  %v2507_v49 = vld [vmem:[%s3770_s9 + $0x16c] ss:$16 sps:$4 sm:$0xff]   ;;  %v2509_v50 = vld [vmem:[%s3770_s9 + $0x160] ss:$16 sps:$4 sm:$0xff]   ;;  %v2510_v51 = vld [vmem:[%s3770_s9 + $0x168] ss:$16 sps:$4 sm:$0xff]  }
 0x119   : > { %v2511_v52 = vld [vmem:[%s3770_s9 + $0x184] ss:$16 sps:$4 sm:$0xff]   ;;  %v2513_v53 = vld [vmem:[%s3770_s9 + $0x18c] ss:$16 sps:$4 sm:$0xff]   ;;  %v2515_v54 = vld [vmem:[%s3770_s9 + $0x180] ss:$16 sps:$4 sm:$0xff]  }
 0x11a   : > { %v2516_v55 = vld [vmem:[%s3770_s9 + $0x188] ss:$16 sps:$4 sm:$0xff]   ;;  %v2517_v56 = vld [vmem:[%s3770_s9 + $0x1a4] ss:$16 sps:$4 sm:$0xff]   ;;  %v2519_v57 = vld [vmem:[%s3770_s9 + $0x1ac] ss:$16 sps:$4 sm:$0xff]  }
 0x11b   : > { %1249 = vmatpush1.bf16.msra.mxu0 %v2467_v22  ;;  %1292 = vmatpush1.bf16.msra.mxu1 %v2468_v23  ;;  %v2521_v58 = vld [vmem:[%s3770_s9 + $0x1a0] ss:$16 sps:$4 sm:$0xff]   ;;  %v2522_v59 = vld [vmem:[%s3770_s9 + $0x1a8] ss:$16 sps:$4 sm:$0xff]   ;;  %v2523_v60 = vld [vmem:[%s3770_s9 + $0x1c4] ss:$16 sps:$4 sm:$0xff]  }
 0x11c   : > { %1250 = vmatprep.subr.bf16.mxu0 %v2469_v24  ;;  %1293 = vmatprep.subr.bf16.mxu1 %v2471_v25  ;;  %v2525_v61 = vld [vmem:[%s3770_s9 + $0x1cc] ss:$16 sps:$4 sm:$0xff]   ;;  %v2527_v62 = vld [vmem:[%s3770_s9 + $0x1c0] ss:$16 sps:$4 sm:$0xff]   ;;  %v2528_v63 = vld [vmem:[%s3770_s9 + $0x1c8] ss:$16 sps:$4 sm:$0xff]  }
 0x11d   : > { %v2529_v0 = vld [vmem:[%s3770_s9 + $0x1e4] ss:$16 sps:$4 sm:$0xff]   ;;  %v2531_v1 = vld [vmem:[%s3770_s9 + $0x1ec] ss:$16 sps:$4 sm:$0xff]   ;;  %v2533_v2 = vld [vmem:[%s3770_s9 + $0x1e0] ss:$16 sps:$4 sm:$0xff]  }
 0x11e   : > { %v2534_v3 = vld [vmem:[%s3770_s9 + $0x1e8] ss:$16 sps:$4 sm:$0xff]   ;;  %s3841_s12 = scalar_lea.vmem [#allocation3], %s2039_s27   ;;  %s2111_s29 = sshll.u32 (%p2874_p5), %s2859_s15, 2 }
 0x11f   : > { %1251 = vmatpush1.bf16.msra.mxu0 %v2473_v26  ;;  %1294 = vmatpush1.bf16.msra.mxu1 %v2474_v27  ;;  %v2535_v4 = vld [vmem:[%s4235_s0] ss:$8 sps:$4 sm:$0xff]   ;;  %s2148_s21 = sshll.u32 (%p2874_p5), %s2859_s15, 4  ;;  %s1370_s25 = ssub.s32 (%p2874_p5), 7, %s2111_s29 }
 0x120   : > { %1252 = vmatprep.subr.bf16.mxu0 %v2475_v28  ;;  %1295 = vmatprep.subr.bf16.mxu1 %v2477_v29  ;;  %s3854_s6 = scalar_lea.vmem (%p2874_p5), %s4238_s3, %s2148_s21   ;;  %p1371_p1 = scmp.lt.s32.totalorder (%p2874_p5), %s1370_s25, 4 }
 0x123   : > { %1253 = vmatpush1.bf16.msra.mxu0 %v2479_v30  ;;  %1296 = vmatpush1.bf16.msra.mxu1 %v2480_v31 }
 0x124   : > { %1254 = vmatprep.subr.bf16.mxu0 %v2481_v32  ;;  %1297 = vmatprep.subr.bf16.mxu1 %v2483_v33 }
 0x127   : > { %1255 = vmatpush1.bf16.msra.mxu0 %v2485_v34  ;;  %1298 = vmatpush1.bf16.msra.mxu1 %v2486_v35 }
 0x128   : > { %1256 = vmatprep.subr.bf16.mxu0 %v2487_v36  ;;  %1299 = vmatprep.subr.bf16.mxu1 %v2489_v37 }
 0x12b   : > { %1257 = vmatpush1.bf16.msra.mxu0 %v2491_v38  ;;  %1300 = vmatpush1.bf16.msra.mxu1 %v2492_v39 }
 0x12c   : > { %1258 = vmatprep.subr.bf16.mxu0 %v2493_v40  ;;  %1301 = vmatprep.subr.bf16.mxu1 %v2495_v41 }
 0x12f   : > { %1259 = vmatpush1.bf16.msra.mxu0 %v2497_v42  ;;  %1302 = vmatpush1.bf16.msra.mxu1 %v2498_v43 }
 0x130   : > { %1260 = vmatprep.subr.bf16.mxu0 %v2499_v44  ;;  %1303 = vmatprep.subr.bf16.mxu1 %v2501_v45 }
 0x133   : > { %1261 = vmatpush1.bf16.msra.mxu0 %v2503_v46  ;;  %1304 = vmatpush1.bf16.msra.mxu1 %v2504_v47 }
 0x134   : > { %1262 = vmatprep.subr.bf16.mxu0 %v2505_v48  ;;  %1305 = vmatprep.subr.bf16.mxu1 %v2507_v49 }
 0x137   : > { %1263 = vmatpush1.bf16.msra.mxu0 %v2509_v50  ;;  %1306 = vmatpush1.bf16.msra.mxu1 %v2510_v51 }
 0x138   : > { %1264 = vmatprep.subr.bf16.mxu0 %v2511_v52  ;;  %1307 = vmatprep.subr.bf16.mxu1 %v2513_v53 }
 0x13b   : > { %1265 = vmatpush1.bf16.msra.mxu0 %v2515_v54  ;;  %1308 = vmatpush1.bf16.msra.mxu1 %v2516_v55 }
 0x13c   : > { %1266 = vmatprep.subr.bf16.mxu0 %v2517_v56  ;;  %1309 = vmatprep.subr.bf16.mxu1 %v2519_v57 }
 0x13f   : > { %1267 = vmatpush1.bf16.msra.mxu0 %v2521_v58  ;;  %1310 = vmatpush1.bf16.msra.mxu1 %v2522_v59 }
 0x140   : > { %1268 = vmatprep.subr.bf16.mxu0 %v2523_v60  ;;  %1311 = vmatprep.subr.bf16.mxu1 %v2525_v61 }
 0x143   : > { %1269 = vmatpush1.bf16.msra.mxu0 %v2527_v62  ;;  %1312 = vmatpush1.bf16.msra.mxu1 %v2528_v63 }
 0x144   : > { %1270 = vmatprep.subr.bf16.mxu0 %v2529_v0  ;;  %1313 = vmatprep.subr.bf16.mxu1 %v2531_v1 }
 0x147   : > { %1271 = vmatpush1.bf16.msra.mxu0 %v2533_v2  ;;  %1314 = vmatpush1.bf16.msra.mxu1 %v2534_v3 }
 0x14a   : > { %1273 = vmatmul.mubr.bf16.vlgmr.msra.gmra.mrb[0].mxu0 %v2535_v4  ;;  %1316 = vmatmul.mubr.bf16.vlgmr.msra.gmra.mrb[0].mxu1 %v2535_v4 }
 0x187   : > { %v903_v5 = vpop.permute.xlu0 %902 }
 0x18b   : > { %v908_v6 = vpop.permute.xlu0 %907 }
 0x21d   : > { %v1274_v7 = vpop.f32.mrb[0].mxu0  ;;  %v1317_v8 = vpop.f32.mrb[0].mxu1 }
 0x21e   : > { %v1275_v9 = vadd.f32 %v1274_v7, %v903_v5  ;;  %v1318_v10 = vadd.f32 %v1317_v8, %v903_v5  ;;  %v1276_v11 = vpop.f32.mrb[1].mxu0  ;;  %v1319_v12 = vpop.f32.mrb[1].mxu1 }
 0x21f   : > { %v1277_v13 = vadd.f32 %v1276_v11, %v903_v5  ;;  %v1320_v14 = vadd.f32 %v1319_v12, %v903_v5  ;;  %v1278_v15 = vpop.f32.mrb[2].mxu0  ;;  %v1321_v16 = vpop.f32.mrb[2].mxu1 }
 0x220   : > { %v1326_v17 = vmax.f32 %v1275_v9, 0.0  ;;  %v1328_v18 = vmax.f32 %v1318_v10, 0.0  ;;  %v1279_v19 = vadd.f32 %v1278_v15, %v908_v6  ;;  %v1322_v20 = vadd.f32 %v1321_v16, %v908_v6  ;;  %v1280_v21 = vpop.f32.mrb[3].mxu0  ;;  %v1323_v22 = vpop.f32.mrb[3].mxu1 }
 0x221   : > { %v1327_v23 = vmax.f32 %v1277_v13, 0.0  ;;  %v1329_v24 = vmax.f32 %v1320_v14, 0.0  ;;  %v1281_v25 = vadd.f32 %v1280_v21, %v908_v6  ;;  %v1324_v26 = vadd.f32 %v1323_v22, %v908_v6  ;;  %1368 = sbr.rel (!%p2874_p5) target bundleno = 717 (0x2cd), region = 102 }
 0x222   : > { %v1330_v27 = vmax.f32 %v1279_v19, 0.0  ;;  %v1332_v28 = vmax.f32 %v1322_v20, 0.0 }
 0x223   : > { %v2144_v29 = vpack.c.bf16 %v1327_v23, %v1326_v17  ;;  %v2145_v30 = vpack.c.bf16 %v1329_v24, %v1328_v18  ;;  %v1331_v31 = vmax.f32 %v1281_v25, 0.0  ;;  %v1333_v32 = vmax.f32 %v1324_v26, 0.0 }
 0x225   : > { %1358 = vst [vmem:[%s3841_s12] sm:$0xff] %v2144_v29  ;;  %1359 = vst [vmem:[%s3841_s12 + $0x8] sm:$0xff] %v2145_v30  ;;  %v2146_v33 = vpack.c.bf16 %v1331_v31, %v1330_v27  ;;  %v2147_v34 = vpack.c.bf16 %v1333_v32, %v1332_v28 }
 0x227   : > { %1360 = vst [vmem:[%s3841_s12 + $0x10] sm:$0xff] %v2146_v33  ;;  %1361 = vst [vmem:[%s3841_s12 + $0x18] sm:$0xff] %v2147_v34 }
 0x228   : > { %s4286_s25 = smov (!%p1371_p1, %s1370_s25), 4 }
 0x229   : > { %s2112_s11 = sshll.u32 %s4286_s25, 7  ;;  %s3856_s5 = sshll.u32 %s4286_s25, 2 }
 0x22a   : > { %p2116_p2 = scmp.eq.s32.totalorder %s2112_s11, 0 }
 0x22b   : > { %p1381_p3 = scmp.lt.u32.totalorder (!%p2116_p2), %s3856_s5, 8 }
 0x22c   : > { %1380 = sbr.rel (%p2116_p2) target bundleno = 717 (0x2cd), region = 106 }
 0x233   : > { %1384 = sbr.rel (%p1381_p3) target bundleno = 708 (0x2c4), region = 110  ;;  %s3860_s20 = sand.u32 (!%p1381_p3), 7, %s3856_s5  }
 0x234   : > { %p1402_p5 = scmp.eq.s32.totalorder (!%p1381_p3), %s3860_s20, 0  ;;  %p2117_p4 = scmp.ne.s32.totalorder (!%p1381_p3), %s3860_s20, 0 }
 0x23a   : > { %1405 = sbr.rel (%p2117_p4) target bundleno = 637 (0x27d), region = 125  ;;  %s1406_s15 = sshrl.u32 (!%p2117_p4), %s3856_s5, 3 }
 0x23b   : > { %s3867_s22 = sshrl.u32 (!%p2117_p4), %s1406_s15, 5 }
 0x23c   : > { %p2118_p6 = scmp.le.s32.totalorder (!%p2117_p4), %s3867_s22, 0 }
 0x241   : > { %1935 = sbr.rel (%p2118_p6) target bundleno = 617 (0x269), region = 273  ;;  %s4260_s30 = smov (!%p2118_p6), %s3854_s6 }
 0x242   : > { %s4261_s24 = smov (!%p2118_p6), %s3841_s12  ;;  %s3876_s7 = smov (!%p2118_p6), 0  }
 0x243   : > { %s3878_s17 = smov (!%p2118_p6), 0  }
 0x248 LB: >> { %v1425_v35 = vld [vmem:[%s2760_s24 + $0x18] sm:$0xff]  ;;  %v1427_v36 = vld [vmem:[%s2760_s24 + $0x20] sm:$0xff]  ;;  %v1429_v37 = vld [vmem:[%s2760_s24 + $0x28] sm:$0xff]  ;;  %s1547_s28 = sadd.s32 1, %s2764_s7  ;;  %s1413_s17 = sadd.s32 1, %s2768_s17   ;;  %s2768_s17 = sphi %s3878_s17, %s1413_s17   ;;  %s2764_s7 = sphi %s3876_s7, %s4265_s7   ;;  %s2760_s24 = sphi %s4261_s24, %s4264_s24   ;;  %s2756_s30 = sphi %s4260_s30, %s4263_s30  }
 0x249   : >> { %1426 = vst [vmem:[%s2756_s30 + $0x18] sm:$0xff] %v1425_v35  ;;  %1428 = vst [vmem:[%s2756_s30 + $0x20] sm:$0xff] %v1427_v36  ;;  %v1431_v38 = vld [vmem:[%s2760_s24 + $0x30] sm:$0xff]  ;;  %v1433_v39 = vld [vmem:[%s2760_s24 + $0x38] sm:$0xff]  ;;  %p3919_p7 = scmp.ge.s32.totalorder %s1547_s28, %s3867_s22  ;;  %p1412_p8 = scmp.ge.s32.totalorder %s1413_s17, %s3867_s22 }
 0x24a   : >> { %1430 = vst [vmem:[%s2756_s30 + $0x28] sm:$0xff] %v1429_v37  ;;  %v1435_v40 = vld [vmem:[%s2760_s24 + $0x40] sm:$0xff]  ;;  %1432 = vst [vmem:[%s2756_s30 + $0x30] sm:$0xff] %v1431_v38  ;;  %v1437_v41 = vld [vmem:[%s2760_s24 + $0x48] sm:$0xff] }
 0x24b   : >> { %1434 = vst [vmem:[%s2756_s30 + $0x38] sm:$0xff] %v1433_v39  ;;  %1436 = vst [vmem:[%s2756_s30 + $0x40] sm:$0xff] %v1435_v40  ;;  %v1439_v42 = vld [vmem:[%s2760_s24 + $0x50] sm:$0xff]  ;;  %v1441_v43 = vld [vmem:[%s2760_s24 + $0x58] sm:$0xff]  ;;  %s4288_s28 = smov (%p3919_p7, %s1547_s28), 0 }
 0x24c   : >> { %1486 = vst [vmem:[%s2756_s30 + $0x24] sm:$0xff] %v1425_v35  ;;  %1438 = vst [vmem:[%s2756_s30 + $0x48] sm:$0xff] %v1437_v41  ;;  %v1443_v44 = vld [vmem:[%s2760_s24 + $0x60] sm:$0xff]  ;;  %v1445_v45 = vld [vmem:[%s2760_s24 + $0x68] sm:$0xff]  ;;  %s2119_s18 = sshll.u32 %s4288_s28, 8  ;;  %s4265_s7 = smov %s4288_s28 }
 0x24d   : >> { %1440 = vst [vmem:[%s2756_s30 + $0x50] sm:$0xff] %v1439_v42  ;;  %1442 = vst [vmem:[%s2756_s30 + $0x58] sm:$0xff] %v1441_v43  ;;  %v1447_v46 = vld [vmem:[%s2760_s24 + $0x70] sm:$0xff]  ;;  %v1449_v47 = vld [vmem:[%s2760_s24 + $0x78] sm:$0xff]  ;;  %s3974_s14 = scalar_lea.vmem %s3841_s12, %s2119_s18 [#allocation3]   ;;  %s3977_s9 = scalar_lea.vmem %s3854_s6, %s2119_s18  }
 0x24e   : >> { %1488 = vst [vmem:[%s2756_s30 + $0x2c] sm:$0xff] %v1427_v36  ;;  %1490 = vst [vmem:[%s2756_s30 + $0x34] sm:$0xff] %v1429_v37  ;;  %v1451_v48 = vld [vmem:[%s2760_s24 + $0x80] sm:$0xff]  ;;  %v1453_v49 = vld [vmem:[%s2760_s24 + $0x88] sm:$0xff] }
 0x24f   : >> { %1492 = vst [vmem:[%s2756_s30 + $0x3c] sm:$0xff] %v1431_v38  ;;  %1444 = vst [vmem:[%s2756_s30 + $0x60] sm:$0xff] %v1443_v44  ;;  %v1455_v50 = vld [vmem:[%s2760_s24 + $0x90] sm:$0xff]  ;;  %v1457_v51 = vld [vmem:[%s2760_s24 + $0x98] sm:$0xff] }
 0x250   : >> { %1446 = vst [vmem:[%s2756_s30 + $0x68] sm:$0xff] %v1445_v45  ;;  %1448 = vst [vmem:[%s2756_s30 + $0x70] sm:$0xff] %v1447_v46  ;;  %v1459_v52 = vld [vmem:[%s2760_s24 + $0xa0] sm:$0xff]  ;;  %v1461_v53 = vld [vmem:[%s2760_s24 + $0xa8] sm:$0xff] }
 0x251   : >> { %1494 = vst [vmem:[%s2756_s30 + $0x44] sm:$0xff] %v1433_v39  ;;  %1496 = vst [vmem:[%s2756_s30 + $0x4c] sm:$0xff] %v1435_v40  ;;  %v1463_v54 = vld [vmem:[%s2760_s24 + $0xb0] sm:$0xff]  ;;  %v1465_v55 = vld [vmem:[%s2760_s24 + $0xb8] sm:$0xff] }
 0x252   : >> { %1498 = vst [vmem:[%s2756_s30 + $0x54] sm:$0xff] %v1437_v41  ;;  %1450 = vst [vmem:[%s2756_s30 + $0x78] sm:$0xff] %v1449_v47  ;;  %v1467_v56 = vld [vmem:[%s2760_s24 + $0xc0] sm:$0xff]  ;;  %v1469_v57 = vld [vmem:[%s2760_s24 + $0xc8] sm:$0xff] }
 0x253   : >> { %1452 = vst [vmem:[%s2756_s30 + $0x80] sm:$0xff] %v1451_v48  ;;  %1454 = vst [vmem:[%s2756_s30 + $0x88] sm:$0xff] %v1453_v49  ;;  %v1471_v58 = vld [vmem:[%s2760_s24 + $0xd0] sm:$0xff]  ;;  %v1473_v59 = vld [vmem:[%s2760_s24 + $0xd8] sm:$0xff] }
 0x254   : >> { %1500 = vst [vmem:[%s2756_s30 + $0x5c] sm:$0xff] %v1439_v42  ;;  %1502 = vst [vmem:[%s2756_s30 + $0x64] sm:$0xff] %v1441_v43  ;;  %v1475_v60 = vld [vmem:[%s2760_s24 + $0xe0] sm:$0xff]  ;;  %v1477_v61 = vld [vmem:[%s2760_s24 + $0xe8] sm:$0xff] }
 0x255   : >> { %1504 = vst [vmem:[%s2756_s30 + $0x6c] sm:$0xff] %v1443_v44  ;;  %1456 = vst [vmem:[%s2756_s30 + $0x90] sm:$0xff] %v1455_v50  ;;  %v1479_v62 = vld [vmem:[%s2760_s24 + $0xf0] sm:$0xff]  ;;  %v1481_v63 = vld [vmem:[%s2760_s24 + $0xf8] sm:$0xff] }
 0x256   : >> { %1458 = vst [vmem:[%s2756_s30 + $0x98] sm:$0xff] %v1457_v51  ;;  %1460 = vst [vmem:[%s2756_s30 + $0xa0] sm:$0xff] %v1459_v52  ;;  %v1419_v0 = vld [vmem:[%s2760_s24] sm:$0xff]  ;;  %v1421_v1 = vld [vmem:[%s2760_s24 + $0x8] sm:$0xff] }
 0x257   : >> { %1506 = vst [vmem:[%s2756_s30 + $0x74] sm:$0xff] %v1445_v45  ;;  %1508 = vst [vmem:[%s2756_s30 + $0x7c] sm:$0xff] %v1447_v46  ;;  %v1423_v2 = vld [vmem:[%s2760_s24 + $0x10] sm:$0xff]  ;;  %v1543_v3 = vld [vmem:[%s2760_s24 + $0x100] sm:$0xff] }
 0x258   : >> { %1510 = vst [vmem:[%s2756_s30 + $0x84] sm:$0xff] %v1449_v47  ;;  %1462 = vst [vmem:[%s2756_s30 + $0xa8] sm:$0xff] %v1461_v53  ;;  %v1545_v4 = vld [vmem:[%s2760_s24 + $0x108] sm:$0xff]  ;;  %s4264_s24 = smov %s3974_s14 }
 0x259   : >> { %1464 = vst [vmem:[%s2756_s30 + $0xb0] sm:$0xff] %v1463_v54  ;;  %1466 = vst [vmem:[%s2756_s30 + $0xb8] sm:$0xff] %v1465_v55 }
 0x25a   : >> { %1512 = vst [vmem:[%s2756_s30 + $0x8c] sm:$0xff] %v1451_v48  ;;  %1514 = vst [vmem:[%s2756_s30 + $0x94] sm:$0xff] %v1453_v49 }
 0x25b   : >> { %1516 = vst [vmem:[%s2756_s30 + $0x9c] sm:$0xff] %v1455_v50  ;;  %1468 = vst [vmem:[%s2756_s30 + $0xc0] sm:$0xff] %v1467_v56 }
 0x25c   : >> { %1470 = vst [vmem:[%s2756_s30 + $0xc8] sm:$0xff] %v1469_v57  ;;  %1472 = vst [vmem:[%s2756_s30 + $0xd0] sm:$0xff] %v1471_v58 }
 0x25d   : >> { %1518 = vst [vmem:[%s2756_s30 + $0xa4] sm:$0xff] %v1457_v51  ;;  %1520 = vst [vmem:[%s2756_s30 + $0xac] sm:$0xff] %v1459_v52 }
 0x25e   : >> { %1522 = vst [vmem:[%s2756_s30 + $0xb4] sm:$0xff] %v1461_v53  ;;  %1474 = vst [vmem:[%s2756_s30 + $0xd8] sm:$0xff] %v1473_v59 }
 0x25f   : >> { %1476 = vst [vmem:[%s2756_s30 + $0xe0] sm:$0xff] %v1475_v60  ;;  %1478 = vst [vmem:[%s2756_s30 + $0xe8] sm:$0xff] %v1477_v61 }
 0x260   : >> { %1524 = vst [vmem:[%s2756_s30 + $0xbc] sm:$0xff] %v1463_v54  ;;  %1526 = vst [vmem:[%s2756_s30 + $0xc4] sm:$0xff] %v1465_v55 }
 0x261   : >> { %1528 = vst [vmem:[%s2756_s30 + $0xcc] sm:$0xff] %v1467_v56  ;;  %1480 = vst [vmem:[%s2756_s30 + $0xf0] sm:$0xff] %v1479_v62 }
 0x262   : >> { %1482 = vst [vmem:[%s2756_s30 + $0xf8] sm:$0xff] %v1481_v63  ;;  %1420 = vst [vmem:[%s2756_s30] sm:$0xff] %v1419_v0  ;;  %1415 = sbr.rel (!%p1412_p8) target bundleno = 584 (0x248), region = 279 }
 0x263   : >> { %1530 = vst [vmem:[%s2756_s30 + $0xd4] sm:$0xff] %v1469_v57  ;;  %1532 = vst [vmem:[%s2756_s30 + $0xdc] sm:$0xff] %v1471_v58 }
 0x264   : >> { %1534 = vst [vmem:[%s2756_s30 + $0xe4] sm:$0xff] %v1473_v59  ;;  %1542 = vst [vmem:[%s2756_s30 + $0x104] sm:$0xff] %v1481_v63 }
 0x265   : >> { %1422 = vst [vmem:[%s2756_s30 + $0x8] sm:$0xff] %v1421_v1  ;;  %1424 = vst [vmem:[%s2756_s30 + $0x10] sm:$0xff] %v1423_v2 }
 0x266   : >> { %1484 = vst [vmem:[%s2756_s30 + $0x1c] sm:$0xff] %v1423_v2  ;;  %1536 = vst [vmem:[%s2756_s30 + $0xec] sm:$0xff] %v1475_v60 }
 0x267   : >> { %1538 = vst [vmem:[%s2756_s30 + $0xf4] sm:$0xff] %v1477_v61  ;;  %1540 = vst [vmem:[%s2756_s30 + $0xfc] sm:$0xff] %v1479_v62 }
 0x268   : >> { %1544 = vst [vmem:[%s2756_s30 + $0x10c] sm:$0xff] %v1543_v3  ;;  %1546 = vst [vmem:[%s2756_s30 + $0x114] sm:$0xff] %v1545_v4  ;;  %s4263_s30 = smov %s3977_s9 }
 0x269 PF: > { %s4022_s23 = sand.u32 31, %s1406_s15   ;;  %s2149_s26 = sshll.u32 %s3867_s22, 12 }
 0x26a   : > { %s1558_s27 = sshra.s32 %s2149_s26, 4  ;;  %p2124_p9 = scmp.le.s32.totalorder %s4022_s23, 0 }
 0x26b   : > { %s4026_s29 = scalar_lea.vmem %s3841_s12, %s1558_s27 [#allocation3]   ;;  %s1562_s21 = scalar_lea.vmem %s3854_s6, %s1558_s27  }
 0x26c   : > { %1949 = sbr.rel (%p2124_p9) target bundleno = 637 (0x27d), region = 284  ;;  %s2770_s25 = smov (!%p2124_p9), %s1562_s21  }
 0x26d   : > { %s2774_s8 = smov (!%p2124_p9), %s4026_s29   ;;  %s2778_s10 = smov (!%p2124_p9), 0  }
 0x26e   : > { %s2782_s11 = smov (!%p2124_p9), 0  }
 0x273 LB: >> { %v1574_v5 = vld [vmem:[%s2776_s8] sm:$0xff]  ;;  %v1576_v6 = vld [vmem:[%s2776_s8 + $0x10] sm:$0xff]  ;;  %s1578_s15 = sadd.s32 1, %s2780_s10  ;;  %s1568_s11 = sadd.s32 1, %s2784_s11   ;;  %s2784_s11 = sphi %s2782_s11, %s1568_s11   ;;  %s2780_s10 = sphi %s2778_s10, %s2779_s10   ;;  %s2776_s8 = sphi %s2774_s8, %s1583_s8   ;;  %s2772_s25 = sphi %s2770_s25, %s1584_s25  }
 0x274   : >> { %1575 = vst [vmem:[%s2772_s25] sm:$0xff] %v1574_v5  ;;  %1577 = vst [vmem:[%s2772_s25 + $0x1c] sm:$0xff] %v1576_v6  ;;  %p1579_p10 = scmp.ge.s32.totalorder %s1578_s15, %s4022_s23  ;;  %p1567_p11 = scmp.ge.s32.totalorder %s1568_s11, %s4022_s23 }
 0x276   : >> { %s4290_s15 = smov (%p1579_p10, %s1578_s15), 0  ;;  %1570 = sbr.rel (!%p1567_p11) target bundleno = 627 (0x273), region = 290 }
 0x277   : >> { %s2125_s22 = sshll.u32 %s4290_s15, 3  ;;  %s2779_s10 = smov %s4290_s15  }
 0x278   : >> { %s1583_s8 = scalar_lea.vmem %s4026_s29, %s2125_s22 [#allocation3]   ;;  %s1584_s25 = scalar_lea.vmem %s1562_s21, %s2125_s22  }
 0x27d PF: > { %1587 = sbr.rel (%p1402_p5) target bundleno = 708 (0x2c4), region = 143  ;;  %s1589_s30 = ssub.s32 (!%p1402_p5), %s3856_s5, %s3860_s20 }
 0x27e   : > { %s1593_s24 = sshrl.u32 (!%p1402_p5), %s3856_s5, 3  ;;  %s4040_s7 = scalar_lea.vmem (!%p1402_p5), %s3841_s12, %s1589_s30 [#allocation3] }
 0x27f   : > { %s4043_s17 = scalar_lea.vmem (!%p1402_p5), %s3854_s6, %s1589_s30  ;;  %s4047_s28 = sshrl.u32 (!%p1402_p5), %s1593_s24, 5 }
 0x280   : > { %p2127_p12 = scmp.le.s32.totalorder (!%p1402_p5), %s4047_s28, 0 }
 0x284   : > { %1963 = sbr.rel (%p2127_p12) target bundleno = 684 (0x2ac), region = 295  ;;  %s4266_s4 = smov (!%p2127_p12), %s3854_s6 }
 0x285   : > { %s4267_s18 = smov (!%p2127_p12), %s3841_s12  ;;  %s4056_s14 = smov (!%p2127_p12), 0  }
 0x286   : > { %s4058_s9 = smov (!%p2127_p12), 0  }
 0x28b LB: >> { %v1612_v7 = vld [vmem:[%s2792_s18 + $0x18] sm:$0xff]  ;;  %v1614_v8 = vld [vmem:[%s2792_s18 + $0x20] sm:$0xff]  ;;  %v1616_v9 = vld [vmem:[%s2792_s18 + $0x28] sm:$0xff]  ;;  %s1734_s23 = sadd.s32 1, %s2796_s14  ;;  %s1600_s9 = sadd.s32 1, %s2800_s9   ;;  %s2800_s9 = sphi %s4058_s9, %s1600_s9   ;;  %s2796_s14 = sphi %s4056_s14, %s4271_s14   ;;  %s2792_s18 = sphi %s4267_s18, %s4270_s18   ;;  %s2788_s4 = sphi %s4266_s4, %s4269_s4  }
 0x28c   : >> { %1613 = vst [vmem:[%s2788_s4 + $0x18] sm:$0xff] %v1612_v7  ;;  %1615 = vst [vmem:[%s2788_s4 + $0x20] sm:$0xff] %v1614_v8  ;;  %v1618_v10 = vld [vmem:[%s2792_s18 + $0x30] sm:$0xff]  ;;  %v1620_v11 = vld [vmem:[%s2792_s18 + $0x38] sm:$0xff]  ;;  %p4099_p13 = scmp.ge.s32.totalorder %s1734_s23, %s4047_s28  ;;  %p1599_p0 = scmp.ge.s32.totalorder %s1600_s9, %s4047_s28 }
 0x28d   : >> { %1617 = vst [vmem:[%s2788_s4 + $0x28] sm:$0xff] %v1616_v9  ;;  %v1622_v12 = vld [vmem:[%s2792_s18 + $0x40] sm:$0xff]  ;;  %1619 = vst [vmem:[%s2788_s4 + $0x30] sm:$0xff] %v1618_v10  ;;  %v1624_v13 = vld [vmem:[%s2792_s18 + $0x48] sm:$0xff] }
 0x28e   : >> { %1621 = vst [vmem:[%s2788_s4 + $0x38] sm:$0xff] %v1620_v11  ;;  %1623 = vst [vmem:[%s2788_s4 + $0x40] sm:$0xff] %v1622_v12  ;;  %v1626_v14 = vld [vmem:[%s2792_s18 + $0x50] sm:$0xff]  ;;  %v1628_v15 = vld [vmem:[%s2792_s18 + $0x58] sm:$0xff]  ;;  %s4292_s23 = smov (%p4099_p13, %s1734_s23), 0 }
 0x28f   : >> { %1673 = vst [vmem:[%s2788_s4 + $0x24] sm:$0xff] %v1612_v7  ;;  %1625 = vst [vmem:[%s2788_s4 + $0x48] sm:$0xff] %v1624_v13  ;;  %v1630_v16 = vld [vmem:[%s2792_s18 + $0x60] sm:$0xff]  ;;  %v1632_v17 = vld [vmem:[%s2792_s18 + $0x68] sm:$0xff]  ;;  %s2128_s27 = sshll.u32 %s4292_s23, 8  ;;  %s4271_s14 = smov %s4292_s23 }
 0x290   : >> { %1627 = vst [vmem:[%s2788_s4 + $0x50] sm:$0xff] %v1626_v14  ;;  %1629 = vst [vmem:[%s2788_s4 + $0x58] sm:$0xff] %v1628_v15  ;;  %v1634_v18 = vld [vmem:[%s2792_s18 + $0x70] sm:$0xff]  ;;  %v1636_v19 = vld [vmem:[%s2792_s18 + $0x78] sm:$0xff]  ;;  %s4154_s29 = scalar_lea.vmem %s3841_s12, %s2128_s27 [#allocation3]   ;;  %s4157_s21 = scalar_lea.vmem %s3854_s6, %s2128_s27  }
 0x291   : >> { %1675 = vst [vmem:[%s2788_s4 + $0x2c] sm:$0xff] %v1614_v8  ;;  %1677 = vst [vmem:[%s2788_s4 + $0x34] sm:$0xff] %v1616_v9  ;;  %v1638_v20 = vld [vmem:[%s2792_s18 + $0x80] sm:$0xff]  ;;  %v1640_v21 = vld [vmem:[%s2792_s18 + $0x88] sm:$0xff] }
 0x292   : >> { %1679 = vst [vmem:[%s2788_s4 + $0x3c] sm:$0xff] %v1618_v10  ;;  %1631 = vst [vmem:[%s2788_s4 + $0x60] sm:$0xff] %v1630_v16  ;;  %v1642_v22 = vld [vmem:[%s2792_s18 + $0x90] sm:$0xff]  ;;  %v1644_v23 = vld [vmem:[%s2792_s18 + $0x98] sm:$0xff] }
 0x293   : >> { %1633 = vst [vmem:[%s2788_s4 + $0x68] sm:$0xff] %v1632_v17  ;;  %1635 = vst [vmem:[%s2788_s4 + $0x70] sm:$0xff] %v1634_v18  ;;  %v1646_v24 = vld [vmem:[%s2792_s18 + $0xa0] sm:$0xff]  ;;  %v1648_v25 = vld [vmem:[%s2792_s18 + $0xa8] sm:$0xff] }
 0x294   : >> { %1681 = vst [vmem:[%s2788_s4 + $0x44] sm:$0xff] %v1620_v11  ;;  %1683 = vst [vmem:[%s2788_s4 + $0x4c] sm:$0xff] %v1622_v12  ;;  %v1650_v26 = vld [vmem:[%s2792_s18 + $0xb0] sm:$0xff]  ;;  %v1652_v27 = vld [vmem:[%s2792_s18 + $0xb8] sm:$0xff] }
 0x295   : >> { %1685 = vst [vmem:[%s2788_s4 + $0x54] sm:$0xff] %v1624_v13  ;;  %1637 = vst [vmem:[%s2788_s4 + $0x78] sm:$0xff] %v1636_v19  ;;  %v1654_v28 = vld [vmem:[%s2792_s18 + $0xc0] sm:$0xff]  ;;  %v1656_v29 = vld [vmem:[%s2792_s18 + $0xc8] sm:$0xff] }
 0x296   : >> { %1639 = vst [vmem:[%s2788_s4 + $0x80] sm:$0xff] %v1638_v20  ;;  %1641 = vst [vmem:[%s2788_s4 + $0x88] sm:$0xff] %v1640_v21  ;;  %v1658_v30 = vld [vmem:[%s2792_s18 + $0xd0] sm:$0xff]  ;;  %v1660_v31 = vld [vmem:[%s2792_s18 + $0xd8] sm:$0xff] }
 0x297   : >> { %1687 = vst [vmem:[%s2788_s4 + $0x5c] sm:$0xff] %v1626_v14  ;;  %1689 = vst [vmem:[%s2788_s4 + $0x64] sm:$0xff] %v1628_v15  ;;  %v1662_v32 = vld [vmem:[%s2792_s18 + $0xe0] sm:$0xff]  ;;  %v1664_v33 = vld [vmem:[%s2792_s18 + $0xe8] sm:$0xff] }
 0x298   : >> { %1691 = vst [vmem:[%s2788_s4 + $0x6c] sm:$0xff] %v1630_v16  ;;  %1643 = vst [vmem:[%s2788_s4 + $0x90] sm:$0xff] %v1642_v22  ;;  %v1666_v34 = vld [vmem:[%s2792_s18 + $0xf0] sm:$0xff]  ;;  %v1668_v35 = vld [vmem:[%s2792_s18 + $0xf8] sm:$0xff] }
 0x299   : >> { %1645 = vst [vmem:[%s2788_s4 + $0x98] sm:$0xff] %v1644_v23  ;;  %1647 = vst [vmem:[%s2788_s4 + $0xa0] sm:$0xff] %v1646_v24  ;;  %v1606_v36 = vld [vmem:[%s2792_s18] sm:$0xff]  ;;  %v1608_v37 = vld [vmem:[%s2792_s18 + $0x8] sm:$0xff] }
 0x29a   : >> { %1693 = vst [vmem:[%s2788_s4 + $0x74] sm:$0xff] %v1632_v17  ;;  %1695 = vst [vmem:[%s2788_s4 + $0x7c] sm:$0xff] %v1634_v18  ;;  %v1610_v38 = vld [vmem:[%s2792_s18 + $0x10] sm:$0xff]  ;;  %v1730_v39 = vld [vmem:[%s2792_s18 + $0x100] sm:$0xff] }
 0x29b   : >> { %1697 = vst [vmem:[%s2788_s4 + $0x84] sm:$0xff] %v1636_v19  ;;  %1649 = vst [vmem:[%s2788_s4 + $0xa8] sm:$0xff] %v1648_v25  ;;  %v1732_v40 = vld [vmem:[%s2792_s18 + $0x108] sm:$0xff]  ;;  %s4270_s18 = smov %s4154_s29 }
 0x29c   : >> { %1651 = vst [vmem:[%s2788_s4 + $0xb0] sm:$0xff] %v1650_v26  ;;  %1653 = vst [vmem:[%s2788_s4 + $0xb8] sm:$0xff] %v1652_v27 }
 0x29d   : >> { %1699 = vst [vmem:[%s2788_s4 + $0x8c] sm:$0xff] %v1638_v20  ;;  %1701 = vst [vmem:[%s2788_s4 + $0x94] sm:$0xff] %v1640_v21 }
 0x29e   : >> { %1703 = vst [vmem:[%s2788_s4 + $0x9c] sm:$0xff] %v1642_v22  ;;  %1655 = vst [vmem:[%s2788_s4 + $0xc0] sm:$0xff] %v1654_v28 }
 0x29f   : >> { %1657 = vst [vmem:[%s2788_s4 + $0xc8] sm:$0xff] %v1656_v29  ;;  %1659 = vst [vmem:[%s2788_s4 + $0xd0] sm:$0xff] %v1658_v30 }
 0x2a0   : >> { %1705 = vst [vmem:[%s2788_s4 + $0xa4] sm:$0xff] %v1644_v23  ;;  %1707 = vst [vmem:[%s2788_s4 + $0xac] sm:$0xff] %v1646_v24 }
 0x2a1   : >> { %1709 = vst [vmem:[%s2788_s4 + $0xb4] sm:$0xff] %v1648_v25  ;;  %1661 = vst [vmem:[%s2788_s4 + $0xd8] sm:$0xff] %v1660_v31 }
 0x2a2   : >> { %1663 = vst [vmem:[%s2788_s4 + $0xe0] sm:$0xff] %v1662_v32  ;;  %1665 = vst [vmem:[%s2788_s4 + $0xe8] sm:$0xff] %v1664_v33 }
 0x2a3   : >> { %1711 = vst [vmem:[%s2788_s4 + $0xbc] sm:$0xff] %v1650_v26  ;;  %1713 = vst [vmem:[%s2788_s4 + $0xc4] sm:$0xff] %v1652_v27 }
 0x2a4   : >> { %1715 = vst [vmem:[%s2788_s4 + $0xcc] sm:$0xff] %v1654_v28  ;;  %1667 = vst [vmem:[%s2788_s4 + $0xf0] sm:$0xff] %v1666_v34 }
 0x2a5   : >> { %1669 = vst [vmem:[%s2788_s4 + $0xf8] sm:$0xff] %v1668_v35  ;;  %1607 = vst [vmem:[%s2788_s4] sm:$0xff] %v1606_v36  ;;  %1602 = sbr.rel (!%p1599_p0) target bundleno = 651 (0x28b), region = 301 }
 0x2a6   : >> { %1717 = vst [vmem:[%s2788_s4 + $0xd4] sm:$0xff] %v1656_v29  ;;  %1719 = vst [vmem:[%s2788_s4 + $0xdc] sm:$0xff] %v1658_v30 }
 0x2a7   : >> { %1721 = vst [vmem:[%s2788_s4 + $0xe4] sm:$0xff] %v1660_v31  ;;  %1729 = vst [vmem:[%s2788_s4 + $0x104] sm:$0xff] %v1668_v35 }
 0x2a8   : >> { %1609 = vst [vmem:[%s2788_s4 + $0x8] sm:$0xff] %v1608_v37  ;;  %1611 = vst [vmem:[%s2788_s4 + $0x10] sm:$0xff] %v1610_v38 }
 0x2a9   : >> { %1671 = vst [vmem:[%s2788_s4 + $0x1c] sm:$0xff] %v1610_v38  ;;  %1723 = vst [vmem:[%s2788_s4 + $0xec] sm:$0xff] %v1662_v32 }
 0x2aa   : >> { %1725 = vst [vmem:[%s2788_s4 + $0xf4] sm:$0xff] %v1664_v33  ;;  %1727 = vst [vmem:[%s2788_s4 + $0xfc] sm:$0xff] %v1666_v34 }
 0x2ab   : >> { %1731 = vst [vmem:[%s2788_s4 + $0x10c] sm:$0xff] %v1730_v39  ;;  %1733 = vst [vmem:[%s2788_s4 + $0x114] sm:$0xff] %v1732_v40  ;;  %s4269_s4 = smov %s4157_s21 }
 0x2ac PF: > { %s4202_s25 = sand.u32 31, %s1593_s24   ;;  %s2151_s8 = sshll.u32 %s4047_s28, 12 }
 0x2ad   : > { %s1745_s10 = sshra.s32 %s2151_s8, 4  ;;  %p2133_p1 = scmp.le.s32.totalorder %s4202_s25, 0 }
 0x2ae   : > { %s4206_s11 = scalar_lea.vmem %s3841_s12, %s1745_s10 [#allocation3]   ;;  %s1749_s15 = scalar_lea.vmem %s3854_s6, %s1745_s10  }
 0x2af   : > { %1977 = sbr.rel (%p2133_p1) target bundleno = 704 (0x2c0), region = 306  ;;  %s2802_s22 = smov (!%p2133_p1), %s1749_s15  }
 0x2b0   : > { %s2806_s30 = smov (!%p2133_p1), %s4206_s11   ;;  %s2810_s9 = smov (!%p2133_p1), 0  }
 0x2b1   : > { %s2814_s4 = smov (!%p2133_p1), 0  }
 0x2b6 LB: >> { %v1761_v41 = vld [vmem:[%s2808_s30] sm:$0xff]  ;;  %v1763_v42 = vld [vmem:[%s2808_s30 + $0x10] sm:$0xff]  ;;  %s1765_s24 = sadd.s32 1, %s2812_s9  ;;  %s1755_s4 = sadd.s32 1, %s2816_s4   ;;  %s2816_s4 = sphi %s2814_s4, %s1755_s4   ;;  %s2812_s9 = sphi %s2810_s9, %s2811_s9   ;;  %s2808_s30 = sphi %s2806_s30, %s1770_s30   ;;  %s2804_s22 = sphi %s2802_s22, %s1771_s22  }
 0x2b7   : >> { %1762 = vst [vmem:[%s2804_s22] sm:$0xff] %v1761_v41  ;;  %1764 = vst [vmem:[%s2804_s22 + $0x1c] sm:$0xff] %v1763_v42  ;;  %p1766_p2 = scmp.ge.s32.totalorder %s1765_s24, %s4202_s25  ;;  %p1754_p3 = scmp.ge.s32.totalorder %s1755_s4, %s4202_s25 }
 0x2b9   : >> { %s4294_s24 = smov (%p1766_p2, %s1765_s24), 0  ;;  %1757 = sbr.rel (!%p1754_p3) target bundleno = 694 (0x2b6), region = 312 }
 0x2ba   : >> { %s2134_s28 = sshll.u32 %s4294_s24, 3  ;;  %s2811_s9 = smov %s4294_s24  }
 0x2bb   : >> { %s1770_s30 = scalar_lea.vmem %s4206_s11, %s2134_s28 [#allocation3]   ;;  %s1771_s22 = scalar_lea.vmem %s1749_s15, %s2134_s28  }
 0x2c0 PF: > { %s2821_s18 = smov 0  }
 0x2c1   : > { %s1772_s14 = sshllo.u32 %s2821_s18, %s3860_s20 }
 0x2c2   : > { %v1781_v43 = vld [vmem:[%s4040_s7] sm:%s1772_s14]  ;;  %v1783_v44 = vld [vmem:[%s4040_s7 + $0x10] sm:%s1772_s14] }
 0x2c3   : > { %1782 = vst [vmem:[%s4043_s17] sm:%s1772_s14] %v1781_v43  ;;  %1784 = vst [vmem:[%s4043_s17 + $0x1c] sm:%s1772_s14] %v1783_v44 }
 0x2c4 PF: > { %p2136_p5 = scmp.ge.u32.totalorder %s3856_s5, 8 }
 0x2c5   : > { %s2822_s23 = smov (!%p2136_p5), 0  }
 0x2c6   : > { %1387 = sbr.rel (%p2136_p5) target bundleno = 717 (0x2cd), region = 114  ;;  %s1388_s26 = sshllo.u32 (!%p2136_p5), %s2822_s23, %s3856_s5 }
 0x2c7   : > { %v1397_v45 = vld [vmem:[%s3841_s12] sm:%s1388_s26] (!%p2136_p5)  ;;  %v1399_v46 = vld [vmem:[%s3841_s12 + $0x10] sm:%s1388_s26] (!%p2136_p5) }
 0x2c8   : > { %1398 = vst [vmem:[%s3854_s6] sm:%s1388_s26] (!%p2136_p5), %v1397_v45  ;;  %1400 = vst [vmem:[%s3854_s6 + $0x1c] sm:%s1388_s26] (!%p2136_p5), %v1399_v46 }
 0x2cd PF: > { %p10_p4 = scmp.ge.s32.totalorder %s2862_s16, 4   ;;  %s4272_s12 = smov %s2684_s13 }
 0x2ce   : > { %s4273_s13 = smov %s2872_s19  ;;  %s4274_s14 = smov %s2862_s16 }
 0x2cf   :  { %12 = sbr.rel (!%p10_p4) target bundleno = 2 (0x2), region = 323 }

// kernel: estimator_forward.4
= control target key start
LH: loop header
LB: loop body
LE: loop exit
PB: predicated region body
PF: predicated region fallthrough
CT: control target
= control target key end

     0   :  { %s886_s12 = smov 0   ;;  %s888_s13 = smov 0   ;;  %s1060_s0 = inlined_call_operand.vmem [shape: bf16[32,256], index: 0, kind: input, shape index: {}]   ;;  %s1061_s1 = inlined_call_operand.vmem [shape: bf16[256,162], index: 1, kind: input, shape index: {}]   ;;  %s1062_s2 = inlined_call_operand.vmem [shape: f32[32,1], index: 2, kind: input, shape index: {}]   ;;  %s1063_s3 = inlined_call_operand.vmem [shape: bf16[32,162], index: 3, kind: output, shape index: {}]  }
   0x1   :  { %s890_s14 = smov 0  }
   0x2 LB: > { %s696_s15 = sadd.s32 4294967295, %s863_s14   ;;  %s903_s16 = sadd.s32 1, %s863_s14   ;;  %s863_s14 = sphi %s890_s14, %s1067_s14   ;;  %s859_s13 = sphi %s888_s13, %s1066_s13   ;;  %s855_s12 = sphi %s886_s12, %s1065_s12  }
   0x3   : > { %s38_s17 = ssub.s32 %s863_s14, %s903_s16  ;;  %s41_s18 = sadd.s32 1, %s859_s13 }
   0x4   : > { %p39_p0 = scmp.eq.s32.totalorder %s38_s17, 0  ;;  %p48_p1 = scmp.ne.s32.totalorder %s859_s13, %s855_s12 }
   0x5   : > { %p49_p2 = scmp.eq.s32.totalorder %s863_s14, 0  ;;  %p99_p3 = scmp.eq.s32.totalorder %s696_s15, 1 }
   0x6   : > { %s914_s19 = scalar_select %p39_p0, %s859_s13, %s41_s18  }
   0x7   : > { %p50_p4 = por %p49_p2, %p48_p1  ;;  %p916_p5 = por %p99_p3, %p48_p1 }
   0x8   : > { %p699_p6 = scmp.ge.s32.totalorder %s863_s14, 2 }
   0xa   : > { %127 = sbr.rel (%p699_p6) target bundleno = 42 (0x2a), region = 24 }
  0x11   : > { %130 = sbr.rel (!%p50_p4) target bundleno = 42 (0x2a), region = 28  ;;  %s132_s21 = sand.u32 (%p50_p4), 1, %s859_s13  }
  0x12   : > { %s701_s22 = sshll.u32 (%p50_p4), %s863_s14, 2  ;;  %s700_s23 = sshll.u32 (%p50_p4), %s132_s21, 7 }
  0x13   : > { %s926_s26 = scalar_lea.vmem (%p50_p4), %s1061_s1, %s701_s22  ;;  %s930_s27 = scalar_lea.vmem (%p50_p4), [#allocation2], %s700_s23 }
  0x14   : > { %v152_v0 = vld [vmem:[%s926_s26] sm:$0xf] (%p50_p4)  ;;  %v154_v1 = vld [vmem:[%s926_s26 + $0x8] sm:$0xf] (%p50_p4)  ;;  %v156_v2 = vld [vmem:[%s926_s26 + $0x10] sm:$0xf] (%p50_p4) }
  0x15   : > { %153 = vst [vmem:[%s930_s27] sm:$0xf] (%p50_p4), %v152_v0  ;;  %155 = vst [vmem:[%s930_s27 + $0x4] sm:$0xf] (%p50_p4), %v154_v1  ;;  %v158_v3 = vld [vmem:[%s926_s26 + $0x18] sm:$0xf] (%p50_p4) }
  0x16   : > { %v160_v4 = vld [vmem:[%s926_s26 + $0x20] sm:$0xf] (%p50_p4)  ;;  %157 = vst [vmem:[%s930_s27 + $0x8] sm:$0xf] (%p50_p4), %v156_v2  ;;  %159 = vst [vmem:[%s930_s27 + $0xc] sm:$0xf] (%p50_p4), %v158_v3 }
  0x17   : > { %161 = vst [vmem:[%s930_s27 + $0x10] sm:$0xf] (%p50_p4), %v160_v4  ;;  %v162_v5 = vld [vmem:[%s926_s26 + $0x28] sm:$0xf] (%p50_p4)  ;;  %v164_v6 = vld [vmem:[%s926_s26 + $0x30] sm:$0xf] (%p50_p4) }
  0x18   : > { %v166_v7 = vld [vmem:[%s926_s26 + $0x38] sm:$0xf]  ;;  %163 = vst [vmem:[%s930_s27 + $0x14] sm:$0xf] %v162_v5  ;;  %165 = vst [vmem:[%s930_s27 + $0x18] sm:$0xf] %v164_v6 }
  0x19   : > { %167 = vst [vmem:[%s930_s27 + $0x1c] sm:$0xf] %v166_v7  ;;  %v168_v8 = vld [vmem:[%s926_s26 + $0x40] sm:$0xf]  ;;  %v170_v9 = vld [vmem:[%s926_s26 + $0x48] sm:$0xf] }
  0x1a   : > { %v172_v10 = vld [vmem:[%s926_s26 + $0x50] sm:$0xf]  ;;  %169 = vst [vmem:[%s930_s27 + $0x20] sm:$0xf] %v168_v8  ;;  %171 = vst [vmem:[%s930_s27 + $0x24] sm:$0xf] %v170_v9 }
  0x1b   : > { %173 = vst [vmem:[%s930_s27 + $0x28] sm:$0xf] %v172_v10  ;;  %v174_v11 = vld [vmem:[%s926_s26 + $0x58] sm:$0xf]  ;;  %v176_v12 = vld [vmem:[%s926_s26 + $0x60] sm:$0xf] }
  0x1c   : > { %v178_v13 = vld [vmem:[%s926_s26 + $0x68] sm:$0xf]  ;;  %175 = vst [vmem:[%s930_s27 + $0x2c] sm:$0xf] %v174_v11  ;;  %177 = vst [vmem:[%s930_s27 + $0x30] sm:$0xf] %v176_v12 }
  0x1d   : > { %179 = vst [vmem:[%s930_s27 + $0x34] sm:$0xf] %v178_v13  ;;  %v180_v14 = vld [vmem:[%s926_s26 + $0x70] sm:$0xf]  ;;  %v182_v15 = vld [vmem:[%s926_s26 + $0x78] sm:$0xf] }
  0x1e   : > { %v184_v16 = vld [vmem:[%s926_s26 + $0x80] sm:$0xf]  ;;  %181 = vst [vmem:[%s930_s27 + $0x38] sm:$0xf] %v180_v14  ;;  %183 = vst [vmem:[%s930_s27 + $0x3c] sm:$0xf] %v182_v15 }
  0x1f   : > { %185 = vst [vmem:[%s930_s27 + $0x40] sm:$0xf] %v184_v16  ;;  %v186_v17 = vld [vmem:[%s926_s26 + $0x88] sm:$0xf]  ;;  %v188_v18 = vld [vmem:[%s926_s26 + $0x90] sm:$0xf] }
  0x20   : > { %v190_v19 = vld [vmem:[%s926_s26 + $0x98] sm:$0xf]  ;;  %187 = vst [vmem:[%s930_s27 + $0x44] sm:$0xf] %v186_v17  ;;  %189 = vst [vmem:[%s930_s27 + $0x48] sm:$0xf] %v188_v18 }
  0x21   : > { %191 = vst [vmem:[%s930_s27 + $0x4c] sm:$0xf] %v190_v19  ;;  %v192_v20 = vld [vmem:[%s926_s26 + $0xa0] sm:$0xf]  ;;  %v194_v21 = vld [vmem:[%s926_s26 + $0xa8] sm:$0xf] }
  0x22   : > { %v196_v22 = vld [vmem:[%s926_s26 + $0xb0] sm:$0xf]  ;;  %193 = vst [vmem:[%s930_s27 + $0x50] sm:$0xf] %v192_v20  ;;  %195 = vst [vmem:[%s930_s27 + $0x54] sm:$0xf] %v194_v21 }
  0x23   : > { %197 = vst [vmem:[%s930_s27 + $0x58] sm:$0xf] %v196_v22  ;;  %v198_v23 = vld [vmem:[%s926_s26 + $0xb8] sm:$0xf]  ;;  %v200_v24 = vld [vmem:[%s926_s26 + $0xc0] sm:$0xf] }
  0x24   : > { %v202_v25 = vld [vmem:[%s926_s26 + $0xc8] sm:$0xf]  ;;  %199 = vst [vmem:[%s930_s27 + $0x5c] sm:$0xf] %v198_v23  ;;  %201 = vst [vmem:[%s930_s27 + $0x60] sm:$0xf] %v200_v24 }
  0x25   : > { %203 = vst [vmem:[%s930_s27 + $0x64] sm:$0xf] %v202_v25  ;;  %v204_v26 = vld [vmem:[%s926_s26 + $0xd0] sm:$0xf]  ;;  %v206_v27 = vld [vmem:[%s926_s26 + $0xd8] sm:$0xf] }
  0x26   : > { %v208_v28 = vld [vmem:[%s926_s26 + $0xe0] sm:$0xf]  ;;  %205 = vst [vmem:[%s930_s27 + $0x68] sm:$0xf] %v204_v26  ;;  %207 = vst [vmem:[%s930_s27 + $0x6c] sm:$0xf] %v206_v27 }
  0x27   : > { %209 = vst [vmem:[%s930_s27 + $0x70] sm:$0xf] %v208_v28  ;;  %v210_v29 = vld [vmem:[%s926_s26 + $0xe8] sm:$0xf]  ;;  %v212_v30 = vld [vmem:[%s926_s26 + $0xf0] sm:$0xf] }
  0x28   : > { %v214_v31 = vld [vmem:[%s926_s26 + $0xf8] sm:$0xf]  ;;  %211 = vst [vmem:[%s930_s27 + $0x74] sm:$0xf] %v210_v29  ;;  %213 = vst [vmem:[%s930_s27 + $0x78] sm:$0xf] %v212_v30 }
  0x29   : > { %215 = vst [vmem:[%s930_s27 + $0x7c] sm:$0xf] %v214_v31 }
  0x2a PF: > { %p702_p7 = scmp.ge.s32.totalorder %s863_s14, 1  ;;  %p301_p8 = scmp.lt.s32.totalorder %s863_s14, 3 }
  0x2c   : > { %p302_p9 = pnand %p702_p7, %p301_p8 }
  0x2d   : > { %s308_s28 = sand.u32 (!%p302_p9), 1, %s855_s12   ;;  %v837_v32 = vld [vmem:[%s1060_s0 + $0x4] ss:$8 sps:$4 sm:$0xff] (!%p302_p9)   ;;  %v865_v33 = vmov (!%p302_p9), 0   ;;  %v840_v34 = vld [vmem:[%s1060_s0 + $0x14] ss:$8 sps:$4 sm:$0xff] (!%p302_p9)  }
  0x2e   : > { %305 = sbr.rel (%p302_p9) target bundleno = 314 (0x13a), region = 69  ;;  %s703_s29 = sshll.u32 (!%p302_p9), %s308_s28, 7  ;;  %818 = vset.pattern.permute.xlu1 (!%p302_p9), %v865_v33  ;;  %817 = vset.pattern.permute.xlu0 (!%p302_p9), %v865_v33  ;;  %v369_v35 = vld [vmem:[%s1062_s2 + $0x10] sm:$0xff] (!%p302_p9)  ;;  %v367_v47 = vld [vmem:[%s1062_s2] sm:$0xff] (!%p302_p9)  ;;  %v370_v48 = vld [vmem:[%s1062_s2 + $0x18] sm:$0xff] (!%p302_p9) }
  0x2f   : > { %s1008_s9 = scalar_lea.vmem (!%p302_p9), [#allocation2], %s703_s29  ;;  %539 = vmatprep.mubr.bf16.mxu0 (!%p302_p9), %v837_v32  ;;  %383 = vperm.xlu1 (!%p302_p9), %818, %v369_v35   ;;  %v368_v49 = vld [vmem:[%s1062_s2 + $0x8] sm:$0xff] (!%p302_p9)  ;;  %v838_v56 = vld [vmem:[%s1060_s0 + $0x10] ss:$8 sps:$4 sm:$0xff] (!%p302_p9)   ;;  %s704_s27 = sshll.u32 (!%p302_p9), %s308_s28, 4 }
  0x30   : > { %v819_v36 = vld [vmem:[%s1008_s9 + $0x40] sm:$0xff] (!%p302_p9)   ;;  %547 = vmatprep.mubr.bf16.mxu1 (!%p302_p9), %v840_v34  ;;  %v821_v38 = vld [vmem:[%s1008_s9 + $0x48] sm:$0xff] (!%p302_p9)   ;;  %v823_v40 = vld [vmem:[%s1008_s9 + $0x50] sm:$0xff] (!%p302_p9)   ;;  %373 = vperm.xlu0 (!%p302_p9), %817, %v367_v47   ;;  %s329_s29 = scalar_lea.vmem (!%p302_p9), [#allocation3], %s704_s27 }
  0x31   : > { %v820_v37 = vld [vmem:[%s1008_s9] sm:$0xff] (!%p302_p9)   ;;  %748 = vmatprep.subr.bf16.mxu0 (!%p302_p9), %v819_v36  ;;  %776 = vmatprep.subr.bf16.mxu1 (!%p302_p9), %v819_v36  ;;  %v822_v39 = vld [vmem:[%s1008_s9 + $0x8] sm:$0xff] (!%p302_p9)   ;;  %v824_v41 = vld [vmem:[%s1008_s9 + $0x10] sm:$0xff] (!%p302_p9)  }
  0x32   : > { %749 = vmatpush3.bf16.msra.mxu0 (!%p302_p9), %v820_v37  ;;  %784 = vmatpush3.bf16.msra.mxu1 (!%p302_p9), %v820_v37  ;;  %v825_v42 = vld [vmem:[%s1008_s9 + $0x58] sm:$0xff] (!%p302_p9)   ;;  %v827_v44 = vld [vmem:[%s1008_s9 + $0x60] sm:$0xff] (!%p302_p9)   ;;  %v829_v46 = vld [vmem:[%s1008_s9 + $0x68] sm:$0xff] (!%p302_p9)  }
  0x33   : > { %750 = vmatprep.subr.bf16.mxu0 (!%p302_p9), %v821_v38  ;;  %777 = vmatprep.subr.bf16.mxu1 (!%p302_p9), %v821_v38  ;;  %v826_v43 = vld [vmem:[%s1008_s9 + $0x18] sm:$0xff] (!%p302_p9)   ;;  %v828_v45 = vld [vmem:[%s1008_s9 + $0x20] sm:$0xff] (!%p302_p9)   ;;  %v830_v50 = vld [vmem:[%s1008_s9 + $0x28] sm:$0xff] (!%p302_p9)  }
  0x34   : > { %388 = vperm.xlu1 (!%p302_p9), %818, %v370_v48   ;;  %v831_v51 = vld [vmem:[%s1008_s9 + $0x70] sm:$0xff] (!%p302_p9)   ;;  %378 = vperm.xlu0 (!%p302_p9), %817, %v368_v49   ;;  %v833_v53 = vld [vmem:[%s1008_s9 + $0x78] sm:$0xff] (!%p302_p9)  }
  0x35   : > { %v832_v52 = vld [vmem:[%s1008_s9 + $0x30] sm:$0xff]   ;;  %v834_v54 = vld [vmem:[%s1008_s9 + $0x38] sm:$0xff]   ;;  %s730_s30 = sshll.u32 (%p916_p5), %s696_s15, 2 }
  0x36   : > { %751 = vmatpush3.bf16.msra.mxu0 %v822_v39  ;;  %785 = vmatpush3.bf16.msra.mxu1 %v822_v39  ;;  %v835_v55 = vld [vmem:[%s1060_s0] ss:$8 sps:$4 sm:$0xff]   ;;  %s588_s4 = scalar_lea.vmem (%p916_p5), %s1063_s3, %s730_s30 }
  0x37   : > { %752 = vmatprep.subr.bf16.mxu0 %v823_v40  ;;  %778 = vmatprep.subr.bf16.mxu1 %v823_v40 }
  0x3a   : > { %753 = vmatpush3.bf16.msra.mxu0 %v824_v41  ;;  %786 = vmatpush3.bf16.msra.mxu1 %v824_v41 }
  0x3b   : > { %754 = vmatprep.subr.bf16.mxu0 %v825_v42  ;;  %779 = vmatprep.subr.bf16.mxu1 %v825_v42 }
  0x3e   : > { %755 = vmatpush3.bf16.msra.mxu0 %v826_v43  ;;  %787 = vmatpush3.bf16.msra.mxu1 %v826_v43 }
  0x3f   : > { %756 = vmatprep.subr.bf16.mxu0 %v827_v44  ;;  %780 = vmatprep.subr.bf16.mxu1 %v827_v44 }
  0x42   : > { %757 = vmatpush3.bf16.msra.mxu0 %v828_v45  ;;  %788 = vmatpush3.bf16.msra.mxu1 %v828_v45 }
  0x43   : > { %758 = vmatprep.subr.bf16.mxu0 %v829_v46  ;;  %781 = vmatprep.subr.bf16.mxu1 %v829_v46 }
  0x46   : > { %759 = vmatpush3.bf16.msra.mxu0 %v830_v50  ;;  %789 = vmatpush3.bf16.msra.mxu1 %v830_v50 }
  0x47   : > { %760 = vmatprep.subr.bf16.mxu0 %v831_v51  ;;  %782 = vmatprep.subr.bf16.mxu1 %v831_v51 }
  0x4a   : > { %761 = vmatpush3.bf16.msra.mxu0 %v832_v52  ;;  %790 = vmatpush3.bf16.msra.mxu1 %v832_v52 }
  0x4b   : > { %762 = vmatprep.subr.bf16.mxu0 %v833_v53  ;;  %783 = vmatprep.subr.bf16.mxu1 %v833_v53 }
  0x4e   : > { %763 = vmatpush3.bf16.msra.mxu0 %v834_v54  ;;  %791 = vmatpush3.bf16.msra.mxu1 %v834_v54 }
  0x51   : > { %540 = vmatmul.mubr.bf16.vlgmr.msra.gmra.mrb[0].mxu0 %v835_v55  ;;  %548 = vmatmul.mubr.bf16.vlgmr.msra.gmra.mrb[0].mxu1 %v838_v56 }
  0xae   : > { %v384_v57 = vpop.permute.xlu1 %383 }
  0xaf   : > { %v374_v58 = vpop.permute.xlu0 %373 }
  0xb3   : > { %v389_v9 = vpop.permute.xlu1 %388  ;;  %v379_v10 = vpop.permute.xlu0 %378 }
 0x124   : > { %v764_v59 = vpop.f32.mrb[0].mxu0  ;;  %v770_v60 = vpop.f32.mrb[0].mxu1 }
 0x125   : > { %v765_v61 = vpop.f32.mrb[1].mxu0  ;;  %v771_v62 = vpop.f32.mrb[1].mxu1 }
 0x126   : > { %v766_v63 = vadd.f32 %v765_v61, %v764_v59  ;;  %v772_v0 = vadd.f32 %v771_v62, %v770_v60  ;;  %v767_v1 = vpop.f32.mrb[2].mxu0  ;;  %v773_v2 = vpop.f32.mrb[2].mxu1 }
 0x127   : > { %v768_v3 = vpop.f32.mrb[3].mxu0  ;;  %v774_v4 = vpop.f32.mrb[3].mxu1 }
 0x128   : > { %v542_v5 = vadd.f32 %v766_v63, %v374_v58  ;;  %v550_v6 = vadd.f32 %v772_v0, %v384_v57  ;;  %v769_v7 = vadd.f32 %v768_v3, %v767_v1  ;;  %v775_v8 = vadd.f32 %v774_v4, %v773_v2 }
 0x12a   : > { %v545_v11 = vadd.f32 %v769_v7, %v379_v10  ;;  %v553_v12 = vadd.f32 %v775_v8, %v389_v9  ;;  %v556_v13 = vmax.f32 %v542_v5, 0.0  ;;  %v558_v14 = vmax.f32 %v550_v6, 0.0  ;;  %586 = sbr.rel (!%p916_p5) target bundleno = 314 (0x13a), region = 77 }
 0x12c   : > { %v557_v15 = vmax.f32 %v545_v11, 0.0  ;;  %v559_v16 = vmax.f32 %v553_v12, 0.0 }
 0x12e   : > { %v740_v17 = vpack.c.bf16 %v557_v15, %v556_v13  ;;  %v745_v18 = vpack.c.bf16 %v559_v16, %v558_v14 }
 0x130   : > { %741 = vst [vmem:[%s329_s29] sm:$0xff] %v740_v17   ;;  %747 = vst [vmem:[%s329_s29 + $0x8] sm:$0xff] %v745_v18  }
 0x137   : > { %v604_v19 = vld [vmem:[%s329_s29] sm:$0xf]  ;;  %v606_v20 = vld [vmem:[%s329_s29 + $0x4] sm:$0xf]  ;;  %v608_v21 = vld [vmem:[%s329_s29 + $0x8] sm:$0xf] }
 0x138   : > { %v610_v22 = vld [vmem:[%s329_s29 + $0xc] sm:$0xf]  ;;  %605 = vst [vmem:[%s588_s4] sm:$0xf] %v604_v19  ;;  %607 = vst [vmem:[%s588_s4 + $0x8] sm:$0xf] %v606_v20 }
 0x139   : > { %609 = vst [vmem:[%s588_s4 + $0x10] sm:$0xf] %v608_v21  ;;  %611 = vst [vmem:[%s588_s4 + $0x18] sm:$0xf] %v610_v22 }
 0x13a PF: > { %p10_p10 = scmp.ge.s32.totalorder %s903_s16, 4   ;;  %s1065_s12 = smov %s859_s13 }
 0x13b   : > { %s1066_s13 = smov %s914_s19  ;;  %s1067_s14 = smov %s903_s16 }
 0x13c   :  { %12 = sbr.rel (!%p10_p10) target bundleno = 2 (0x2), region = 149 }

// kernel: estimator_forward.5
= control target key start
LH: loop header
LB: loop body
LE: loop exit
PB: predicated region body
PF: predicated region fallthrough
CT: control target
= control target key end

     0   :  { %v5513_v2 = vmov 0   ;;  %vm107_vm0 = vcmask 1040384   ;;  %vm103_vm1 = vcmask 662528   ;;  %s6912_s0 = inlined_call_operand.vmem [shape: bf16[32,2,81], index: 0, kind: input, shape index: {}]   ;;  %s6913_s1 = inlined_call_operand.vmem [shape: bf16[32,81,256], index: 1, kind: input, shape index: {}]   ;;  %s6914_s2 = inlined_call_operand.vmem [shape: f32[1,256], index: 2, kind: input, shape index: {}]   ;;  %s6915_s3 = inlined_call_operand.vmem [shape: bf16[256,128], index: 3, kind: input, shape index: {}]   ;;  %s6916_s4 = inlined_call_operand.vmem [shape: f32[1,128], index: 4, kind: input, shape index: {}]   ;;  %s6917_s5 = inlined_call_operand.hbm [shape: f32[2,128], index: 5, kind: output, shape index: {}]  }
   0x1   :  { %v4929_v0 = vld [vmem:[%s6913_s1 + $0x5c] ss:$8 sps:$4 sm:$0xff]   ;;  %v4931_v1 = vld [vmem:[%s6913_s1 + $0x58] ss:$8 sps:$4 sm:$0xff]   ;;  %148 = vmatprep.mubr.bf16.mxu1 %v5513_v2  ;;  %372 = vmatprep.mubr.bf16.mxu0 %v5513_v2  ;;  %v4932_v3 = vld [vmem:[%s6913_s1 + $0x6c] ss:$8 sps:$4 sm:$0xff]  }
   0x2   :  { %116 = vmatprep.subr.bf16.mxu1 %v4929_v0  ;;  %v4934_v4 = vld [vmem:[%s6913_s1 + $0x68] ss:$8 sps:$4 sm:$0xff]   ;;  %v4935_v5 = vld [vmem:[%s6913_s1 + $0x7c] ss:$8 sps:$4 sm:$0xff]   ;;  %v4937_v6 = vld [vmem:[%s6913_s1 + $0x78] ss:$8 sps:$4 sm:$0xff]  }
   0x3   :  { %117 = vmatpush1.bf16.msra.mxu1 %v4931_v1  ;;  %v4938_v7 = vld [vmem:[%s6913_s1 + $0x8c] ss:$8 sps:$4 sm:$0xff]   ;;  %v4951_v10 = vld [vmem:[%s6913_s1 + $0xb0] ss:$8 sps:$4 sm:$0xff]   ;;  %v4941_v12 = vld [vmem:[%s6913_s1 + $0x9c] ss:$8 sps:$4 sm:$0xff]  }
   0x4   :  { %118 = vmatprep.subr.bf16.mxu1 %v4932_v3  ;;  %v4111_v8 = vld [vmem:[%s6913_s1 + $0xa8] sm:$0x11]  ;;  %v4949_v9 = vld [vmem:[%s6913_s1 + $0xb4] ss:$8 sps:$4 sm:$0xff]   ;;  %v5590_v16 = vsel %vm107_vm0, 65535, %v5513_v2 }
   0x5   :  { %v4940_v11 = vld [vmem:[%s6913_s1 + $0x88] ss:$8 sps:$4 sm:$0xff]   ;;  %340 = vmatprep.subr.bf16.mxu0 %v4949_v9  ;;  %v4123_v13 = vcombine.high %v4111_v8, %v4111_v8  ;;  %v4955_v14 = vld [vmem:[%s6913_s1 + $0xc4] ss:$8 sps:$4 sm:$0xff]   ;;  %v4961_v17 = vld [vmem:[%s6913_s1 + $0xd4] ss:$8 sps:$4 sm:$0xff]   ;;  %v4122_v19 = vcombine.low %v4111_v8, %v4111_v8 }
   0x6   :  { %341 = vmatpush1.bf16.msra.mxu0 %v4951_v10  ;;  %v4957_v15 = vld [vmem:[%s6913_s1 + $0xc0] ss:$8 sps:$4 sm:$0xff]   ;;  %v4963_v21 = vld [vmem:[%s6913_s1 + $0xd0] ss:$8 sps:$4 sm:$0xff]   ;;  %v4967_v22 = vld [vmem:[%s6913_s1 + $0xe4] ss:$8 sps:$4 sm:$0xff]  }
   0x7   :  { %119 = vmatpush1.bf16.msra.mxu1 %v4934_v4  ;;  %342 = vmatprep.subr.bf16.mxu0 %v4955_v14  ;;  %v4943_v18 = vld [vmem:[%s6913_s1 + $0x98] ss:$8 sps:$4 sm:$0xff]   ;;  %v114_v20 = vand.u32 %v4123_v13, %v5590_v16  ;;  %v111_v23 = vand.u32 %v4122_v19, %v5590_v16  ;;  %v4948_v24 = vld [vmem:[%s6913_s1 + $0x4] ss:$8 sps:$4 sm:$0xff]   ;;  %v4973_v26 = vld [vmem:[%s6913_s1 + $0xf4] ss:$8 sps:$4 sm:$0xff]  }
   0x8   :  { %120 = vmatprep.subr.bf16.mxu1 %v4935_v5  ;;  %v4969_v25 = vld [vmem:[%s6913_s1 + $0xe0] ss:$8 sps:$4 sm:$0xff]   ;;  %v4954_v31 = vld [vmem:[%s6913_s1 + $0x14] ss:$8 sps:$4 sm:$0xff]   ;;  %v4975_v32 = vld [vmem:[%s6913_s1 + $0xf0] ss:$8 sps:$4 sm:$0xff]  }
   0x9   :  { %v4149_v27 = vld [vmem:[%s6913_s1 + $0x100] sm:$0x11]  ;;  %v4100_v28 = vld [vmem:[%s6912_s0 + $0x1] sm:$0x1]  ;;  %v4952_v35 = vld [vmem:[%s6913_s1 + $0x10] ss:$8 sps:$4 sm:$0xff]  }
   0xa   :  { %343 = vmatpush1.bf16.msra.mxu0 %v4957_v15  ;;  %v4161_v29 = vcombine.high %v4149_v27, %v4149_v27  ;;  %v4946_v30 = vld [vmem:[%s6913_s1] ss:$8 sps:$4 sm:$0xff]   ;;  %v4160_v33 = vcombine.low %v4149_v27, %v4149_v27  ;;  %v4960_v36 = vld [vmem:[%s6913_s1 + $0x24] ss:$8 sps:$4 sm:$0xff]   ;;  %v4966_v40 = vld [vmem:[%s6913_s1 + $0x34] ss:$8 sps:$4 sm:$0xff]  }
   0xb   :  { %121 = vmatpush1.bf16.msra.mxu1 %v4937_v6  ;;  %344 = vmatprep.subr.bf16.mxu0 %v4961_v17  ;;  %v4985_v38 = vld [vmem:[%s6913_s1 + $0x164] ss:$8 sps:$4 sm:$0xff]   ;;  %v4958_v39 = vld [vmem:[%s6913_s1 + $0x20] ss:$8 sps:$4 sm:$0xff]   ;;  %v33_v43 = vld [vmem:[%s6913_s1 + $0x50] sm:$0x11] }
   0xc   :  { %122 = vmatprep.subr.bf16.mxu1 %v4938_v7  ;;  %v338_v34 = vand.u32 %v4161_v29, %v5590_v16  ;;  %v335_v37 = vand.u32 %v4160_v33, %v5590_v16  ;;  %v4138_v41 = vld [vmem:[%s6912_s0 + $0x2] sm:$0x1]  ;;  %v4991_v44 = vld [vmem:[%s6913_s1 + $0x174] ss:$8 sps:$4 sm:$0xff]   ;;  %v4964_v45 = vld [vmem:[%s6913_s1 + $0x30] ss:$8 sps:$4 sm:$0xff]   ;;  %v4136_v47 = vcombine.high %v33_v43, %v33_v43  ;;  %v4135_v51 = vcombine.low %v33_v43, %v33_v43 }
   0xd   :  { %v4983_v42 = vld [vmem:[%s6913_s1 + $0x160] ss:$8 sps:$4 sm:$0xff]   ;;  %v4972_v46 = vld [vmem:[%s6913_s1 + $0x44] ss:$8 sps:$4 sm:$0xff]   ;;  %v4989_v48 = vld [vmem:[%s6913_s1 + $0x170] ss:$8 sps:$4 sm:$0xff]  }
   0xe   :  { %345 = vmatpush1.bf16.msra.mxu0 %v4963_v21  ;;  %v4997_v49 = vld [vmem:[%s6913_s1 + $0x184] ss:$8 sps:$4 sm:$0xff]   ;;  %v4970_v50 = vld [vmem:[%s6913_s1 + $0x40] ss:$8 sps:$4 sm:$0xff]   ;;  %v219_v52 = vand.u32 %v4136_v47, %v5590_v16  ;;  %v5003_v54 = vld [vmem:[%s6913_s1 + $0x194] ss:$8 sps:$4 sm:$0xff]   ;;  %v216_v56 = vand.u32 %v4135_v51, %v5590_v16 }
   0xf   :  { %123 = vmatpush1.bf16.msra.mxu1 %v4940_v11  ;;  %346 = vmatprep.subr.bf16.mxu0 %v4967_v22  ;;  %v4995_v53 = vld [vmem:[%s6913_s1 + $0x180] ss:$8 sps:$4 sm:$0xff]   ;;  %v4199_v55 = vld [vmem:[%s6913_s1 + $0x1b0] sm:$0x11]  ;;  %v5009_v59 = vld [vmem:[%s6913_s1 + $0x1a4] ss:$8 sps:$4 sm:$0xff]  }
  0x10   :  { %124 = vmatprep.subr.bf16.mxu1 %v4941_v12  ;;  %v4982_v57 = vld [vmem:[%s6913_s1 + $0x10c] ss:$8 sps:$4 sm:$0xff]   ;;  %v5001_v58 = vld [vmem:[%s6913_s1 + $0x190] ss:$8 sps:$4 sm:$0xff]   ;;  %v4211_v60 = vcombine.high %v4199_v55, %v4199_v55  ;;  %v22_v61 = vld [vmem:[%s6912_s0] sm:$0x1]  ;;  %v4210_v1 = vcombine.low %v4199_v55, %v4199_v55 }
  0x11   :  { %v4980_v62 = vld [vmem:[%s6913_s1 + $0x108] ss:$8 sps:$4 sm:$0xff]   ;;  %v4988_v63 = vld [vmem:[%s6913_s1 + $0x11c] ss:$8 sps:$4 sm:$0xff]   ;;  %v4986_v4 = vld [vmem:[%s6913_s1 + $0x118] ss:$8 sps:$4 sm:$0xff]  }
  0x12   :  { %347 = vmatpush1.bf16.msra.mxu0 %v4969_v25  ;;  %v5007_v0 = vld [vmem:[%s6913_s1 + $0x1a0] ss:$8 sps:$4 sm:$0xff]   ;;  %v580_v3 = vand.u32 %v4211_v60, %v5590_v16  ;;  %v4994_v5 = vld [vmem:[%s6913_s1 + $0x12c] ss:$8 sps:$4 sm:$0xff]   ;;  %v577_v6 = vand.u32 %v4210_v1, %v5590_v16  ;;  %v5000_v9 = vld [vmem:[%s6913_s1 + $0x13c] ss:$8 sps:$4 sm:$0xff]  }
  0x13   :  { %125 = vmatpush1.bf16.msra.mxu1 %v4943_v18  ;;  %348 = vmatprep.subr.bf16.mxu0 %v4973_v26  ;;  %v5019_v7 = vld [vmem:[%s6913_s1 + $0x214] ss:$8 sps:$4 sm:$0xff]   ;;  %v4992_v8 = vld [vmem:[%s6913_s1 + $0x128] ss:$8 sps:$4 sm:$0xff]   ;;  %v4188_v10 = vld [vmem:[%s6912_s0 + $0x4] sm:$0x1] }
  0x14   :  { %126 = vmatprep.subr.bf16.mxu1 %v114_v20  ;;  %v5017_v11 = vld [vmem:[%s6913_s1 + $0x210] ss:$8 sps:$4 sm:$0xff]   ;;  %v5025_v13 = vld [vmem:[%s6913_s1 + $0x224] ss:$8 sps:$4 sm:$0xff]   ;;  %v5023_v18 = vld [vmem:[%s6913_s1 + $0x220] ss:$8 sps:$4 sm:$0xff]  }
  0x15   :  { %v4174_v12 = vld [vmem:[%s6913_s1 + $0x158] sm:$0x11]  ;;  %v5006_v15 = vld [vmem:[%s6913_s1 + $0x14c] ss:$8 sps:$4 sm:$0xff]   ;;  %v5004_v20 = vld [vmem:[%s6913_s1 + $0x148] ss:$8 sps:$4 sm:$0xff]  }
  0x16   :  { %349 = vmatpush1.bf16.msra.mxu0 %v4975_v32  ;;  %v4998_v14 = vld [vmem:[%s6913_s1 + $0x138] ss:$8 sps:$4 sm:$0xff]   ;;  %v4186_v17 = vcombine.high %v4174_v12, %v4174_v12  ;;  %v5031_v19 = vld [vmem:[%s6913_s1 + $0x234] ss:$8 sps:$4 sm:$0xff]   ;;  %v4185_v21 = vcombine.low %v4174_v12, %v4174_v12  ;;  %v4238_v43 = vld [vmem:[%s6912_s0 + $0x6] sm:$0x1] }
  0x17   :  { %127 = vmatpush1.bf16.msra.mxu1 %v111_v23  ;;  %350 = vmatprep.subr.bf16.mxu0 %v338_v34  ;;  %v5029_v23 = vld [vmem:[%s6913_s1 + $0x230] ss:$8 sps:$4 sm:$0xff]   ;;  %v4249_v25 = vld [vmem:[%s6913_s1 + $0x260] sm:$0x11]  ;;  %v5043_v29 = vld [vmem:[%s6913_s1 + $0x254] ss:$8 sps:$4 sm:$0xff]  }
  0x18   :  { %221 = vmatprep.subr.bf16.mxu1 %v4948_v24  ;;  %v459_v22 = vand.u32 %v4186_v17, %v5590_v16  ;;  %v5037_v24 = vld [vmem:[%s6913_s1 + $0x244] ss:$8 sps:$4 sm:$0xff]   ;;  %v456_v26 = vand.u32 %v4185_v21, %v5590_v16  ;;  %v5014_v32 = vld [vmem:[%s6913_s1 + $0x1b8] ss:$8 sps:$4 sm:$0xff]   ;;  %v5032_v47 = vld [vmem:[%s6913_s1 + $0x1e8] ss:$8 sps:$4 sm:$0xff]  }
  0x19   :  { %v5016_v27 = vld [vmem:[%s6913_s1 + $0x1bc] ss:$8 sps:$4 sm:$0xff]   ;;  %v5022_v33 = vld [vmem:[%s6913_s1 + $0x1cc] ss:$8 sps:$4 sm:$0xff]   ;;  %v5041_v34 = vld [vmem:[%s6913_s1 + $0x250] ss:$8 sps:$4 sm:$0xff]  }
  0x1a   :  { %4124 = vmatmul.mubr.msk.bf16.vlgmr.msra.gmra.mrb[0].mxu1 %vm103_vm1, %v4100_v28  ;;  %351 = vmatpush1.bf16.msra.mxu0 %v335_v37  ;;  %v5035_v28 = vld [vmem:[%s6913_s1 + $0x240] ss:$8 sps:$4 sm:$0xff]   ;;  %v5065_v51 = vld [vmem:[%s6913_s1 + $0x2e4] ss:$8 sps:$4 sm:$0xff]   ;;  %v5069_v60 = vld [vmem:[%s6913_s1 + $0x2f0] ss:$8 sps:$4 sm:$0xff]  }
  0x1b   :  { %222 = vmatpush1.bf16.msra.mxu1 %v4946_v30  ;;  %253 = vmatprep.mubr.bf16.mxu1 %v5513_v2  ;;  %v4261_v30 = vcombine.high %v4249_v25, %v4249_v25  ;;  %v5020_v37 = vld [vmem:[%s6913_s1 + $0x1c8] ss:$8 sps:$4 sm:$0xff]   ;;  %v5056_v1 = vld [vmem:[%s6913_s1 + $0x27c] ss:$8 sps:$4 sm:$0xff]   ;;  %v5066_v17 = vld [vmem:[%s6913_s1 + $0x298] ss:$8 sps:$4 sm:$0xff]  }
  0x1c   :  { %223 = vmatprep.subr.bf16.mxu1 %v4954_v31  ;;  %582 = vmatprep.subr.bf16.mxu0 %v4985_v38  ;;  %v4163_v31 = vld [vmem:[%s6912_s0 + $0x3] sm:$0x1]  ;;  %v5028_v38 = vld [vmem:[%s6913_s1 + $0x1dc] ss:$8 sps:$4 sm:$0xff]   ;;  %v4288_v12 = vld [vmem:[%s6912_s0 + $0x8] sm:$0x1] }
  0x1d   :  { %4162 = vmatmul.mubr.msk.bf16.vlgmr.msra.gmra.mrb[0].mxu0 %vm103_vm1, %v4138_v41  ;;  %v5026_v41 = vld [vmem:[%s6913_s1 + $0x1d8] ss:$8 sps:$4 sm:$0xff]   ;;  %v5099_v21 = vld [vmem:[%s6913_s1 + $0x394] ss:$8 sps:$4 sm:$0xff]  }
  0x1e   :  { %583 = vmatpush1.bf16.msra.mxu0 %v4983_v42  ;;  %614 = vmatprep.mubr.bf16.mxu0 %v5513_v2  ;;  %v5034_v42 = vld [vmem:[%s6913_s1 + $0x1ec] ss:$8 sps:$4 sm:$0xff]   ;;  %v5063_v55 = vld [vmem:[%s6913_s1 + $0x2e0] ss:$8 sps:$4 sm:$0xff]  }
  0x1f   :  { %224 = vmatpush1.bf16.msra.mxu1 %v4952_v35  ;;  %584 = vmatprep.subr.bf16.mxu0 %v4991_v44  ;;  %v4260_v35 = vcombine.low %v4249_v25, %v4249_v25  ;;  %v5051_v44 = vld [vmem:[%s6913_s1 + $0x2c0] ss:$8 sps:$4 sm:$0xff]   ;;  %v5097_v25 = vld [vmem:[%s6913_s1 + $0x390] ss:$8 sps:$4 sm:$0xff]  }
  0x20   :  { %225 = vmatprep.subr.bf16.mxu1 %v4960_v36  ;;  %v822_v36 = vand.u32 %v4261_v30, %v5590_v16  ;;  %v5103_v30 = vld [vmem:[%s6913_s1 + $0x3a0] ss:$8 sps:$4 sm:$0xff]  }
  0x22   :  { %585 = vmatpush1.bf16.msra.mxu0 %v4989_v48  ;;  %v5040_v48 = vld [vmem:[%s6913_s1 + $0x1fc] ss:$8 sps:$4 sm:$0xff]  }
  0x23   :  { %226 = vmatpush1.bf16.msra.mxu1 %v4958_v39  ;;  %586 = vmatprep.subr.bf16.mxu0 %v4997_v49  ;;  %v819_v39 = vand.u32 %v4260_v35, %v5590_v16  ;;  %v5090_v35 = vld [vmem:[%s6913_s1 + $0x32c] ss:$8 sps:$4 sm:$0xff]  }
  0x24   :  { %227 = vmatprep.subr.bf16.mxu1 %v4966_v40  ;;  %v5053_v40 = vld [vmem:[%s6913_s1 + $0x2c4] ss:$8 sps:$4 sm:$0xff]  }
  0x26   :  { %587 = vmatpush1.bf16.msra.mxu0 %v4995_v53 }
  0x27   :  { %228 = vmatpush1.bf16.msra.mxu1 %v4964_v45  ;;  %588 = vmatprep.subr.bf16.mxu0 %v5003_v54  ;;  %v4224_v45 = vld [vmem:[%s6913_s1 + $0x208] sm:$0x11] }
  0x28   :  { %229 = vmatprep.subr.bf16.mxu1 %v4972_v46  ;;  %v5059_v46 = vld [vmem:[%s6913_s1 + $0x2d4] ss:$8 sps:$4 sm:$0xff]   ;;  %v4236_v49 = vcombine.high %v4224_v45, %v4224_v45  ;;  %v4235_v53 = vcombine.low %v4224_v45, %v4224_v45  ;;  %v4338_v45 = vld [vmem:[%s6912_s0 + $0xa] sm:$0x1] }
  0x2a   :  { %589 = vmatpush1.bf16.msra.mxu0 %v5001_v58  ;;  %v701_v54 = vand.u32 %v4236_v49, %v5590_v16  ;;  %v698_v58 = vand.u32 %v4235_v53, %v5590_v16  ;;  %v5100_v49 = vld [vmem:[%s6913_s1 + $0x348] ss:$8 sps:$4 sm:$0xff]   ;;  %v5133_v53 = vld [vmem:[%s6913_s1 + $0x444] ss:$8 sps:$4 sm:$0xff]  }
  0x2b   :  { %230 = vmatpush1.bf16.msra.mxu1 %v4970_v50  ;;  %590 = vmatprep.subr.bf16.mxu0 %v5009_v59  ;;  %v5057_v50 = vld [vmem:[%s6913_s1 + $0x2d0] ss:$8 sps:$4 sm:$0xff]   ;;  %v5050_v59 = vld [vmem:[%s6913_s1 + $0x26c] ss:$8 sps:$4 sm:$0xff]  }
  0x2c   :  { %231 = vmatprep.subr.bf16.mxu1 %v219_v52  ;;  %v5038_v52 = vld [vmem:[%s6913_s1 + $0x1f8] ss:$8 sps:$4 sm:$0xff]  }
  0x2e   :  { %591 = vmatpush1.bf16.msra.mxu0 %v5007_v0  ;;  %v5048_v0 = vld [vmem:[%s6913_s1 + $0x268] ss:$8 sps:$4 sm:$0xff]  }
  0x2f   :  { %232 = vmatpush1.bf16.msra.mxu1 %v216_v56  ;;  %592 = vmatprep.subr.bf16.mxu0 %v580_v3  ;;  %v5071_v56 = vld [vmem:[%s6913_s1 + $0x2f4] ss:$8 sps:$4 sm:$0xff]   ;;  %v5075_v3 = vld [vmem:[%s6913_s1 + $0x300] ss:$8 sps:$4 sm:$0xff]  }
  0x30   :  { %461 = vmatprep.subr.bf16.mxu1 %v4982_v57  ;;  %v4299_v57 = vld [vmem:[%s6913_s1 + $0x310] sm:$0x11] }
  0x32   :  { %4137 = vmatmul.mubr.msk.bf16.vlgmr.msra.gmra.mrb[4].mxu1 %vm103_vm1, %v22_v61  ;;  %593 = vmatpush1.bf16.msra.mxu0 %v577_v6  ;;  %v5077_v61 = vld [vmem:[%s6913_s1 + $0x304] ss:$8 sps:$4 sm:$0xff]   ;;  %v5054_v6 = vld [vmem:[%s6913_s1 + $0x278] ss:$8 sps:$4 sm:$0xff]  }
  0x33   :  { %462 = vmatpush1.bf16.msra.mxu1 %v4980_v62  ;;  %493 = vmatprep.mubr.bf16.mxu1 %v5513_v2  ;;  %v4311_v62 = vcombine.high %v4299_v57, %v4299_v57 }
  0x34   :  { %463 = vmatprep.subr.bf16.mxu1 %v4988_v63  ;;  %824 = vmatprep.subr.bf16.mxu0 %v5019_v7  ;;  %v4213_v63 = vld [vmem:[%s6912_s0 + $0x5] sm:$0x1]  ;;  %v5062_v7 = vld [vmem:[%s6913_s1 + $0x28c] ss:$8 sps:$4 sm:$0xff]  }
  0x35   :  { %4212 = vmatmul.mubr.msk.bf16.vlgmr.msra.gmra.mrb[4].mxu0 %vm103_vm1, %v4188_v10  ;;  %v5060_v10 = vld [vmem:[%s6913_s1 + $0x288] ss:$8 sps:$4 sm:$0xff]  }
  0x36   :  { %825 = vmatpush1.bf16.msra.mxu0 %v5017_v11  ;;  %856 = vmatprep.mubr.bf16.mxu0 %v5513_v2  ;;  %v5068_v11 = vld [vmem:[%s6913_s1 + $0x29c] ss:$8 sps:$4 sm:$0xff]  }
  0x37   :  { %464 = vmatpush1.bf16.msra.mxu1 %v4986_v4  ;;  %826 = vmatprep.subr.bf16.mxu0 %v5025_v13  ;;  %v4310_v4 = vcombine.low %v4299_v57, %v4299_v57  ;;  %v5085_v13 = vld [vmem:[%s6913_s1 + $0x370] ss:$8 sps:$4 sm:$0xff]   ;;  %v5131_v57 = vld [vmem:[%s6913_s1 + $0x440] ss:$8 sps:$4 sm:$0xff]  }
  0x38   :  { %465 = vmatprep.subr.bf16.mxu1 %v4994_v5  ;;  %v1064_v5 = vand.u32 %v4311_v62, %v5590_v16  ;;  %v5137_v62 = vld [vmem:[%s6913_s1 + $0x450] ss:$8 sps:$4 sm:$0xff]  }
  0x3a   :  { %827 = vmatpush1.bf16.msra.mxu0 %v5023_v18  ;;  %v5074_v18 = vld [vmem:[%s6913_s1 + $0x2ac] ss:$8 sps:$4 sm:$0xff]  }
  0x3b   :  { %466 = vmatpush1.bf16.msra.mxu1 %v4992_v8  ;;  %828 = vmatprep.subr.bf16.mxu0 %v5031_v19  ;;  %v1061_v8 = vand.u32 %v4310_v4, %v5590_v16  ;;  %v5124_v4 = vld [vmem:[%s6913_s1 + $0x3dc] ss:$8 sps:$4 sm:$0xff]  }
  0x3c   :  { %467 = vmatprep.subr.bf16.mxu1 %v5000_v9  ;;  %v5087_v9 = vld [vmem:[%s6913_s1 + $0x374] ss:$8 sps:$4 sm:$0xff]  }
  0x3e   :  { %829 = vmatpush1.bf16.msra.mxu0 %v5029_v23 }
  0x3f   :  { %468 = vmatpush1.bf16.msra.mxu1 %v4998_v14  ;;  %830 = vmatprep.subr.bf16.mxu0 %v5037_v24  ;;  %v4274_v14 = vld [vmem:[%s6913_s1 + $0x2b8] sm:$0x11] }
  0x40   :  { %469 = vmatprep.subr.bf16.mxu1 %v5006_v15  ;;  %v5093_v15 = vld [vmem:[%s6913_s1 + $0x384] ss:$8 sps:$4 sm:$0xff]   ;;  %v4286_v19 = vcombine.high %v4274_v14, %v4274_v14  ;;  %v4285_v23 = vcombine.low %v4274_v14, %v4274_v14 }
  0x41   :  { %v4388_v14 = vld [vmem:[%s6912_s0 + $0xc] sm:$0x1] }
  0x42   :  { %831 = vmatpush1.bf16.msra.mxu0 %v5035_v28  ;;  %v943_v24 = vand.u32 %v4286_v19, %v5590_v16  ;;  %v940_v28 = vand.u32 %v4285_v23, %v5590_v16  ;;  %v5134_v19 = vld [vmem:[%s6913_s1 + $0x3f8] ss:$8 sps:$4 sm:$0xff]   ;;  %v5167_v23 = vld [vmem:[%s6913_s1 + $0x4f4] ss:$8 sps:$4 sm:$0xff]  }
  0x43   :  { %470 = vmatpush1.bf16.msra.mxu1 %v5004_v20  ;;  %832 = vmatprep.subr.bf16.mxu0 %v5043_v29  ;;  %v5091_v20 = vld [vmem:[%s6913_s1 + $0x380] ss:$8 sps:$4 sm:$0xff]   ;;  %v5084_v29 = vld [vmem:[%s6913_s1 + $0x31c] ss:$8 sps:$4 sm:$0xff]  }
  0x44   :  { %471 = vmatprep.subr.bf16.mxu1 %v459_v22  ;;  %v5072_v22 = vld [vmem:[%s6913_s1 + $0x2a8] ss:$8 sps:$4 sm:$0xff]  }
  0x46   :  { %833 = vmatpush1.bf16.msra.mxu0 %v5041_v34  ;;  %v5082_v34 = vld [vmem:[%s6913_s1 + $0x318] ss:$8 sps:$4 sm:$0xff]  }
  0x47   :  { %472 = vmatpush1.bf16.msra.mxu1 %v456_v26  ;;  %834 = vmatprep.subr.bf16.mxu0 %v822_v36  ;;  %v5105_v26 = vld [vmem:[%s6913_s1 + $0x3a4] ss:$8 sps:$4 sm:$0xff]   ;;  %v5109_v36 = vld [vmem:[%s6913_s1 + $0x3b0] ss:$8 sps:$4 sm:$0xff]  }
  0x48   :  { %703 = vmatprep.subr.bf16.mxu1 %v5016_v27  ;;  %v4349_v27 = vld [vmem:[%s6913_s1 + $0x3c0] sm:$0x11] }
  0x4a   :  { %4187 = vmatmul.mubr.msk.bf16.vlgmr.msra.gmra.mrb[8].mxu1 %vm103_vm1, %v4163_v31  ;;  %835 = vmatpush1.bf16.msra.mxu0 %v819_v39  ;;  %v5111_v31 = vld [vmem:[%s6913_s1 + $0x3b4] ss:$8 sps:$4 sm:$0xff]   ;;  %v5088_v39 = vld [vmem:[%s6913_s1 + $0x328] ss:$8 sps:$4 sm:$0xff]  }
  0x4b   :  { %704 = vmatpush1.bf16.msra.mxu1 %v5014_v32  ;;  %735 = vmatprep.mubr.bf16.mxu1 %v5513_v2  ;;  %v4361_v32 = vcombine.high %v4349_v27, %v4349_v27 }
  0x4c   :  { %705 = vmatprep.subr.bf16.mxu1 %v5022_v33  ;;  %1066 = vmatprep.subr.bf16.mxu0 %v5053_v40  ;;  %v4263_v33 = vld [vmem:[%s6912_s0 + $0x7] sm:$0x1] }
  0x4d   :  { %4262 = vmatmul.mubr.msk.bf16.vlgmr.msra.gmra.mrb[8].mxu0 %vm103_vm1, %v4238_v43  ;;  %v5096_v40 = vld [vmem:[%s6913_s1 + $0x33c] ss:$8 sps:$4 sm:$0xff]   ;;  %v5094_v43 = vld [vmem:[%s6913_s1 + $0x338] ss:$8 sps:$4 sm:$0xff]  }
  0x4e   :  { %1067 = vmatpush1.bf16.msra.mxu0 %v5051_v44  ;;  %1098 = vmatprep.mubr.bf16.mxu0 %v5513_v2  ;;  %v5102_v44 = vld [vmem:[%s6913_s1 + $0x34c] ss:$8 sps:$4 sm:$0xff]  }
  0x4f   :  { %706 = vmatpush1.bf16.msra.mxu1 %v5020_v37  ;;  %1068 = vmatprep.subr.bf16.mxu0 %v5059_v46  ;;  %v4360_v37 = vcombine.low %v4349_v27, %v4349_v27  ;;  %v5119_v46 = vld [vmem:[%s6913_s1 + $0x420] ss:$8 sps:$4 sm:$0xff]   ;;  %v5165_v27 = vld [vmem:[%s6913_s1 + $0x4f0] ss:$8 sps:$4 sm:$0xff]  }
  0x50   :  { %707 = vmatprep.subr.bf16.mxu1 %v5028_v38  ;;  %v1306_v38 = vand.u32 %v4361_v32, %v5590_v16  ;;  %v5171_v32 = vld [vmem:[%s6913_s1 + $0x500] ss:$8 sps:$4 sm:$0xff]  }
  0x52   :  { %1069 = vmatpush1.bf16.msra.mxu0 %v5057_v50  ;;  %v5108_v50 = vld [vmem:[%s6913_s1 + $0x35c] ss:$8 sps:$4 sm:$0xff]  }
  0x53   :  { %708 = vmatpush1.bf16.msra.mxu1 %v5026_v41  ;;  %1070 = vmatprep.subr.bf16.mxu0 %v5065_v51  ;;  %v1303_v41 = vand.u32 %v4360_v37, %v5590_v16  ;;  %v5158_v37 = vld [vmem:[%s6913_s1 + $0x48c] ss:$8 sps:$4 sm:$0xff]  }
  0x54   :  { %709 = vmatprep.subr.bf16.mxu1 %v5034_v42  ;;  %v5121_v42 = vld [vmem:[%s6913_s1 + $0x424] ss:$8 sps:$4 sm:$0xff]  }
  0x56   :  { %1071 = vmatpush1.bf16.msra.mxu0 %v5063_v55 }
  0x57   :  { %710 = vmatpush1.bf16.msra.mxu1 %v5032_v47  ;;  %1072 = vmatprep.subr.bf16.mxu0 %v5071_v56  ;;  %v4324_v47 = vld [vmem:[%s6913_s1 + $0x368] sm:$0x11] }
  0x58   :  { %711 = vmatprep.subr.bf16.mxu1 %v5040_v48  ;;  %v5127_v48 = vld [vmem:[%s6913_s1 + $0x434] ss:$8 sps:$4 sm:$0xff]   ;;  %v4336_v51 = vcombine.high %v4324_v47, %v4324_v47  ;;  %v4335_v55 = vcombine.low %v4324_v47, %v4324_v47  ;;  %v4438_v47 = vld [vmem:[%s6912_s0 + $0xe] sm:$0x1] }
  0x5a   :  { %1073 = vmatpush1.bf16.msra.mxu0 %v5069_v60  ;;  %v1185_v56 = vand.u32 %v4336_v51, %v5590_v16  ;;  %v1182_v60 = vand.u32 %v4335_v55, %v5590_v16  ;;  %v5168_v51 = vld [vmem:[%s6913_s1 + $0x4a8] ss:$8 sps:$4 sm:$0xff]   ;;  %v5201_v55 = vld [vmem:[%s6913_s1 + $0x5a4] ss:$8 sps:$4 sm:$0xff]  }
  0x5b   :  { %712 = vmatpush1.bf16.msra.mxu1 %v5038_v52  ;;  %1074 = vmatprep.subr.bf16.mxu0 %v5077_v61  ;;  %v5125_v52 = vld [vmem:[%s6913_s1 + $0x430] ss:$8 sps:$4 sm:$0xff]   ;;  %v5118_v61 = vld [vmem:[%s6913_s1 + $0x3cc] ss:$8 sps:$4 sm:$0xff]  }
  0x5c   :  { %713 = vmatprep.subr.bf16.mxu1 %v701_v54  ;;  %v5106_v54 = vld [vmem:[%s6913_s1 + $0x358] ss:$8 sps:$4 sm:$0xff]  }
  0x5e   :  { %1075 = vmatpush1.bf16.msra.mxu0 %v5075_v3  ;;  %v5116_v3 = vld [vmem:[%s6913_s1 + $0x3c8] ss:$8 sps:$4 sm:$0xff]  }
  0x5f   :  { %714 = vmatpush1.bf16.msra.mxu1 %v698_v58  ;;  %1076 = vmatprep.subr.bf16.mxu0 %v1064_v5  ;;  %v5139_v58 = vld [vmem:[%s6913_s1 + $0x454] ss:$8 sps:$4 sm:$0xff]   ;;  %v5143_v5 = vld [vmem:[%s6913_s1 + $0x460] ss:$8 sps:$4 sm:$0xff]  }
  0x60   :  { %945 = vmatprep.subr.bf16.mxu1 %v5050_v59  ;;  %v4399_v59 = vld [vmem:[%s6913_s1 + $0x470] sm:$0x11] }
  0x62   :  { %4237 = vmatmul.mubr.msk.bf16.vlgmr.msra.gmra.mrb[12].mxu1 %vm103_vm1, %v4213_v63  ;;  %1077 = vmatpush1.bf16.msra.mxu0 %v1061_v8  ;;  %v5145_v63 = vld [vmem:[%s6913_s1 + $0x464] ss:$8 sps:$4 sm:$0xff]   ;;  %v5122_v8 = vld [vmem:[%s6913_s1 + $0x3d8] ss:$8 sps:$4 sm:$0xff]  }
  0x63   :  { %946 = vmatpush1.bf16.msra.mxu1 %v5048_v0  ;;  %977 = vmatprep.mubr.bf16.mxu1 %v5513_v2  ;;  %v4411_v0 = vcombine.high %v4399_v59, %v4399_v59 }
  0x64   :  { %947 = vmatprep.subr.bf16.mxu1 %v5056_v1  ;;  %1308 = vmatprep.subr.bf16.mxu0 %v5087_v9  ;;  %v4313_v1 = vld [vmem:[%s6912_s0 + $0x9] sm:$0x1]  ;;  %v5130_v9 = vld [vmem:[%s6913_s1 + $0x3ec] ss:$8 sps:$4 sm:$0xff]  }
  0x65   :  { %4312 = vmatmul.mubr.msk.bf16.vlgmr.msra.gmra.mrb[12].mxu0 %vm103_vm1, %v4288_v12  ;;  %v5128_v12 = vld [vmem:[%s6913_s1 + $0x3e8] ss:$8 sps:$4 sm:$0xff]  }
  0x66   :  { %1309 = vmatpush1.bf16.msra.mxu0 %v5085_v13  ;;  %1340 = vmatprep.mubr.bf16.mxu0 %v5513_v2  ;;  %v5136_v13 = vld [vmem:[%s6913_s1 + $0x3fc] ss:$8 sps:$4 sm:$0xff]  }
  0x67   :  { %948 = vmatpush1.bf16.msra.mxu1 %v5054_v6  ;;  %1310 = vmatprep.subr.bf16.mxu0 %v5093_v15  ;;  %v4410_v6 = vcombine.low %v4399_v59, %v4399_v59  ;;  %v5153_v15 = vld [vmem:[%s6913_s1 + $0x4d0] ss:$8 sps:$4 sm:$0xff]   ;;  %v5199_v59 = vld [vmem:[%s6913_s1 + $0x5a0] ss:$8 sps:$4 sm:$0xff]  }
  0x68   :  { %949 = vmatprep.subr.bf16.mxu1 %v5062_v7  ;;  %v1548_v7 = vand.u32 %v4411_v0, %v5590_v16  ;;  %v5205_v0 = vld [vmem:[%s6913_s1 + $0x5b0] ss:$8 sps:$4 sm:$0xff]  }
  0x6a   :  { %1311 = vmatpush1.bf16.msra.mxu0 %v5091_v20  ;;  %v5142_v20 = vld [vmem:[%s6913_s1 + $0x40c] ss:$8 sps:$4 sm:$0xff]  }
  0x6b   :  { %950 = vmatpush1.bf16.msra.mxu1 %v5060_v10  ;;  %1312 = vmatprep.subr.bf16.mxu0 %v5099_v21  ;;  %v1545_v10 = vand.u32 %v4410_v6, %v5590_v16  ;;  %v5192_v6 = vld [vmem:[%s6913_s1 + $0x53c] ss:$8 sps:$4 sm:$0xff]  }
  0x6c   :  { %951 = vmatprep.subr.bf16.mxu1 %v5068_v11  ;;  %v5155_v11 = vld [vmem:[%s6913_s1 + $0x4d4] ss:$8 sps:$4 sm:$0xff]  }
  0x6e   :  { %1313 = vmatpush1.bf16.msra.mxu0 %v5097_v25 }
  0x6f   :  { %952 = vmatpush1.bf16.msra.mxu1 %v5066_v17  ;;  %1314 = vmatprep.subr.bf16.mxu0 %v5105_v26  ;;  %v4374_v17 = vld [vmem:[%s6913_s1 + $0x418] sm:$0x11] }
  0x70   :  { %953 = vmatprep.subr.bf16.mxu1 %v5074_v18  ;;  %v5161_v18 = vld [vmem:[%s6913_s1 + $0x4e4] ss:$8 sps:$4 sm:$0xff]   ;;  %v4386_v21 = vcombine.high %v4374_v17, %v4374_v17  ;;  %v4385_v25 = vcombine.low %v4374_v17, %v4374_v17  ;;  %v4474_v17 = vld [vmem:[%s6913_s1 + $0x578] sm:$0x11] }
  0x72   :  { %1315 = vmatpush1.bf16.msra.mxu0 %v5103_v30  ;;  %v1427_v26 = vand.u32 %v4386_v21, %v5590_v16  ;;  %v1424_v30 = vand.u32 %v4385_v25, %v5590_v16  ;;  %v5229_v21 = vld [vmem:[%s6913_s1 + $0x644] ss:$8 sps:$4 sm:$0xff]   ;;  %v4486_v25 = vcombine.high %v4474_v17, %v4474_v17 }
  0x73   :  { %954 = vmatpush1.bf16.msra.mxu1 %v5072_v22  ;;  %1316 = vmatprep.subr.bf16.mxu0 %v5111_v31  ;;  %v5159_v22 = vld [vmem:[%s6913_s1 + $0x4e0] ss:$8 sps:$4 sm:$0xff]   ;;  %v5152_v31 = vld [vmem:[%s6913_s1 + $0x47c] ss:$8 sps:$4 sm:$0xff]  }
  0x74   :  { %955 = vmatprep.subr.bf16.mxu1 %v943_v24  ;;  %v5140_v24 = vld [vmem:[%s6913_s1 + $0x408] ss:$8 sps:$4 sm:$0xff]  }
  0x76   :  { %1317 = vmatpush1.bf16.msra.mxu0 %v5109_v36  ;;  %v5150_v36 = vld [vmem:[%s6913_s1 + $0x478] ss:$8 sps:$4 sm:$0xff]  }
  0x77   :  { %956 = vmatpush1.bf16.msra.mxu1 %v940_v28  ;;  %1318 = vmatprep.subr.bf16.mxu0 %v1306_v38  ;;  %v5173_v28 = vld [vmem:[%s6913_s1 + $0x504] ss:$8 sps:$4 sm:$0xff]   ;;  %v5177_v38 = vld [vmem:[%s6913_s1 + $0x510] ss:$8 sps:$4 sm:$0xff]  }
  0x78   :  { %1187 = vmatprep.subr.bf16.mxu1 %v5084_v29  ;;  %v4449_v29 = vld [vmem:[%s6913_s1 + $0x520] sm:$0x11] }
  0x7a   :  { %4287 = vmatmul.mubr.msk.bf16.vlgmr.msra.gmra.mrb[16].mxu1 %vm103_vm1, %v4263_v33  ;;  %1319 = vmatpush1.bf16.msra.mxu0 %v1303_v41  ;;  %v5179_v33 = vld [vmem:[%s6913_s1 + $0x514] ss:$8 sps:$4 sm:$0xff]   ;;  %v5156_v41 = vld [vmem:[%s6913_s1 + $0x488] ss:$8 sps:$4 sm:$0xff]  }
  0x7b   :  { %1188 = vmatpush1.bf16.msra.mxu1 %v5082_v34  ;;  %1219 = vmatprep.mubr.bf16.mxu1 %v5513_v2  ;;  %v4461_v34 = vcombine.high %v4449_v29, %v4449_v29 }
  0x7c   :  { %1189 = vmatprep.subr.bf16.mxu1 %v5090_v35  ;;  %1550 = vmatprep.subr.bf16.mxu0 %v5121_v42  ;;  %v4363_v35 = vld [vmem:[%s6912_s0 + $0xb] sm:$0x1]  ;;  %v5164_v42 = vld [vmem:[%s6913_s1 + $0x49c] ss:$8 sps:$4 sm:$0xff]  }
  0x7d   :  { %4362 = vmatmul.mubr.msk.bf16.vlgmr.msra.gmra.mrb[16].mxu0 %vm103_vm1, %v4338_v45  ;;  %v5162_v45 = vld [vmem:[%s6913_s1 + $0x498] ss:$8 sps:$4 sm:$0xff]  }
  0x7e   :  { %1551 = vmatpush1.bf16.msra.mxu0 %v5119_v46  ;;  %1582 = vmatprep.mubr.bf16.mxu0 %v5513_v2  ;;  %v5170_v46 = vld [vmem:[%s6913_s1 + $0x4ac] ss:$8 sps:$4 sm:$0xff]  }
  0x7f   :  { %1190 = vmatpush1.bf16.msra.mxu1 %v5088_v39  ;;  %1552 = vmatprep.subr.bf16.mxu0 %v5127_v48  ;;  %v4460_v39 = vcombine.low %v4449_v29, %v4449_v29  ;;  %v5187_v48 = vld [vmem:[%s6913_s1 + $0x580] ss:$8 sps:$4 sm:$0xff]   ;;  %v5233_v29 = vld [vmem:[%s6913_s1 + $0x650] ss:$8 sps:$4 sm:$0xff]  }
  0x80   :  { %1191 = vmatprep.subr.bf16.mxu1 %v5096_v40  ;;  %v1790_v40 = vand.u32 %v4461_v34, %v5590_v16  ;;  %v5239_v34 = vld [vmem:[%s6913_s1 + $0x660] ss:$8 sps:$4 sm:$0xff]  }
  0x82   :  { %1553 = vmatpush1.bf16.msra.mxu0 %v5125_v52  ;;  %v5176_v52 = vld [vmem:[%s6913_s1 + $0x4bc] ss:$8 sps:$4 sm:$0xff]  }
  0x83   :  { %1192 = vmatpush1.bf16.msra.mxu1 %v5094_v43  ;;  %1554 = vmatprep.subr.bf16.mxu0 %v5133_v53  ;;  %v1787_v43 = vand.u32 %v4460_v39, %v5590_v16  ;;  %v5226_v39 = vld [vmem:[%s6913_s1 + $0x5ec] ss:$8 sps:$4 sm:$0xff]  }
  0x84   :  { %1193 = vmatprep.subr.bf16.mxu1 %v5102_v44  ;;  %v5189_v44 = vld [vmem:[%s6913_s1 + $0x584] ss:$8 sps:$4 sm:$0xff]  }
  0x86   :  { %1555 = vmatpush1.bf16.msra.mxu0 %v5131_v57 }
  0x87   :  { %1194 = vmatpush1.bf16.msra.mxu1 %v5100_v49  ;;  %1556 = vmatprep.subr.bf16.mxu0 %v5139_v58  ;;  %v4424_v49 = vld [vmem:[%s6913_s1 + $0x4c8] sm:$0x11] }
  0x88   :  { %1195 = vmatprep.subr.bf16.mxu1 %v5108_v50  ;;  %v5195_v50 = vld [vmem:[%s6913_s1 + $0x594] ss:$8 sps:$4 sm:$0xff]   ;;  %v4436_v53 = vcombine.high %v4424_v49, %v4424_v49  ;;  %v4435_v57 = vcombine.low %v4424_v49, %v4424_v49  ;;  %v4524_v49 = vld [vmem:[%s6913_s1 + $0x628] sm:$0x11] }
  0x8a   :  { %1557 = vmatpush1.bf16.msra.mxu0 %v5137_v62  ;;  %v1669_v58 = vand.u32 %v4436_v53, %v5590_v16  ;;  %v1666_v62 = vand.u32 %v4435_v57, %v5590_v16  ;;  %v5263_v53 = vld [vmem:[%s6913_s1 + $0x6f4] ss:$8 sps:$4 sm:$0xff]   ;;  %v4536_v57 = vcombine.high %v4524_v49, %v4524_v49 }
  0x8b   :  { %1196 = vmatpush1.bf16.msra.mxu1 %v5106_v54  ;;  %1558 = vmatprep.subr.bf16.mxu0 %v5145_v63  ;;  %v5193_v54 = vld [vmem:[%s6913_s1 + $0x590] ss:$8 sps:$4 sm:$0xff]   ;;  %v5186_v63 = vld [vmem:[%s6913_s1 + $0x52c] ss:$8 sps:$4 sm:$0xff]  }
  0x8c   :  { %1197 = vmatprep.subr.bf16.mxu1 %v1185_v56  ;;  %v5174_v56 = vld [vmem:[%s6913_s1 + $0x4b8] ss:$8 sps:$4 sm:$0xff]  }
  0x8e   :  { %1559 = vmatpush1.bf16.msra.mxu0 %v5143_v5  ;;  %v5184_v5 = vld [vmem:[%s6913_s1 + $0x528] ss:$8 sps:$4 sm:$0xff]  }
  0x8f   :  { %1198 = vmatpush1.bf16.msra.mxu1 %v1182_v60  ;;  %1560 = vmatprep.subr.bf16.mxu0 %v1548_v7  ;;  %v5207_v60 = vld [vmem:[%s6913_s1 + $0x5b4] ss:$8 sps:$4 sm:$0xff]   ;;  %v5211_v7 = vld [vmem:[%s6913_s1 + $0x5c0] ss:$8 sps:$4 sm:$0xff]  }
  0x90   :  { %1429 = vmatprep.subr.bf16.mxu1 %v5118_v61  ;;  %v4499_v61 = vld [vmem:[%s6913_s1 + $0x5d0] sm:$0x11] }
  0x92   :  { %4337 = vmatmul.mubr.msk.bf16.vlgmr.msra.gmra.mrb[20].mxu1 %vm103_vm1, %v4313_v1  ;;  %1561 = vmatpush1.bf16.msra.mxu0 %v1545_v10  ;;  %v5213_v1 = vld [vmem:[%s6913_s1 + $0x5c4] ss:$8 sps:$4 sm:$0xff]   ;;  %v5190_v10 = vld [vmem:[%s6913_s1 + $0x538] ss:$8 sps:$4 sm:$0xff]  }
  0x93   :  { %1430 = vmatpush1.bf16.msra.mxu1 %v5116_v3  ;;  %1461 = vmatprep.mubr.bf16.mxu1 %v5513_v2  ;;  %v4511_v3 = vcombine.high %v4499_v61, %v4499_v61 }
  0x94   :  { %1431 = vmatprep.subr.bf16.mxu1 %v5124_v4  ;;  %1792 = vmatprep.subr.bf16.mxu0 %v5155_v11  ;;  %v4413_v4 = vld [vmem:[%s6912_s0 + $0xd] sm:$0x1] }
  0x95   :  { %4412 = vmatmul.mubr.msk.bf16.vlgmr.msra.gmra.mrb[20].mxu0 %vm103_vm1, %v4388_v14  ;;  %v5198_v11 = vld [vmem:[%s6913_s1 + $0x54c] ss:$8 sps:$4 sm:$0xff]   ;;  %v5196_v14 = vld [vmem:[%s6913_s1 + $0x548] ss:$8 sps:$4 sm:$0xff]  }
  0x96   :  { %1793 = vmatpush1.bf16.msra.mxu0 %v5153_v15  ;;  %1824 = vmatprep.mubr.bf16.mxu0 %v5513_v2  ;;  %v5204_v15 = vld [vmem:[%s6913_s1 + $0x55c] ss:$8 sps:$4 sm:$0xff]  }
  0x97   :  { %1432 = vmatpush1.bf16.msra.mxu1 %v5122_v8  ;;  %1794 = vmatprep.subr.bf16.mxu0 %v5161_v18  ;;  %v4510_v8 = vcombine.low %v4499_v61, %v4499_v61  ;;  %v4488_v18 = vld [vmem:[%s6912_s0 + $0x10] sm:$0x1]  ;;  %v5267_v61 = vld [vmem:[%s6913_s1 + $0x700] ss:$8 sps:$4 sm:$0xff]  }
  0x98   :  { %1433 = vmatprep.subr.bf16.mxu1 %v5130_v9  ;;  %v2032_v9 = vand.u32 %v4511_v3, %v5590_v16 }
  0x9a   :  { %1795 = vmatpush1.bf16.msra.mxu0 %v5159_v22  ;;  %v5210_v22 = vld [vmem:[%s6913_s1 + $0x56c] ss:$8 sps:$4 sm:$0xff]  }
  0x9b   :  { %1434 = vmatpush1.bf16.msra.mxu1 %v5128_v12  ;;  %1796 = vmatprep.subr.bf16.mxu0 %v5167_v23  ;;  %v5223_v12 = vld [vmem:[%s6913_s1 + $0x634] ss:$8 sps:$4 sm:$0xff]   ;;  %v5227_v23 = vld [vmem:[%s6913_s1 + $0x640] ss:$8 sps:$4 sm:$0xff]  }
  0x9c   :  { %1435 = vmatprep.subr.bf16.mxu1 %v5136_v13  ;;  %v2029_v13 = vand.u32 %v4510_v8, %v5590_v16 }
  0x9e   :  { %1797 = vmatpush1.bf16.msra.mxu0 %v5165_v27  ;;  %v4485_v27 = vcombine.low %v4474_v17, %v4474_v17 }
  0x9f   :  { %1436 = vmatpush1.bf16.msra.mxu1 %v5134_v19  ;;  %1798 = vmatprep.subr.bf16.mxu0 %v5173_v28  ;;  %v5221_v19 = vld [vmem:[%s6913_s1 + $0x630] ss:$8 sps:$4 sm:$0xff]   ;;  %v1911_v28 = vand.u32 %v4486_v25, %v5590_v16 }
  0xa0   :  { %1437 = vmatprep.subr.bf16.mxu1 %v5142_v20  ;;  %v5202_v20 = vld [vmem:[%s6913_s1 + $0x558] ss:$8 sps:$4 sm:$0xff]  }
  0xa2   :  { %1799 = vmatpush1.bf16.msra.mxu0 %v5171_v32  ;;  %v1908_v32 = vand.u32 %v4485_v27, %v5590_v16 }
  0xa3   :  { %1438 = vmatpush1.bf16.msra.mxu1 %v5140_v24  ;;  %1800 = vmatprep.subr.bf16.mxu0 %v5179_v33  ;;  %v5235_v24 = vld [vmem:[%s6913_s1 + $0x654] ss:$8 sps:$4 sm:$0xff]  }
  0xa4   :  { %1439 = vmatprep.subr.bf16.mxu1 %v1427_v26  ;;  %v5208_v26 = vld [vmem:[%s6913_s1 + $0x568] ss:$8 sps:$4 sm:$0xff]   ;;  %v5220_v33 = vld [vmem:[%s6913_s1 + $0x5dc] ss:$8 sps:$4 sm:$0xff]  }
  0xa6   :  { %1801 = vmatpush1.bf16.msra.mxu0 %v5177_v38  ;;  %v5218_v38 = vld [vmem:[%s6913_s1 + $0x5d8] ss:$8 sps:$4 sm:$0xff]  }
  0xa7   :  { %1440 = vmatpush1.bf16.msra.mxu1 %v1424_v30  ;;  %1802 = vmatprep.subr.bf16.mxu0 %v1790_v40  ;;  %v5241_v30 = vld [vmem:[%s6913_s1 + $0x664] ss:$8 sps:$4 sm:$0xff]   ;;  %v5245_v40 = vld [vmem:[%s6913_s1 + $0x670] ss:$8 sps:$4 sm:$0xff]  }
  0xa8   :  { %1671 = vmatprep.subr.bf16.mxu1 %v5152_v31  ;;  %v4549_v31 = vld [vmem:[%s6913_s1 + $0x680] sm:$0x11] }
  0xaa   :  { %4387 = vmatmul.mubr.msk.bf16.vlgmr.msra.gmra.mrb[24].mxu1 %vm103_vm1, %v4363_v35  ;;  %1803 = vmatpush1.bf16.msra.mxu0 %v1787_v43  ;;  %v5247_v35 = vld [vmem:[%s6913_s1 + $0x674] ss:$8 sps:$4 sm:$0xff]   ;;  %v5224_v43 = vld [vmem:[%s6913_s1 + $0x5e8] ss:$8 sps:$4 sm:$0xff]  }
  0xab   :  { %1672 = vmatpush1.bf16.msra.mxu1 %v5150_v36  ;;  %1703 = vmatprep.mubr.bf16.mxu1 %v5513_v2  ;;  %v4561_v36 = vcombine.high %v4549_v31, %v4549_v31 }
  0xac   :  { %1673 = vmatprep.subr.bf16.mxu1 %v5158_v37  ;;  %2034 = vmatprep.subr.bf16.mxu0 %v5189_v44  ;;  %v4463_v37 = vld [vmem:[%s6912_s0 + $0xf] sm:$0x1]  ;;  %v5232_v44 = vld [vmem:[%s6913_s1 + $0x5fc] ss:$8 sps:$4 sm:$0xff]  }
  0xad   :  { %4462 = vmatmul.mubr.msk.bf16.vlgmr.msra.gmra.mrb[24].mxu0 %vm103_vm1, %v4438_v47  ;;  %v5230_v47 = vld [vmem:[%s6913_s1 + $0x5f8] ss:$8 sps:$4 sm:$0xff]  }
  0xae   :  { %2035 = vmatpush1.bf16.msra.mxu0 %v5187_v48  ;;  %2066 = vmatprep.mubr.bf16.mxu0 %v5513_v2  ;;  %v5238_v48 = vld [vmem:[%s6913_s1 + $0x60c] ss:$8 sps:$4 sm:$0xff]  }
  0xaf   :  { %1674 = vmatpush1.bf16.msra.mxu1 %v5156_v41  ;;  %2036 = vmatprep.subr.bf16.mxu0 %v5195_v50  ;;  %v4560_v41 = vcombine.low %v4549_v31, %v4549_v31  ;;  %v4538_v50 = vld [vmem:[%s6912_s0 + $0x12] sm:$0x1] }
  0xb0   :  { %1675 = vmatprep.subr.bf16.mxu1 %v5164_v42  ;;  %v2274_v42 = vand.u32 %v4561_v36, %v5590_v16 }
  0xb2   :  { %2037 = vmatpush1.bf16.msra.mxu0 %v5193_v54  ;;  %v5244_v54 = vld [vmem:[%s6913_s1 + $0x61c] ss:$8 sps:$4 sm:$0xff]  }
  0xb3   :  { %1676 = vmatpush1.bf16.msra.mxu1 %v5162_v45  ;;  %2038 = vmatprep.subr.bf16.mxu0 %v5201_v55  ;;  %v5257_v45 = vld [vmem:[%s6913_s1 + $0x6e4] ss:$8 sps:$4 sm:$0xff]   ;;  %v5261_v55 = vld [vmem:[%s6913_s1 + $0x6f0] ss:$8 sps:$4 sm:$0xff]  }
  0xb4   :  { %1677 = vmatprep.subr.bf16.mxu1 %v5170_v46  ;;  %v2271_v46 = vand.u32 %v4560_v41, %v5590_v16 }
  0xb6   :  { %2039 = vmatpush1.bf16.msra.mxu0 %v5199_v59  ;;  %v4535_v59 = vcombine.low %v4524_v49, %v4524_v49 }
  0xb7   :  { %1678 = vmatpush1.bf16.msra.mxu1 %v5168_v51  ;;  %2040 = vmatprep.subr.bf16.mxu0 %v5207_v60  ;;  %v5255_v51 = vld [vmem:[%s6913_s1 + $0x6e0] ss:$8 sps:$4 sm:$0xff]   ;;  %v2153_v60 = vand.u32 %v4536_v57, %v5590_v16 }
  0xb8   :  { %1679 = vmatprep.subr.bf16.mxu1 %v5176_v52  ;;  %v5236_v52 = vld [vmem:[%s6913_s1 + $0x608] ss:$8 sps:$4 sm:$0xff]  }
  0xba   :  { %2041 = vmatpush1.bf16.msra.mxu0 %v5205_v0 }
  0xbb   :  { %1680 = vmatpush1.bf16.msra.mxu1 %v5174_v56  ;;  %2042 = vmatprep.subr.bf16.mxu0 %v5213_v1  ;;  %v5269_v56 = vld [vmem:[%s6913_s1 + $0x704] ss:$8 sps:$4 sm:$0xff]  }
  0xbc   :  { %1681 = vmatprep.subr.bf16.mxu1 %v1669_v58  ;;  %v5242_v58 = vld [vmem:[%s6913_s1 + $0x618] ss:$8 sps:$4 sm:$0xff]  }
  0xbe   :  { %2043 = vmatpush1.bf16.msra.mxu0 %v5211_v7 }
  0xbf   :  { %1682 = vmatpush1.bf16.msra.mxu1 %v1666_v62  ;;  %2044 = vmatprep.subr.bf16.mxu0 %v2032_v9  ;;  %v5275_v62 = vld [vmem:[%s6913_s1 + $0x714] ss:$8 sps:$4 sm:$0xff]  }
  0xc0   :  { %1913 = vmatprep.subr.bf16.mxu1 %v5186_v63 }
  0xc2   :  { %4437 = vmatmul.mubr.msk.bf16.vlgmr.msra.gmra.mrb[28].mxu1 %vm103_vm1, %v4413_v4  ;;  %2045 = vmatpush1.bf16.msra.mxu0 %v2029_v13 }
  0xc3   :  { %1914 = vmatpush1.bf16.msra.mxu1 %v5184_v5  ;;  %1945 = vmatprep.mubr.bf16.mxu1 %v5513_v2 }
  0xc4   :  { %1915 = vmatprep.subr.bf16.mxu1 %v5192_v6  ;;  %2276 = vmatprep.subr.bf16.mxu0 %v5223_v12 }
  0xc5   :  { %4512 = vmatmul.mubr.msk.bf16.vlgmr.msra.gmra.mrb[28].mxu0 %vm103_vm1, %v4488_v18 }
  0xc6   :  { %2277 = vmatpush1.bf16.msra.mxu0 %v5221_v19  ;;  %2308 = vmatprep.mubr.bf16.mxu0 %v5513_v2 }
  0xc7   :  { %1916 = vmatpush1.bf16.msra.mxu1 %v5190_v10  ;;  %2278 = vmatprep.subr.bf16.mxu0 %v5229_v21 }
  0xc8   :  { %1917 = vmatprep.subr.bf16.mxu1 %v5198_v11 }
  0xca   :  { %2279 = vmatpush1.bf16.msra.mxu0 %v5227_v23 }
  0xcb   :  { %1918 = vmatpush1.bf16.msra.mxu1 %v5196_v14  ;;  %2280 = vmatprep.subr.bf16.mxu0 %v5235_v24 }
  0xcc   :  { %1919 = vmatprep.subr.bf16.mxu1 %v5204_v15 }
  0xce   :  { %2281 = vmatpush1.bf16.msra.mxu0 %v5233_v29 }
  0xcf   :  { %1920 = vmatpush1.bf16.msra.mxu1 %v5202_v20  ;;  %2282 = vmatprep.subr.bf16.mxu0 %v5241_v30 }
  0xd0   :  { %1921 = vmatprep.subr.bf16.mxu1 %v5210_v22 }
  0xd2   :  { %2283 = vmatpush1.bf16.msra.mxu0 %v5239_v34 }
  0xd3   :  { %1922 = vmatpush1.bf16.msra.mxu1 %v5208_v26  ;;  %2284 = vmatprep.subr.bf16.mxu0 %v5247_v35 }
  0xd4   :  { %1923 = vmatprep.subr.bf16.mxu1 %v1911_v28 }
  0xd6   :  { %2285 = vmatpush1.bf16.msra.mxu0 %v5245_v40 }
  0xd7   :  { %1924 = vmatpush1.bf16.msra.mxu1 %v1908_v32  ;;  %2286 = vmatprep.subr.bf16.mxu0 %v2274_v42 }
  0xd8   :  { %2155 = vmatprep.subr.bf16.mxu1 %v5220_v33 }
  0xda   :  { %4487 = vmatmul.mubr.msk.bf16.vlgmr.msra.gmra.mrb[32].mxu1 %vm103_vm1, %v4463_v37  ;;  %2287 = vmatpush1.bf16.msra.mxu0 %v2271_v46 }
  0xdb   :  { %2156 = vmatpush1.bf16.msra.mxu1 %v5218_v38  ;;  %2187 = vmatprep.mubr.bf16.mxu1 %v5513_v2 }
  0xdc   :  { %2157 = vmatprep.subr.bf16.mxu1 %v5226_v39  ;;  %2518 = vmatprep.subr.bf16.mxu0 %v5257_v45 }
  0xdd   :  { %4562 = vmatmul.mubr.msk.bf16.vlgmr.msra.gmra.mrb[32].mxu0 %vm103_vm1, %v4538_v50 }
  0xde   :  { %2519 = vmatpush1.bf16.msra.mxu0 %v5255_v51  ;;  %2550 = vmatprep.mubr.bf16.mxu0 %v5513_v2 }
  0xdf   :  { %2158 = vmatpush1.bf16.msra.mxu1 %v5224_v43  ;;  %2520 = vmatprep.subr.bf16.mxu0 %v5263_v53 }
  0xe0   :  { %2159 = vmatprep.subr.bf16.mxu1 %v5232_v44 }
  0xe2   :  { %2521 = vmatpush1.bf16.msra.mxu0 %v5261_v55 }
  0xe3   :  { %2160 = vmatpush1.bf16.msra.mxu1 %v5230_v47  ;;  %2522 = vmatprep.subr.bf16.mxu0 %v5269_v56 }
  0xe4   :  { %2161 = vmatprep.subr.bf16.mxu1 %v5238_v48 }
  0xe7   :  { %2162 = vmatpush1.bf16.msra.mxu1 %v5236_v52 }
  0xe8   :  { %2163 = vmatprep.subr.bf16.mxu1 %v5244_v54 }
  0xe9   :  { %10 = vsyncpa [#allocation3], 0  ;;  %v4599_v63 = vld [vmem:[%s6913_s1 + $0x730] sm:$0x11]  ;;  %v2150_v0 = vand.u32 %v4535_v59, %v5590_v16  ;;  %2523 = vmatpush1.bf16.msra.mxu0 %v5267_v61  ;;  %v5281_v5 = vld [vmem:[%s6913_s1 + $0x724] ss:$8 sps:$4 sm:$0xff]  }
  0xea   :  { %v5254_v1 = vld [vmem:[%s6913_s1 + $0x68c] ss:$8 sps:$4 sm:$0xff]   ;;  %v5273_v3 = vld [vmem:[%s6913_s1 + $0x710] ss:$8 sps:$4 sm:$0xff]   ;;  %2524 = vmatprep.subr.bf16.mxu0 %v5275_v62  ;;  %v4611_v6 = vcombine.high %v4599_v63, %v4599_v63  ;;  %v5260_v12 = vld [vmem:[%s6913_s1 + $0x69c] ss:$8 sps:$4 sm:$0xff]   ;;  %v4610_v14 = vcombine.low %v4599_v63, %v4599_v63 }
  0xeb   :  { %2164 = vmatpush1.bf16.msra.mxu1 %v5242_v58  ;;  %v4513_v9 = vld [vmem:[%s6912_s0 + $0x11] sm:$0x1]  ;;  %v5279_v13 = vld [vmem:[%s6913_s1 + $0x720] ss:$8 sps:$4 sm:$0xff]   ;;  %v5266_v18 = vld [vmem:[%s6913_s1 + $0x6ac] ss:$8 sps:$4 sm:$0xff]  }
  0xec   :  { %2165 = vmatprep.subr.bf16.mxu1 %v2153_v60  ;;  %v5252_v10 = vld [vmem:[%s6913_s1 + $0x688] ss:$8 sps:$4 sm:$0xff]   ;;  %v2516_v15 = vand.u32 %v4611_v6, %v5590_v16  ;;  %v5258_v17 = vld [vmem:[%s6913_s1 + $0x698] ss:$8 sps:$4 sm:$0xff]   ;;  %v2513_v19 = vand.u32 %v4610_v14, %v5590_v16  ;;  %v5291_v20 = vld [vmem:[%s6913_s1 + $0x794] ss:$8 sps:$4 sm:$0xff]  }
  0xed   :  { %v6335_v4 = vpop.f32.mrb[0].mxu1  ;;  %2525 = vmatpush1.bf16.msra.mxu0 %v5273_v3  ;;  %v5264_v22 = vld [vmem:[%s6913_s1 + $0x6a8] ss:$8 sps:$4 sm:$0xff]   ;;  %v5272_v23 = vld [vmem:[%s6913_s1 + $0x6bc] ss:$8 sps:$4 sm:$0xff]   ;;  %s5514_s16 = smov [#allocation2]  }
  0xee   :  { %v6340_v7 = vpop.f32.mrb[1].mxu1  ;;  %2526 = vmatprep.subr.bf16.mxu0 %v5281_v5  ;;  %v4588_v25 = vld [vmem:[%s6912_s0 + $0x14] sm:$0x1]  ;;  %v5289_v26 = vld [vmem:[%s6913_s1 + $0x790] ss:$8 sps:$4 sm:$0xff]   ;;  %s4092_s17 = sshll.u32 %s5514_s16, 4  ;;  %s4093_s17 = int_to_ptr.vmem [resolvable:$true] %s4092_s17 }
  0xef   :  { %v154_v8 = vpop.f32.mrb[2].mxu1  ;;  %2166 = vmatpush1.bf16.msra.mxu1 %v2150_v0  ;;  %v4574_v28 = vld [vmem:[%s6913_s1 + $0x6d8] sm:$0x11]  ;;  %v5297_v29 = vld [vmem:[%s6913_s1 + $0x7a4] ss:$8 sps:$4 sm:$0xff]   ;;  %s5489_s18 = scalar_lea.vmem %s4093_s17, 32  ;;  %p5494_p1 = scmp.lt.s32.totalorder %s4093_s17, %s4093_s17 }
  0xf0   :  { %v155_v11 = vpop.f32.mrb[3].mxu1  ;;  %2397 = vmatprep.subr.bf16.mxu1 %v5254_v1  ;;  %v374_v21 = vpop.f32.mrb[0].mxu0  ;;  %v5270_v31 = vld [vmem:[%s6913_s1 + $0x6b8] ss:$8 sps:$4 sm:$0xff]   ;;  %v5278_v32 = vld [vmem:[%s6913_s1 + $0x6cc] ss:$8 sps:$4 sm:$0xff]   ;;  %v4586_v33 = vcombine.high %v4574_v28, %v4574_v28  ;;  %v4585_v37 = vcombine.low %v4574_v28, %v4574_v28  ;;  %p5490_p0 = scmp.ne.s32.totalorder %s4093_s17, %s5489_s18  ;;  %p5495_p2 = scmp.lt.s32.totalorder %s5489_s18, %s5489_s18 }
  0xf1   :  { %2527 = vmatpush1.bf16.msra.mxu0 %v5279_v13  ;;  %v376_v24 = vpop.f32.mrb[1].mxu0  ;;  %v5295_v34 = vld [vmem:[%s6913_s1 + $0x7a0] ss:$8 sps:$4 sm:$0xff]   ;;  %v5303_v35 = vld [vmem:[%s6913_s1 + $0x7b4] ss:$8 sps:$4 sm:$0xff]  }
  0xf2   :  { %4537 = vmatmul.mubr.msk.bf16.vlgmr.msra.gmra.mrb[36].mxu1 %vm103_vm1, %v4513_v9  ;;  %2528 = vmatprep.subr.bf16.mxu0 %v2516_v15  ;;  %v378_v27 = vpop.f32.mrb[2].mxu0  ;;  %v5276_v36 = vld [vmem:[%s6913_s1 + $0x6c8] ss:$8 sps:$4 sm:$0xff]   ;;  %v2395_v38 = vand.u32 %v4586_v33, %v5590_v16  ;;  %v5309_v40 = vld [vmem:[%s6913_s1 + $0x7c4] ss:$8 sps:$4 sm:$0xff]   ;;  %v2392_v42 = vand.u32 %v4585_v37, %v5590_v16  ;;  %p5496_p3 = por %p5495_p2, %p5494_p1 }
  0xf3   :  { %2398 = vmatpush1.bf16.msra.mxu1 %v5252_v10  ;;  %2429 = vmatprep.mubr.bf16.mxu1 %v5513_v2  ;;  %v379_v30 = vpop.f32.mrb[3].mxu0  ;;  %v5301_v39 = vld [vmem:[%s6913_s1 + $0x7b0] ss:$8 sps:$4 sm:$0xff]   ;;  %v4649_v41 = vld [vmem:[%s6913_s1 + $0x7e0] sm:$0x11] }
  0xf4   :  { %2399 = vmatprep.subr.bf16.mxu1 %v5260_v12  ;;  %v5288_v43 = vld [vmem:[%s6913_s1 + $0x73c] ss:$8 sps:$4 sm:$0xff]   ;;  %v5307_v44 = vld [vmem:[%s6913_s1 + $0x7c0] ss:$8 sps:$4 sm:$0xff]   ;;  %v4661_v47 = vcombine.high %v4649_v41, %v4649_v41  ;;  %v4563_v52 = vld [vmem:[%s6912_s0 + $0x13] sm:$0x1]  ;;  %v4660_v58 = vcombine.low %v4649_v41, %v4649_v41  ;;  %p5497_p4 = pnand %p5496_p3, %p5490_p0 }
  0xf5   :  { %2529 = vmatpush1.bf16.msra.mxu0 %v2513_v19  ;;  %v5315_v46 = vld [vmem:[%s6913_s1 + $0x7d4] ss:$8 sps:$4 sm:$0xff]   ;;  %v5286_v53 = vld [vmem:[%s6913_s1 + $0x738] ss:$8 sps:$4 sm:$0xff]   ;;  %v5292_v61 = vld [vmem:[%s6913_s1 + $0x748] ss:$8 sps:$4 sm:$0xff]  }
  0xf6   :  { %2760 = vmatprep.subr.bf16.mxu0 %v5291_v20  ;;  %v5294_v56 = vld [vmem:[%s6913_s1 + $0x74c] ss:$8 sps:$4 sm:$0xff]   ;;  %v5313_v57 = vld [vmem:[%s6913_s1 + $0x7d0] ss:$8 sps:$4 sm:$0xff]   ;;  %v2758_v60 = vand.u32 %v4661_v47, %v5590_v16  ;;  %v5300_v62 = vld [vmem:[%s6913_s1 + $0x75c] ss:$8 sps:$4 sm:$0xff]   ;;  %v2755_v63 = vand.u32 %v4660_v58, %v5590_v16 }
  0xf7   :  { %2400 = vmatpush1.bf16.msra.mxu1 %v5258_v17  ;;  %v5325_v0 = vld [vmem:[%s6913_s1 + $0x844] ss:$8 sps:$4 sm:$0xff]   ;;  %v5298_v3 = vld [vmem:[%s6913_s1 + $0x758] ss:$8 sps:$4 sm:$0xff]   ;;  %v4638_v6 = vld [vmem:[%s6912_s0 + $0x16] sm:$0x1] }
  0xf8   :  { %2401 = vmatprep.subr.bf16.mxu1 %v5266_v18  ;;  %4612 = vmatmul.mubr.msk.bf16.vlgmr.msra.gmra.mrb[36].mxu0 %vm103_vm1, %v4588_v25  ;;  %v4624_v9 = vld [vmem:[%s6913_s1 + $0x788] sm:$0x11]  ;;  %v5331_v10 = vld [vmem:[%s6913_s1 + $0x854] ss:$8 sps:$4 sm:$0xff]   ;;  %v5329_v15 = vld [vmem:[%s6913_s1 + $0x850] ss:$8 sps:$4 sm:$0xff]  }
  0xf9   :  { %2761 = vmatpush1.bf16.msra.mxu0 %v5289_v26  ;;  %2792 = vmatprep.mubr.bf16.mxu0 %v5513_v2  ;;  %v5304_v12 = vld [vmem:[%s6913_s1 + $0x768] ss:$8 sps:$4 sm:$0xff]   ;;  %v5312_v13 = vld [vmem:[%s6913_s1 + $0x77c] ss:$8 sps:$4 sm:$0xff]   ;;  %v4636_v14 = vcombine.high %v4624_v9, %v4624_v9  ;;  %v5310_v18 = vld [vmem:[%s6913_s1 + $0x778] ss:$8 sps:$4 sm:$0xff]   ;;  %v4635_v19 = vcombine.low %v4624_v9, %v4624_v9 }
  0xfa   :  { %2762 = vmatprep.subr.bf16.mxu0 %v5297_v29  ;;  %v5337_v17 = vld [vmem:[%s6913_s1 + $0x864] ss:$8 sps:$4 sm:$0xff]   ;;  %v5341_v26 = vld [vmem:[%s6913_s1 + $0x870] ss:$8 sps:$4 sm:$0xff]   ;;  %v5383_v9 = vld [vmem:[%s6913_s1 + $0x934] ss:$8 sps:$4 sm:$0xff]  }
  0xfb   :  { %2402 = vmatpush1.bf16.msra.mxu1 %v5264_v22  ;;  %v2637_v20 = vand.u32 %v4636_v14, %v5590_v16  ;;  %v5343_v22 = vld [vmem:[%s6913_s1 + $0x874] ss:$8 sps:$4 sm:$0xff]   ;;  %v5349_v28 = vld [vmem:[%s6913_s1 + $0x884] ss:$8 sps:$4 sm:$0xff]  }
  0xfc   :  { %2403 = vmatprep.subr.bf16.mxu1 %v5272_v23  ;;  %v4699_v23 = vld [vmem:[%s6913_s1 + $0x890] sm:$0x11] }
  0xfd   :  { %2763 = vmatpush1.bf16.msra.mxu0 %v5295_v34  ;;  %v5322_v25 = vld [vmem:[%s6913_s1 + $0x7ec] ss:$8 sps:$4 sm:$0xff]   ;;  %v4711_v29 = vcombine.high %v4699_v23, %v4699_v23 }
  0xfe   :  { %2764 = vmatprep.subr.bf16.mxu0 %v5303_v35  ;;  %v4613_v34 = vld [vmem:[%s6912_s0 + $0x15] sm:$0x1]  ;;  %v5320_v35 = vld [vmem:[%s6913_s1 + $0x7e8] ss:$8 sps:$4 sm:$0xff]  }
  0xff   :  { %2404 = vmatpush1.bf16.msra.mxu1 %v5270_v31  ;;  %v5346_v58 = vld [vmem:[%s6913_s1 + $0x82c] ss:$8 sps:$4 sm:$0xff]  }
 0x100   :  { %2405 = vmatprep.subr.bf16.mxu1 %v5278_v32 }
 0x101   :  { %2765 = vmatpush1.bf16.msra.mxu0 %v5301_v39  ;;  %v5347_v39 = vld [vmem:[%s6913_s1 + $0x880] ss:$8 sps:$4 sm:$0xff]  }
 0x102   :  { %2766 = vmatprep.subr.bf16.mxu0 %v5309_v40  ;;  %v4710_v40 = vcombine.low %v4699_v23, %v4699_v23 }
 0x103   :  { %2406 = vmatpush1.bf16.msra.mxu1 %v5276_v36 }
 0x104   :  { %2407 = vmatprep.subr.bf16.mxu1 %v2395_v38  ;;  %v5328_v38 = vld [vmem:[%s6913_s1 + $0x7fc] ss:$8 sps:$4 sm:$0xff]  }
 0x105   :  { %v255_v45 = vpop.f32.mrb[4].mxu1  ;;  %2767 = vmatpush1.bf16.msra.mxu0 %v5307_v44  ;;  %v5334_v44 = vld [vmem:[%s6913_s1 + $0x80c] ss:$8 sps:$4 sm:$0xff]  }
 0x106   :  { %v256_v48 = vadd.f32 %v255_v45, %v6335_v4  ;;  %v257_v49 = vpop.f32.mrb[5].mxu1  ;;  %2768 = vmatprep.subr.bf16.mxu0 %v5315_v46  ;;  %v5306_v4 = vld [vmem:[%s6913_s1 + $0x76c] ss:$8 sps:$4 sm:$0xff]   ;;  %v2997_v45 = vand.u32 %v4710_v40, %v5590_v16  ;;  %v5380_v40 = vld [vmem:[%s6913_s1 + $0x8dc] ss:$8 sps:$4 sm:$0xff]  }
 0x107   :  { %v258_v50 = vadd.f32 %v257_v49, %v6340_v7  ;;  %v259_v51 = vpop.f32.mrb[6].mxu1  ;;  %2408 = vmatpush1.bf16.msra.mxu1 %v2392_v42  ;;  %v5323_v7 = vld [vmem:[%s6913_s1 + $0x840] ss:$8 sps:$4 sm:$0xff]   ;;  %v3000_v42 = vand.u32 %v4711_v29, %v5590_v16  ;;  %v5359_v46 = vld [vmem:[%s6913_s1 + $0x8f4] ss:$8 sps:$4 sm:$0xff]  }
 0x108   :  { %v6430_v54 = vadd.f32 %v374_v21, %v256_v48  ;;  %v260_v55 = vpop.f32.mrb[7].mxu1  ;;  %2639 = vmatprep.subr.bf16.mxu1 %v5288_v43  ;;  %v616_v1 = vpop.f32.mrb[4].mxu0  ;;  %v5335_v21 = vld [vmem:[%s6913_s1 + $0x860] ss:$8 sps:$4 sm:$0xff]   ;;  %v5340_v49 = vld [vmem:[%s6913_s1 + $0x81c] ss:$8 sps:$4 sm:$0xff]  }
 0x109   :  { %v382_v59 = vadd.f32 %v376_v24, %v258_v50  ;;  %2769 = vmatpush1.bf16.msra.mxu0 %v5313_v57  ;;  %v618_v5 = vpop.f32.mrb[5].mxu0  ;;  %v2634_v24 = vand.u32 %v4635_v19, %v5590_v16  ;;  %v5326_v43 = vld [vmem:[%s6913_s1 + $0x7f8] ss:$8 sps:$4 sm:$0xff]   ;;  %v5332_v48 = vld [vmem:[%s6913_s1 + $0x808] ss:$8 sps:$4 sm:$0xff]  }
 0x10a   :  { %4587 = vmatmul.mubr.msk.bf16.vlgmr.msra.gmra.mrb[40].mxu1 %vm103_vm1, %v4563_v52  ;;  %2770 = vmatprep.subr.bf16.mxu0 %v2758_v60  ;;  %v620_v8 = vpop.f32.mrb[6].mxu0  ;;  %v4688_v51 = vld [vmem:[%s6912_s0 + $0x18] sm:$0x1]  ;;  %v5365_v55 = vld [vmem:[%s6913_s1 + $0x904] ss:$8 sps:$4 sm:$0xff]  }
 0x10b   :  { %2640 = vmatpush1.bf16.msra.mxu1 %v5286_v53  ;;  %2671 = vmatprep.mubr.bf16.mxu1 %v5513_v2  ;;  %v621_v11 = vpop.f32.mrb[7].mxu0  ;;  %v5357_v52 = vld [vmem:[%s6913_s1 + $0x8f0] ss:$8 sps:$4 sm:$0xff]   ;;  %v5363_v60 = vld [vmem:[%s6913_s1 + $0x900] ss:$8 sps:$4 sm:$0xff]  }
 0x10c   :  { %2641 = vmatprep.subr.bf16.mxu1 %v5294_v56  ;;  %v5338_v57 = vld [vmem:[%s6913_s1 + $0x818] ss:$8 sps:$4 sm:$0xff]  }
 0x10d   :  { %2771 = vmatpush1.bf16.msra.mxu0 %v2755_v63 }
 0x10e   :  { %3002 = vmatprep.subr.bf16.mxu0 %v5325_v0 }
 0x10f   :  { %2642 = vmatpush1.bf16.msra.mxu1 %v5292_v61  ;;  %v5371_v61 = vld [vmem:[%s6913_s1 + $0x914] ss:$8 sps:$4 sm:$0xff]  }
 0x110   :  { %2643 = vmatprep.subr.bf16.mxu1 %v5300_v62  ;;  %4662 = vmatmul.mubr.msk.bf16.vlgmr.msra.gmra.mrb[40].mxu0 %vm103_vm1, %v4638_v6  ;;  %v5344_v62 = vld [vmem:[%s6913_s1 + $0x828] ss:$8 sps:$4 sm:$0xff]   ;;  %v5356_v6 = vld [vmem:[%s6913_s1 + $0x89c] ss:$8 sps:$4 sm:$0xff]  }
 0x111   :  { %3003 = vmatpush1.bf16.msra.mxu0 %v5323_v7  ;;  %3034 = vmatprep.mubr.bf16.mxu0 %v5513_v2  ;;  %v5375_v7 = vld [vmem:[%s6913_s1 + $0x920] ss:$8 sps:$4 sm:$0xff]  }
 0x112   :  { %3004 = vmatprep.subr.bf16.mxu0 %v5331_v10 }
 0x113   :  { %2644 = vmatpush1.bf16.msra.mxu1 %v5298_v3  ;;  %v5377_v3 = vld [vmem:[%s6913_s1 + $0x924] ss:$8 sps:$4 sm:$0xff]  }
 0x114   :  { %2645 = vmatprep.subr.bf16.mxu1 %v5306_v4  ;;  %v4749_v4 = vld [vmem:[%s6913_s1 + $0x940] sm:$0x11] }
 0x115   :  { %3005 = vmatpush1.bf16.msra.mxu0 %v5329_v15  ;;  %v4761_v10 = vcombine.high %v4749_v4, %v4749_v4  ;;  %v4663_v15 = vld [vmem:[%s6912_s0 + $0x17] sm:$0x1] }
 0x116   :  { %3006 = vmatprep.subr.bf16.mxu0 %v5337_v17  ;;  %v5354_v17 = vld [vmem:[%s6913_s1 + $0x898] ss:$8 sps:$4 sm:$0xff]  }
 0x117   :  { %2646 = vmatpush1.bf16.msra.mxu1 %v5304_v12 }
 0x118   :  { %2647 = vmatprep.subr.bf16.mxu1 %v5312_v13 }
 0x119   :  { %3007 = vmatpush1.bf16.msra.mxu0 %v5335_v21  ;;  %v5381_v21 = vld [vmem:[%s6913_s1 + $0x930] ss:$8 sps:$4 sm:$0xff]  }
 0x11a   :  { %3008 = vmatprep.subr.bf16.mxu0 %v5343_v22  ;;  %v4760_v22 = vcombine.low %v4749_v4, %v4749_v4 }
 0x11b   :  { %2648 = vmatpush1.bf16.msra.mxu1 %v5310_v18 }
 0x11c   :  { %2649 = vmatprep.subr.bf16.mxu1 %v2637_v20  ;;  %v5362_v20 = vld [vmem:[%s6913_s1 + $0x8ac] ss:$8 sps:$4 sm:$0xff]  }
 0x11d   :  { %v495_v27 = vpop.f32.mrb[8].mxu1  ;;  %3009 = vmatpush1.bf16.msra.mxu0 %v5341_v26  ;;  %v5368_v26 = vld [vmem:[%s6913_s1 + $0x8bc] ss:$8 sps:$4 sm:$0xff]  }
 0x11e   :  { %v502_v30 = vadd.f32 %v495_v27, %v6430_v54  ;;  %v497_v31 = vpop.f32.mrb[9].mxu1  ;;  %3010 = vmatprep.subr.bf16.mxu0 %v5349_v28  ;;  %v4674_v54 = vld [vmem:[%s6913_s1 + $0x838] sm:$0x11]  ;;  %v3239_v27 = vand.u32 %v4760_v22, %v5590_v16  ;;  %v5393_v28 = vld [vmem:[%s6913_s1 + $0x9a4] ss:$8 sps:$4 sm:$0xff]  }
 0x11f   :  { %v503_v32 = vadd.f32 %v497_v31, %v382_v59  ;;  %v499_v33 = vpop.f32.mrb[10].mxu1  ;;  %2650 = vmatpush1.bf16.msra.mxu1 %v2634_v24  ;;  %v4686_v59 = vcombine.high %v4674_v54, %v4674_v54  ;;  %v4685_v63 = vcombine.low %v4674_v54, %v4674_v54  ;;  %v3242_v24 = vand.u32 %v4761_v10, %v5590_v16  ;;  %v5374_v31 = vld [vmem:[%s6913_s1 + $0x8cc] ss:$8 sps:$4 sm:$0xff]  }
 0x120   :  { %v6513_v36 = vadd.f32 %v616_v1, %v502_v30  ;;  %v500_v37 = vpop.f32.mrb[11].mxu1  ;;  %2881 = vmatprep.subr.bf16.mxu1 %v5322_v25  ;;  %v858_v47 = vpop.f32.mrb[8].mxu0  ;;  %v5369_v1 = vld [vmem:[%s6913_s1 + $0x910] ss:$8 sps:$4 sm:$0xff]   ;;  %v5417_v54 = vld [vmem:[%s6913_s1 + $0x9e4] ss:$8 sps:$4 sm:$0xff]  }
 0x121   :  { %v624_v41 = vadd.f32 %v618_v5, %v503_v32  ;;  %3011 = vmatpush1.bf16.msra.mxu0 %v5347_v39  ;;  %v860_v50 = vpop.f32.mrb[9].mxu0  ;;  %v2879_v0 = vand.u32 %v4686_v59, %v5590_v16  ;;  %v2876_v5 = vand.u32 %v4685_v63, %v5590_v16  ;;  %v5360_v25 = vld [vmem:[%s6913_s1 + $0x8a8] ss:$8 sps:$4 sm:$0xff]   ;;  %v5366_v30 = vld [vmem:[%s6913_s1 + $0x8b8] ss:$8 sps:$4 sm:$0xff]  }
 0x122   :  { %4637 = vmatmul.mubr.msk.bf16.vlgmr.msra.gmra.mrb[44].mxu1 %vm103_vm1, %v4613_v34  ;;  %3012 = vmatprep.subr.bf16.mxu0 %v3000_v42  ;;  %v862_v53 = vpop.f32.mrb[10].mxu0  ;;  %v4738_v33 = vld [vmem:[%s6912_s0 + $0x1a] sm:$0x1]  ;;  %v5391_v34 = vld [vmem:[%s6913_s1 + $0x9a0] ss:$8 sps:$4 sm:$0xff]  }
 0x123   :  { %2882 = vmatpush1.bf16.msra.mxu1 %v5320_v35  ;;  %2913 = vmatprep.mubr.bf16.mxu1 %v5513_v2  ;;  %v863_v56 = vpop.f32.mrb[11].mxu0  ;;  %v5399_v37 = vld [vmem:[%s6913_s1 + $0x9b4] ss:$8 sps:$4 sm:$0xff]   ;;  %v5372_v39 = vld [vmem:[%s6913_s1 + $0x8c8] ss:$8 sps:$4 sm:$0xff]  }
 0x124   :  { %2883 = vmatprep.subr.bf16.mxu1 %v5328_v38  ;;  %v5397_v42 = vld [vmem:[%s6913_s1 + $0x9b0] ss:$8 sps:$4 sm:$0xff]   ;;  %v5414_v22 = vld [vmem:[%s6913_s1 + $0x98c] ss:$8 sps:$4 sm:$0xff]  }
 0x125   :  { %3013 = vmatpush1.bf16.msra.mxu0 %v2997_v45 }
 0x126   :  { %3244 = vmatprep.subr.bf16.mxu0 %v5359_v46 }
 0x127   :  { %2884 = vmatpush1.bf16.msra.mxu1 %v5326_v43  ;;  %v5405_v43 = vld [vmem:[%s6913_s1 + $0x9c4] ss:$8 sps:$4 sm:$0xff]  }
 0x128   :  { %2885 = vmatprep.subr.bf16.mxu1 %v5334_v44  ;;  %4712 = vmatmul.mubr.msk.bf16.vlgmr.msra.gmra.mrb[44].mxu0 %vm103_vm1, %v4688_v51  ;;  %v5378_v44 = vld [vmem:[%s6913_s1 + $0x8d8] ss:$8 sps:$4 sm:$0xff]   ;;  %v5390_v51 = vld [vmem:[%s6913_s1 + $0x94c] ss:$8 sps:$4 sm:$0xff]  }
 0x129   :  { %3245 = vmatpush1.bf16.msra.mxu0 %v5357_v52  ;;  %3276 = vmatprep.mubr.bf16.mxu0 %v5513_v2  ;;  %v5409_v52 = vld [vmem:[%s6913_s1 + $0x9d0] ss:$8 sps:$4 sm:$0xff]  }
 0x12a   :  { %3246 = vmatprep.subr.bf16.mxu0 %v5365_v55 }
 0x12b   :  { %2886 = vmatpush1.bf16.msra.mxu1 %v5332_v48  ;;  %v5411_v48 = vld [vmem:[%s6913_s1 + $0x9d4] ss:$8 sps:$4 sm:$0xff]  }
 0x12c   :  { %2887 = vmatprep.subr.bf16.mxu1 %v5340_v49  ;;  %v4799_v49 = vld [vmem:[%s6913_s1 + $0x9f0] sm:$0x11] }
 0x12d   :  { %3247 = vmatpush1.bf16.msra.mxu0 %v5363_v60  ;;  %v4811_v55 = vcombine.high %v4799_v49, %v4799_v49  ;;  %v4713_v60 = vld [vmem:[%s6912_s0 + $0x19] sm:$0x1] }
 0x12e   :  { %3248 = vmatprep.subr.bf16.mxu0 %v5371_v61  ;;  %v5388_v61 = vld [vmem:[%s6913_s1 + $0x948] ss:$8 sps:$4 sm:$0xff]  }
 0x12f   :  { %2888 = vmatpush1.bf16.msra.mxu1 %v5338_v57 }
 0x130   :  { %2889 = vmatprep.subr.bf16.mxu1 %v5346_v58 }
 0x131   :  { %3249 = vmatpush1.bf16.msra.mxu0 %v5369_v1  ;;  %v5415_v1 = vld [vmem:[%s6913_s1 + $0x9e0] ss:$8 sps:$4 sm:$0xff]  }
 0x132   :  { %3250 = vmatprep.subr.bf16.mxu0 %v5377_v3  ;;  %v4810_v3 = vcombine.low %v4799_v49, %v4799_v49 }
 0x133   :  { %2890 = vmatpush1.bf16.msra.mxu1 %v5344_v62 }
 0x134   :  { %2891 = vmatprep.subr.bf16.mxu1 %v2879_v0  ;;  %v5396_v0 = vld [vmem:[%s6913_s1 + $0x95c] ss:$8 sps:$4 sm:$0xff]  }
 0x135   :  { %v737_v8 = vpop.f32.mrb[12].mxu1  ;;  %3251 = vmatpush1.bf16.msra.mxu0 %v5375_v7  ;;  %v5402_v7 = vld [vmem:[%s6913_s1 + $0x96c] ss:$8 sps:$4 sm:$0xff]  }
 0x136   :  { %v744_v11 = vadd.f32 %v737_v8, %v6513_v36  ;;  %v739_v12 = vpop.f32.mrb[13].mxu1  ;;  %3252 = vmatprep.subr.bf16.mxu0 %v5383_v9  ;;  %v4724_v36 = vld [vmem:[%s6913_s1 + $0x8e8] sm:$0x11]  ;;  %v3481_v8 = vand.u32 %v4810_v3, %v5590_v16  ;;  %v5427_v9 = vld [vmem:[%s6913_s1 + $0xa54] ss:$8 sps:$4 sm:$0xff]  }
 0x137   :  { %v745_v13 = vadd.f32 %v739_v12, %v624_v41  ;;  %v741_v14 = vpop.f32.mrb[14].mxu1  ;;  %2892 = vmatpush1.bf16.msra.mxu1 %v2876_v5  ;;  %v4736_v41 = vcombine.high %v4724_v36, %v4724_v36  ;;  %v4735_v45 = vcombine.low %v4724_v36, %v4724_v36  ;;  %v3484_v5 = vand.u32 %v4811_v55, %v5590_v16  ;;  %v5408_v12 = vld [vmem:[%s6913_s1 + $0x97c] ss:$8 sps:$4 sm:$0xff]   ;;  %v5434_v55 = vld [vmem:[%s6913_s1 + $0xa18] ss:$8 sps:$4 sm:$0xff]  }
 0x138   :  { %v6596_v18 = vadd.f32 %v858_v47, %v744_v11  ;;  %v742_v19 = vpop.f32.mrb[15].mxu1  ;;  %3123 = vmatprep.subr.bf16.mxu1 %v5356_v6  ;;  %v1100_v29 = vpop.f32.mrb[12].mxu0  ;;  %v5403_v47 = vld [vmem:[%s6913_s1 + $0x9c0] ss:$8 sps:$4 sm:$0xff]   ;;  %v4788_v14 = vld [vmem:[%s6912_s0 + $0x1c] sm:$0x1] }
 0x139   :  { %v866_v23 = vadd.f32 %v860_v50, %v745_v13  ;;  %3253 = vmatpush1.bf16.msra.mxu0 %v5381_v21  ;;  %v1102_v32 = vpop.f32.mrb[13].mxu0  ;;  %v3121_v46 = vand.u32 %v4736_v41, %v5590_v16  ;;  %v3118_v50 = vand.u32 %v4735_v45, %v5590_v16  ;;  %v5394_v6 = vld [vmem:[%s6913_s1 + $0x958] ss:$8 sps:$4 sm:$0xff]   ;;  %v5400_v11 = vld [vmem:[%s6913_s1 + $0x968] ss:$8 sps:$4 sm:$0xff]  }
 0x13a   :  { %4687 = vmatmul.mubr.msk.bf16.vlgmr.msra.gmra.mrb[48].mxu1 %vm103_vm1, %v4663_v15  ;;  %3254 = vmatprep.subr.bf16.mxu0 %v3242_v24  ;;  %v1104_v35 = vpop.f32.mrb[14].mxu0  ;;  %v5425_v15 = vld [vmem:[%s6913_s1 + $0xa50] ss:$8 sps:$4 sm:$0xff]   ;;  %v5433_v19 = vld [vmem:[%s6913_s1 + $0xa64] ss:$8 sps:$4 sm:$0xff]  }
 0x13b   :  { %3124 = vmatpush1.bf16.msra.mxu1 %v5354_v17  ;;  %3155 = vmatprep.mubr.bf16.mxu1 %v5513_v2  ;;  %v1105_v38 = vpop.f32.mrb[15].mxu0  ;;  %v5406_v21 = vld [vmem:[%s6913_s1 + $0x978] ss:$8 sps:$4 sm:$0xff]   ;;  %v5451_v36 = vld [vmem:[%s6913_s1 + $0xa94] ss:$8 sps:$4 sm:$0xff]  }
 0x13c   :  { %3125 = vmatprep.subr.bf16.mxu1 %v5362_v20  ;;  %v5431_v24 = vld [vmem:[%s6913_s1 + $0xa60] ss:$8 sps:$4 sm:$0xff]  }
 0x13d   :  { %3255 = vmatpush1.bf16.msra.mxu0 %v3239_v27 }
 0x13e   :  { %3486 = vmatprep.subr.bf16.mxu0 %v5393_v28 }
 0x13f   :  { %3126 = vmatpush1.bf16.msra.mxu1 %v5360_v25  ;;  %v5439_v25 = vld [vmem:[%s6913_s1 + $0xa74] ss:$8 sps:$4 sm:$0xff]  }
 0x140   :  { %3127 = vmatprep.subr.bf16.mxu1 %v5368_v26  ;;  %4762 = vmatmul.mubr.msk.bf16.vlgmr.msra.gmra.mrb[48].mxu0 %vm103_vm1, %v4738_v33  ;;  %v5412_v26 = vld [vmem:[%s6913_s1 + $0x988] ss:$8 sps:$4 sm:$0xff]   ;;  %v5424_v33 = vld [vmem:[%s6913_s1 + $0x9fc] ss:$8 sps:$4 sm:$0xff]  }
 0x141   :  { %3487 = vmatpush1.bf16.msra.mxu0 %v5391_v34  ;;  %3518 = vmatprep.mubr.bf16.mxu0 %v5513_v2  ;;  %v5443_v34 = vld [vmem:[%s6913_s1 + $0xa80] ss:$8 sps:$4 sm:$0xff]  }
 0x142   :  { %3488 = vmatprep.subr.bf16.mxu0 %v5399_v37 }
 0x143   :  { %3128 = vmatpush1.bf16.msra.mxu1 %v5366_v30  ;;  %v5445_v30 = vld [vmem:[%s6913_s1 + $0xa84] ss:$8 sps:$4 sm:$0xff]  }
 0x144   :  { %3129 = vmatprep.subr.bf16.mxu1 %v5374_v31  ;;  %v4849_v31 = vld [vmem:[%s6913_s1 + $0xaa0] sm:$0x11] }
 0x145   :  { %3489 = vmatpush1.bf16.msra.mxu0 %v5397_v42  ;;  %v4861_v37 = vcombine.high %v4849_v31, %v4849_v31  ;;  %v4763_v42 = vld [vmem:[%s6912_s0 + $0x1b] sm:$0x1] }
 0x146   :  { %3490 = vmatprep.subr.bf16.mxu0 %v5405_v43  ;;  %v5422_v43 = vld [vmem:[%s6913_s1 + $0x9f8] ss:$8 sps:$4 sm:$0xff]  }
 0x147   :  { %3130 = vmatpush1.bf16.msra.mxu1 %v5372_v39 }
 0x148   :  { %3131 = vmatprep.subr.bf16.mxu1 %v5380_v40 }
 0x149   :  { %3491 = vmatpush1.bf16.msra.mxu0 %v5403_v47  ;;  %v5449_v47 = vld [vmem:[%s6913_s1 + $0xa90] ss:$8 sps:$4 sm:$0xff]  }
 0x14a   :  { %3492 = vmatprep.subr.bf16.mxu0 %v5411_v48  ;;  %v4860_v48 = vcombine.low %v4849_v31, %v4849_v31 }
 0x14b   :  { %3132 = vmatpush1.bf16.msra.mxu1 %v5378_v44 }
 0x14c   :  { %3133 = vmatprep.subr.bf16.mxu1 %v3121_v46  ;;  %v5430_v46 = vld [vmem:[%s6913_s1 + $0xa0c] ss:$8 sps:$4 sm:$0xff]  }
 0x14d   :  { %v979_v53 = vpop.f32.mrb[16].mxu1  ;;  %3493 = vmatpush1.bf16.msra.mxu0 %v5409_v52  ;;  %v5436_v52 = vld [vmem:[%s6913_s1 + $0xa1c] ss:$8 sps:$4 sm:$0xff]  }
 0x14e   :  { %v986_v56 = vadd.f32 %v979_v53, %v6596_v18  ;;  %v981_v57 = vpop.f32.mrb[17].mxu1  ;;  %3494 = vmatprep.subr.bf16.mxu0 %v5417_v54  ;;  %v4774_v18 = vld [vmem:[%s6913_s1 + $0x998] sm:$0x11]  ;;  %v3723_v53 = vand.u32 %v4860_v48, %v5590_v16 }
 0x14f   :  { %v987_v58 = vadd.f32 %v981_v57, %v866_v23  ;;  %v983_v59 = vpop.f32.mrb[18].mxu1  ;;  %3134 = vmatpush1.bf16.msra.mxu1 %v3118_v50  ;;  %v4786_v23 = vcombine.high %v4774_v18, %v4774_v18  ;;  %v4785_v27 = vcombine.low %v4774_v18, %v4774_v18  ;;  %v3726_v50 = vand.u32 %v4861_v37, %v5590_v16  ;;  %v5442_v57 = vld [vmem:[%s6913_s1 + $0xa2c] ss:$8 sps:$4 sm:$0xff]  }
 0x150   :  { %v6679_v62 = vadd.f32 %v1100_v29, %v986_v56  ;;  %v984_v63 = vpop.f32.mrb[19].mxu1  ;;  %3365 = vmatprep.subr.bf16.mxu1 %v5390_v51  ;;  %v1342_v10 = vpop.f32.mrb[16].mxu0  ;;  %v5437_v29 = vld [vmem:[%s6913_s1 + $0xa70] ss:$8 sps:$4 sm:$0xff]  }
 0x151   :  { %v1108_v4 = vadd.f32 %v1102_v32, %v987_v58  ;;  %3495 = vmatpush1.bf16.msra.mxu0 %v5415_v1  ;;  %v1344_v13 = vpop.f32.mrb[17].mxu0  ;;  %v3363_v28 = vand.u32 %v4786_v23, %v5590_v16  ;;  %v3360_v32 = vand.u32 %v4785_v27, %v5590_v16  ;;  %v5428_v51 = vld [vmem:[%s6913_s1 + $0xa08] ss:$8 sps:$4 sm:$0xff]   ;;  %v4838_v58 = vld [vmem:[%s6912_s0 + $0x1e] sm:$0x1] }
 0x152   :  { %4737 = vmatmul.mubr.msk.bf16.vlgmr.msra.gmra.mrb[52].mxu1 %vm103_vm1, %v4713_v60  ;;  %3496 = vmatprep.subr.bf16.mxu0 %v3484_v5  ;;  %v1346_v17 = vpop.f32.mrb[18].mxu0  ;;  %v4824_v60 = vld [vmem:[%s6913_s1 + $0xa48] sm:$0x11]  ;;  %v5448_v63 = vld [vmem:[%s6913_s1 + $0xa3c] ss:$8 sps:$4 sm:$0xff]  }
 0x153   :  { %3366 = vmatpush1.bf16.msra.mxu1 %v5388_v61  ;;  %3397 = vmatprep.mubr.bf16.mxu1 %v5513_v2  ;;  %v1347_v20 = vpop.f32.mrb[19].mxu0  ;;  %v5446_v1 = vld [vmem:[%s6913_s1 + $0xa38] ss:$8 sps:$4 sm:$0xff]   ;;  %v4835_v3 = vcombine.low %v4824_v60, %v4824_v60  ;;  %v5461_v17 = vld [vmem:[%s6913_s1 + $0xabc] ss:$8 sps:$4 sm:$0xff]  }
 0x154   :  { %3367 = vmatprep.subr.bf16.mxu1 %v5396_v0  ;;  %v4836_v0 = vcombine.high %v4824_v60, %v4824_v60  ;;  %v5464_v20 = vld [vmem:[%s6913_s1 + $0xacc] ss:$8 sps:$4 sm:$0xff]   ;;  %v5465_v27 = vld [vmem:[%s6913_s1 + $0xad8] ss:$8 sps:$4 sm:$0xff]  }
 0x155   :  { %3497 = vmatpush1.bf16.msra.mxu0 %v3481_v8  ;;  %v3602_v5 = vand.u32 %v4835_v3, %v5590_v16 }
 0x156   :  { %3728 = vmatprep.subr.bf16.mxu0 %v5427_v9 }
 0x157   :  { %3368 = vmatpush1.bf16.msra.mxu1 %v5394_v6  ;;  %v5458_v6 = vld [vmem:[%s6913_s1 + $0xaac] ss:$8 sps:$4 sm:$0xff]  }
 0x158   :  { %3369 = vmatprep.subr.bf16.mxu1 %v5402_v7  ;;  %4812 = vmatmul.mubr.msk.bf16.vlgmr.msra.gmra.mrb[52].mxu0 %vm103_vm1, %v4788_v14 }
 0x159   :  { %3729 = vmatpush1.bf16.msra.mxu0 %v5425_v15  ;;  %3760 = vmatprep.mubr.bf16.mxu0 %v5513_v2 }
 0x15a   :  { %3730 = vmatprep.subr.bf16.mxu0 %v5433_v19  ;;  %v5459_v19 = vld [vmem:[%s6913_s1 + $0xab8] ss:$8 sps:$4 sm:$0xff]  }
 0x15b   :  { %3370 = vmatpush1.bf16.msra.mxu1 %v5400_v11 }
 0x15c   :  { %3371 = vmatprep.subr.bf16.mxu1 %v5408_v12  ;;  %v4813_v12 = vld [vmem:[%s6912_s0 + $0x1d] sm:$0x1] }
 0x15d   :  { %3731 = vmatpush1.bf16.msra.mxu0 %v5431_v24  ;;  %v5467_v24 = vld [vmem:[%s6913_s1 + $0xadc] ss:$8 sps:$4 sm:$0xff]  }
 0x15e   :  { %3732 = vmatprep.subr.bf16.mxu0 %v5439_v25 }
 0x15f   :  { %3372 = vmatpush1.bf16.msra.mxu1 %v5406_v21 }
 0x160   :  { %3373 = vmatprep.subr.bf16.mxu1 %v5414_v22  ;;  %v5462_v22 = vld [vmem:[%s6913_s1 + $0xac8] ss:$8 sps:$4 sm:$0xff]  }
 0x161   :  { %3733 = vmatpush1.bf16.msra.mxu0 %v5437_v29 }
 0x162   :  { %3734 = vmatprep.subr.bf16.mxu0 %v5445_v30  ;;  %v5468_v30 = vld [vmem:[%s6913_s1 + $0xae8] ss:$8 sps:$4 sm:$0xff]  }
 0x163   :  { %3374 = vmatpush1.bf16.msra.mxu1 %v5412_v26 }
 0x164   :  { %3375 = vmatprep.subr.bf16.mxu1 %v3363_v28  ;;  %v5470_v28 = vld [vmem:[%s6913_s1 + $0xaec] ss:$8 sps:$4 sm:$0xff]  }
 0x165   :  { %v1221_v35 = vpop.f32.mrb[20].mxu1  ;;  %3735 = vmatpush1.bf16.msra.mxu0 %v5443_v34 }
 0x166   :  { %v1228_v38 = vadd.f32 %v1221_v35, %v6679_v62  ;;  %v1223_v39 = vpop.f32.mrb[21].mxu1  ;;  %3736 = vmatprep.subr.bf16.mxu0 %v5451_v36  ;;  %v5440_v62 = vld [vmem:[%s6913_s1 + $0xa28] ss:$8 sps:$4 sm:$0xff]  }
 0x167   :  { %v1229_v40 = vadd.f32 %v1223_v39, %v1108_v4  ;;  %v1225_v41 = vpop.f32.mrb[22].mxu1  ;;  %3376 = vmatpush1.bf16.msra.mxu1 %v3360_v32  ;;  %v3605_v4 = vand.u32 %v4836_v0, %v5590_v16  ;;  %v4863_v39 = vld [vmem:[%s6912_s0 + $0x1f] sm:$0x1] }
 0x168   :  { %v1349_v44 = vadd.f32 %v1342_v10, %v1228_v38  ;;  %v1226_v45 = vpop.f32.mrb[23].mxu1  ;;  %3607 = vmatprep.subr.bf16.mxu1 %v5424_v33  ;;  %v1584_v54 = vpop.f32.mrb[20].mxu0 }
 0x169   :  { %v1350_v49 = vadd.f32 %v1344_v13, %v1229_v40  ;;  %3737 = vmatpush1.bf16.msra.mxu0 %v5449_v47  ;;  %v1586_v56 = vpop.f32.mrb[21].mxu0  ;;  %v5456_v13 = vld [vmem:[%s6913_s1 + $0xaa8] ss:$8 sps:$4 sm:$0xff]  }
 0x16a   :  { %4787 = vmatmul.mubr.msk.bf16.vlgmr.msra.gmra.mrb[56].mxu1 %vm103_vm1, %v4763_v42  ;;  %3738 = vmatprep.subr.bf16.mxu0 %v3726_v50  ;;  %v1588_v59 = vpop.f32.mrb[22].mxu0 }
 0x16b   :  { %3608 = vmatpush1.bf16.msra.mxu1 %v5422_v43  ;;  %3639 = vmatprep.mubr.bf16.mxu1 %v5513_v2  ;;  %v1589_v61 = vpop.f32.mrb[23].mxu0 }
 0x16c   :  { %3609 = vmatprep.subr.bf16.mxu1 %v5430_v46 }
 0x16d   :  { %3739 = vmatpush1.bf16.msra.mxu0 %v3723_v53 }
 0x16f   :  { %3610 = vmatpush1.bf16.msra.mxu1 %v5428_v51 }
 0x170   :  { %3611 = vmatprep.subr.bf16.mxu1 %v5436_v52  ;;  %4862 = vmatmul.mubr.msk.bf16.vlgmr.msra.gmra.mrb[56].mxu0 %vm103_vm1, %v4838_v58 }
 0x173   :  { %3612 = vmatpush1.bf16.msra.mxu1 %v5434_v55 }
 0x174   :  { %3613 = vmatprep.subr.bf16.mxu1 %v5442_v57 }
 0x177   :  { %3614 = vmatpush1.bf16.msra.mxu1 %v5440_v62 }
 0x178   :  { %3615 = vmatprep.subr.bf16.mxu1 %v5448_v63 }
 0x17b   :  { %3616 = vmatpush1.bf16.msra.mxu1 %v5446_v1 }
 0x17c   :  { %3617 = vmatprep.subr.bf16.mxu1 %v3605_v4 }
 0x17d   :  { %v1463_v7 = vpop.f32.mrb[24].mxu1 }
 0x17e   :  { %v1470_v8 = vadd.f32 %v1463_v7, %v1349_v44  ;;  %v1465_v9 = vpop.f32.mrb[25].mxu1  ;;  %v5473_v7 = vld [vmem:[%s6915_s3 + $0x40] sm:$0xff]  }
 0x17f   :  { %v1471_v10 = vadd.f32 %v1465_v9, %v1350_v49  ;;  %v1467_v11 = vpop.f32.mrb[26].mxu1  ;;  %3618 = vmatpush1.bf16.msra.mxu1 %v3602_v5  ;;  %4905 = vmatprep.subr.bf16.mxu0 %v5473_v7  ;;  %v5475_v9 = vld [vmem:[%s6915_s3 + $0x48] sm:$0xff]  }
 0x180   :  { %v1591_v14 = vadd.f32 %v1584_v54, %v1470_v8  ;;  %v1468_v15 = vpop.f32.mrb[27].mxu1  ;;  %3849 = vmatprep.subr.bf16.mxu1 %v5458_v6  ;;  %v1826_v21 = vpop.f32.mrb[24].mxu0  ;;  %v5474_v8 = vld [vmem:[%s6915_s3] sm:$0xff]   ;;  %v5477_v11 = vld [vmem:[%s6915_s3 + $0x50] sm:$0xff]  }
 0x181   :  { %v1592_v18 = vadd.f32 %v1586_v56, %v1471_v10  ;;  %v1828_v23 = vpop.f32.mrb[25].mxu0  ;;  %4906 = vmatpush3.bf16.msra.mxu0 %v5474_v8  ;;  %v5476_v10 = vld [vmem:[%s6915_s3 + $0x8] sm:$0xff]  }
 0x182   :  { %4837 = vmatmul.mubr.msk.bf16.vlgmr.msra.gmra.mrb[60].mxu1 %vm103_vm1, %v4813_v12  ;;  %v1830_v25 = vpop.f32.mrb[26].mxu0  ;;  %4907 = vmatprep.subr.bf16.mxu0 %v5475_v9 }
 0x183   :  { %3850 = vmatpush1.bf16.msra.mxu1 %v5456_v13  ;;  %3881 = vmatprep.mubr.bf16.mxu1 %v5513_v2  ;;  %v4874_v2 = vld [vmem:[%s6913_s1 + $0xaf8] sm:$0x11]  ;;  %v1831_v26 = vpop.f32.mrb[27].mxu0  ;;  %v5478_v13 = vld [vmem:[%s6915_s3 + $0x10] sm:$0xff]   ;;  %v5482_v25 = vld [vmem:[%s6915_s3 + $0x20] sm:$0xff]  }
 0x184   :  { %3851 = vmatprep.subr.bf16.mxu1 %v5461_v17  ;;  %v4886_v29 = vcombine.high %v4874_v2, %v4874_v2  ;;  %v4885_v31 = vcombine.low %v4874_v2, %v4874_v2  ;;  %v5479_v17 = vld [vmem:[%s6915_s3 + $0x58] sm:$0xff]   ;;  %v5483_v26 = vld [vmem:[%s6915_s3 + $0x68] sm:$0xff]  }
 0x185   :  { %4908 = vmatpush3.bf16.msra.mxu0 %v5476_v10 }
 0x186   :  { %v3847_v32 = vand.u32 %v4886_v29, %v5590_v16  ;;  %v3844_v33 = vand.u32 %v4885_v31, %v5590_v16  ;;  %4909 = vmatprep.subr.bf16.mxu0 %v5477_v11  ;;  %v5485_v31 = vld [vmem:[%s6915_s3 + $0x70] sm:$0xff]  }
 0x187   :  { %3852 = vmatpush1.bf16.msra.mxu1 %v5459_v19 }
 0x188   :  { %3853 = vmatprep.subr.bf16.mxu1 %v5464_v20 }
 0x189   :  { %4910 = vmatpush3.bf16.msra.mxu0 %v5478_v13 }
 0x18a   :  { %4911 = vmatprep.subr.bf16.mxu0 %v5479_v17 }
 0x18b   :  { %3854 = vmatpush1.bf16.msra.mxu1 %v5462_v22 }
 0x18c   :  { %3855 = vmatprep.subr.bf16.mxu1 %v5467_v24  ;;  %v5481_v24 = vld [vmem:[%s6915_s3 + $0x60] sm:$0xff]  }
 0x18f   :  { %3856 = vmatpush1.bf16.msra.mxu1 %v5465_v27 }
 0x190   :  { %3857 = vmatprep.subr.bf16.mxu1 %v5470_v28 }
 0x193   :  { %3858 = vmatpush1.bf16.msra.mxu1 %v5468_v30  ;;  %v5484_v30 = vld [vmem:[%s6915_s3 + $0x28] sm:$0xff]  }
 0x194   :  { %3859 = vmatprep.subr.bf16.mxu1 %v3847_v32  ;;  %v5486_v32 = vld [vmem:[%s6915_s3 + $0x30] sm:$0xff]  }
 0x195   :  { %v1705_v34 = vpop.f32.mrb[28].mxu1 }
 0x196   :  { %v1712_v35 = vadd.f32 %v1705_v34, %v1591_v14  ;;  %v1707_v36 = vpop.f32.mrb[29].mxu1  ;;  %v5488_v34 = vld [vmem:[%s6915_s3 + $0x38] sm:$0xff]  }
 0x197   :  { %v1713_v37 = vadd.f32 %v1707_v36, %v1592_v18  ;;  %v1709_v38 = vpop.f32.mrb[30].mxu1  ;;  %3860 = vmatpush1.bf16.msra.mxu1 %v3844_v33  ;;  %v5487_v33 = vld [vmem:[%s6915_s3 + $0x78] sm:$0xff]  }
 0x198   :  { %v1833_v40 = vadd.f32 %v1826_v21, %v1712_v35  ;;  %v1710_v41 = vpop.f32.mrb[31].mxu1  ;;  %v2068_v43 = vpop.f32.mrb[28].mxu0 }
 0x199   :  { %v1834_v42 = vadd.f32 %v1828_v23, %v1713_v37  ;;  %v2070_v44 = vpop.f32.mrb[29].mxu0  ;;  %v5480_v23 = vld [vmem:[%s6915_s3 + $0x18] sm:$0xff]  }
 0x19a   :  { %4887 = vmatmul.mubr.msk.bf16.vlgmr.msra.gmra.mrb[64].mxu1 %vm103_vm1, %v4863_v39  ;;  %v2072_v45 = vpop.f32.mrb[30].mxu0  ;;  %4912 = vmatpush3.bf16.msra.mxu0 %v5480_v23 }
 0x19b   :  { %v2073_v16 = vpop.f32.mrb[31].mxu0  ;;  %4913 = vmatprep.subr.bf16.mxu0 %v5481_v24 }
 0x19e   :  { %4914 = vmatpush3.bf16.msra.mxu0 %v5482_v25 }
 0x19f   :  { %4915 = vmatprep.subr.bf16.mxu0 %v5483_v26 }
 0x1a2   :  { %4916 = vmatpush3.bf16.msra.mxu0 %v5484_v30  ;;  %v3892_v30 = vld [vmem:[%s6914_s2] sm:$0x3] }
 0x1a3   :  { %4917 = vmatprep.subr.bf16.mxu0 %v5485_v31 }
 0x1a6   :  { %4918 = vmatpush3.bf16.msra.mxu0 %v5486_v32 }
 0x1a7   :  { %4919 = vmatprep.subr.bf16.mxu0 %v5487_v33 }
 0x1aa   :  { %4920 = vmatpush3.bf16.msra.mxu0 %v5488_v34 }
 0x1ad   :  { %v1947_v46 = vpop.f32.mrb[32].mxu1 }
 0x1ae   :  { %v1954_v47 = vadd.f32 %v1947_v46, %v1833_v40  ;;  %v1949_v48 = vpop.f32.mrb[33].mxu1 }
 0x1af   :  { %v1955_v49 = vadd.f32 %v1949_v48, %v1834_v42  ;;  %v1951_v50 = vpop.f32.mrb[34].mxu1 }
 0x1b0   :  { %v2075_v51 = vadd.f32 %v2068_v43, %v1954_v47  ;;  %v1952_v52 = vpop.f32.mrb[35].mxu1  ;;  %v2310_v54 = vpop.f32.mrb[32].mxu0 }
 0x1b1   :  { %v2076_v53 = vadd.f32 %v2070_v44, %v1955_v49  ;;  %v2312_v55 = vpop.f32.mrb[33].mxu0 }
 0x1b2   :  { %v2314_v56 = vpop.f32.mrb[34].mxu0 }
 0x1b3   :  { %v2315_v57 = vpop.f32.mrb[35].mxu0 }
 0x1c5   :  { %v2189_v58 = vpop.f32.mrb[36].mxu1 }
 0x1c6   :  { %v2196_v59 = vadd.f32 %v2189_v58, %v2075_v51  ;;  %v2191_v60 = vpop.f32.mrb[37].mxu1 }
 0x1c7   :  { %v2197_v61 = vadd.f32 %v2191_v60, %v2076_v53  ;;  %v2193_v62 = vpop.f32.mrb[38].mxu1 }
 0x1c8   :  { %v2317_v63 = vadd.f32 %v2310_v54, %v2196_v59  ;;  %v2194_v0 = vpop.f32.mrb[39].mxu1 }
 0x1c9   :  { %v2318_v1 = vadd.f32 %v2312_v55, %v2197_v61 }
 0x1cb   :  { %v2552_v3 = vpop.f32.mrb[36].mxu0 }
 0x1cc   :  { %v2554_v4 = vpop.f32.mrb[37].mxu0 }
 0x1cd   :  { %v2556_v5 = vpop.f32.mrb[38].mxu0 }
 0x1ce   :  { %v2557_v6 = vpop.f32.mrb[39].mxu0 }
 0x1dd   :  { %v2431_v12 = vpop.f32.mrb[40].mxu1 }
 0x1de   :  { %v2438_v14 = vadd.f32 %v2431_v12, %v2317_v63  ;;  %v2433_v15 = vpop.f32.mrb[41].mxu1 }
 0x1df   :  { %v2439_v18 = vadd.f32 %v2433_v15, %v2318_v1  ;;  %v2435_v19 = vpop.f32.mrb[42].mxu1 }
 0x1e0   :  { %v2559_v20 = vadd.f32 %v2552_v3, %v2438_v14  ;;  %v2436_v21 = vpop.f32.mrb[43].mxu1 }
 0x1e1   :  { %v2560_v22 = vadd.f32 %v2554_v4, %v2439_v18 }
 0x1e3   :  { %v2794_v2 = vpop.f32.mrb[40].mxu0 }
 0x1e4   :  { %v2796_v27 = vpop.f32.mrb[41].mxu0 }
 0x1e5   :  { %v2798_v28 = vpop.f32.mrb[42].mxu0 }
 0x1e6   :  { %v2799_v29 = vpop.f32.mrb[43].mxu0 }
 0x1f5   :  { %v2673_v35 = vpop.f32.mrb[44].mxu1 }
 0x1f6   :  { %v2680_v36 = vadd.f32 %v2673_v35, %v2559_v20  ;;  %v2675_v37 = vpop.f32.mrb[45].mxu1 }
 0x1f7   :  { %v2681_v38 = vadd.f32 %v2675_v37, %v2560_v22  ;;  %v2677_v39 = vpop.f32.mrb[46].mxu1 }
 0x1f8   :  { %v2801_v40 = vadd.f32 %v2794_v2, %v2680_v36  ;;  %v2678_v41 = vpop.f32.mrb[47].mxu1 }
 0x1f9   :  { %v2802_v42 = vadd.f32 %v2796_v27, %v2681_v38  ;;  %v3894_v27 = vlaneseq }
 0x1fb   :  { %v3036_v43 = vpop.f32.mrb[44].mxu0  ;;  %v3895_v28 = vshrl.u32 %v3894_v27, 7 }
 0x1fc   :  { %v3038_v44 = vpop.f32.mrb[45].mxu0 }
 0x1fd   :  { %v3040_v45 = vpop.f32.mrb[46].mxu0  ;;  %v3896_v29 = vsub.s32 0, %v3895_v28  ;;  %v3900_v31 = vsub.s32 1, %v3895_v28 }
 0x1fe   :  { %v3041_v16 = vpop.f32.mrb[47].mxu0 }
 0x1ff   :  { %v3897_v32 = vrot.slane %v3892_v30, %v3896_v29  ;;  %v3901_v34 = vrot.slane %v3892_v30, %v3900_v31 }
 0x20d   :  { %v2915_v46 = vpop.f32.mrb[48].mxu1 }
 0x20e   :  { %v2922_v47 = vadd.f32 %v2915_v46, %v2801_v40  ;;  %v2917_v48 = vpop.f32.mrb[49].mxu1 }
 0x20f   :  { %v2923_v49 = vadd.f32 %v2917_v48, %v2802_v42  ;;  %v2919_v50 = vpop.f32.mrb[50].mxu1 }
 0x210   :  { %v3043_v51 = vadd.f32 %v3036_v43, %v2922_v47  ;;  %v2920_v52 = vpop.f32.mrb[51].mxu1  ;;  %v4888_v47 = vld [vmem:[%s6916_s4] ss:$0 sm:$0xff] }
 0x211   :  { %v3044_v53 = vadd.f32 %v3038_v44, %v2923_v49 }
 0x213   :  { %v3278_v54 = vpop.f32.mrb[48].mxu0 }
 0x214   :  { %v3280_v55 = vpop.f32.mrb[49].mxu0 }
 0x215   :  { %v3282_v56 = vpop.f32.mrb[50].mxu0 }
 0x216   :  { %v3283_v57 = vpop.f32.mrb[51].mxu0 }
 0x225   :  { %v3157_v58 = vpop.f32.mrb[52].mxu1 }
 0x226   :  { %v3164_v59 = vadd.f32 %v3157_v58, %v3043_v51  ;;  %v3159_v60 = vpop.f32.mrb[53].mxu1 }
 0x227   :  { %v3165_v61 = vadd.f32 %v3159_v60, %v3044_v53  ;;  %v3161_v62 = vpop.f32.mrb[54].mxu1 }
 0x228   :  { %v3285_v63 = vadd.f32 %v3278_v54, %v3164_v59  ;;  %v3162_v0 = vpop.f32.mrb[55].mxu1 }
 0x229   :  { %v3286_v1 = vadd.f32 %v3280_v55, %v3165_v61 }
 0x22b   :  { %v3520_v3 = vpop.f32.mrb[52].mxu0 }
 0x22c   :  { %v3522_v4 = vpop.f32.mrb[53].mxu0 }
 0x22d   :  { %v3524_v5 = vpop.f32.mrb[54].mxu0 }
 0x22e   :  { %v3525_v6 = vpop.f32.mrb[55].mxu0 }
 0x23d   :  { %v3399_v7 = vpop.f32.mrb[56].mxu1 }
 0x23e   :  { %v3406_v8 = vadd.f32 %v3399_v7, %v3285_v63  ;;  %v3401_v9 = vpop.f32.mrb[57].mxu1 }
 0x23f   :  { %v3407_v10 = vadd.f32 %v3401_v9, %v3286_v1  ;;  %v3403_v11 = vpop.f32.mrb[58].mxu1 }
 0x240   :  { %v3527_v12 = vadd.f32 %v3520_v3, %v3406_v8  ;;  %v3404_v13 = vpop.f32.mrb[59].mxu1 }
 0x241   :  { %v3528_v14 = vadd.f32 %v3522_v4, %v3407_v10 }
 0x243   :  { %v3762_v15 = vpop.f32.mrb[56].mxu0 }
 0x244   :  { %v3764_v17 = vpop.f32.mrb[57].mxu0 }
 0x245   :  { %v3766_v18 = vpop.f32.mrb[58].mxu0 }
 0x246   :  { %v3767_v19 = vpop.f32.mrb[59].mxu0 }
 0x255   :  { %v3641_v20 = vpop.f32.mrb[60].mxu1 }
 0x256   :  { %v3648_v21 = vadd.f32 %v3641_v20, %v3527_v12  ;;  %v3643_v22 = vpop.f32.mrb[61].mxu1 }
 0x257   :  { %v3649_v23 = vadd.f32 %v3643_v22, %v3528_v14  ;;  %v3645_v24 = vpop.f32.mrb[62].mxu1 }
 0x258   :  { %v3769_v25 = vadd.f32 %v3762_v15, %v3648_v21  ;;  %v3646_v2 = vpop.f32.mrb[63].mxu1 }
 0x259   :  { %v3770_v26 = vadd.f32 %v3764_v17, %v3649_v23 }
 0x26d   :  { %v3883_v33 = vpop.f32.mrb[64].mxu1 }
 0x26e   :  { %v3890_v35 = vadd.f32 %v3883_v33, %v3769_v25  ;;  %v3885_v36 = vpop.f32.mrb[65].mxu1 }
 0x26f   :  { %v3891_v37 = vadd.f32 %v3885_v36, %v3770_v26  ;;  %v3887_v38 = vpop.f32.mrb[66].mxu1 }
 0x270   :  { %v3904_v39 = vadd.f32 %v3897_v32, %v3890_v35  ;;  %v3888_v40 = vpop.f32.mrb[67].mxu1 }
 0x271   :  { %v3905_v41 = vadd.f32 %v3901_v34, %v3891_v37 }
 0x272   :  { %v3906_v42 = vmax.f32 %v3904_v39, 0.0 }
 0x273   :  { %v3907_v43 = vmax.f32 %v3905_v41, 0.0 }
 0x274   :  { %v3908_v45 = vpack.c.bf16 %v3906_v42, %v3906_v42 }
 0x275   :  { %v3909_v44 = vpack.c.bf16 %v3907_v43, %v3907_v43 }
 0x277   :  { %4077 = vmatprep.mubr.bf16.mxu0 %v3909_v44 }
 0x278   :  { %4078 = vmatmul.mubr.bf16.vlgmr.msra.gmra.mrb[60].mxu0 %v3908_v45 }
 0x34b   :  { %v4921_v16 = vpop.f32.mrb[60].mxu0 }
 0x34c   :  { %v4922_v46 = vpop.f32.mrb[61].mxu0 }
 0x34d   :  { %v4923_v48 = vadd.f32 %v4922_v46, %v4921_v16  ;;  %v4924_v49 = vpop.f32.mrb[62].mxu0 }
 0x34e   :  { %v4925_v50 = vpop.f32.mrb[63].mxu0 }
 0x34f   :  { %v4080_v51 = vadd.f32 %v4923_v48, %v4888_v47 }
 0x351   :  { %4085 = vst [vmem:[#allocation2] sm:$0x3] %v4080_v51 }
 0x352   :  { %5500 = shalt.err (!%p5497_p4)
}
 0x353   :  { %s5501_s21 = scalar_lea.hbm %s6917_s5, 32 }
 0x354   :  { %p5502_p5 = scmp.ne.s32.totalorder %s6917_s5, %s5501_s21  ;;  %p5505_p6 = scmp.lt.u32.totalorder %s5501_s21, %s6917_s5 }
 0x356   :  { %p5507_p7 = pnand %p5505_p6, %p5502_p5 }
 0x358   :  { %5510 = shalt.err (!%p5507_p7)
}
 0x359   :  { %4095 = dma.vmem_to_hbm [thread:$0]  %s4093_s17, 32, %s6917_s5, [#allocation3]  }
 0x35a   :  { %5511 = dma.done.wait [#allocation3], 32  }
 0x35b   :  { %5512 = vsyncadd [#allocation3], 4294967264 }
 0x35c   :  { %4099 = vsyncpa [#allocation3], 1 }

</bundles_post_ra>
